<compile_context>
chip_gen: v5e
topology: v5e:2x2
jax: 0.10.0
libtpu: 0.0.40
codegen_flags: <defaults>
</compile_context>

<pallas_src>
import math
import functools
import numpy as np
import jax
import jax.numpy as jnp
from jax.experimental import pallas as pl
from jax.experimental.pallas import tpu as pltpu

# ----------------------------- problem sizes -----------------------------
BATCH = 2
HIDDEN_SIZE = 898          # MMOE input dim as instantiated in trans1.py (130 + 6*128)
MMOE_HID = 128             # mmoe_hidden_dim
N_EXPERT = 5
NUM_TASK = 7
BN_EPS = 1e-5              # torch.nn.BatchNorm1d default

EXPERT_COLS = N_EXPERT * MMOE_HID                 # 640 (expert-major expert outputs)
GATE_COLS = NUM_TASK * N_EXPERT                   # 35  (all gate logits, stacked)
FUSED_COLS = EXPERT_COLS + MMOE_HID               # 768 (gate cols padded to one 128-lane group)
GATE_PAD = FUSED_COLS - EXPERT_COLS - GATE_COLS   # 93 zero columns
OUT_COLS = NUM_TASK * MMOE_HID                    # 896 lane-dense output slab


# ================================ fused Pallas kernel ================================

def _mmoe_fused_kernel(x_ref, w_ref, b_ref, w1_ref, b1_ref, w2_ref, b2_ref, o_ref,
                       *, num_task, n_expert, hid):
    """One kernel: experts+gates matmul, softmax mixing, and all task DNNs."""
    x = x_ref[...].astype(jnp.bfloat16)                                   # (B, K) bf16

    # Single fused matmul (bf16 operands, f32 accumulate):
    #   cols [0, 640)      : expert outputs, expert-major (col l*hid + k <-> experts[b,k,l])
    #   cols [640, 675)    : stacked gate logits (col 640 + t*n_expert + l)
    #   cols [675, 768)    : zero padding (ignored)
    fused = (jnp.dot(x, w_ref[...], preferred_element_type=jnp.float32)
             + b_ref[...])                                                # (B, 768) f32

    experts = fused[:, :n_expert * hid]                                   # (B, 640)
    gate_block = fused[:, n_expert * hid:n_expert * hid + hid]            # (B, 128)

    for t in range(num_task):
        # per-task softmax over experts (entirely in vregs, f32)
        g = gate_block[:, t * n_expert:(t + 1) * n_expert]                # (B, n_expert)
        g = g - jnp.max(g, axis=-1, keepdims=True)
        e = jnp.exp(g)
        p = e * pl.reciprocal(jnp.sum(e, axis=-1, keepdims=True), approx=True)

        # gated mixture of experts: sum_l p[:, l] * experts_out[:, :, l]
        mixed = p[:, 0:1] * experts[:, 0:hid]
        for l in range(1, n_expert):
            mixed = mixed + p[:, l:l + 1] * experts[:, l * hid:(l + 1) * hid]

        # task DNN: (Linear -> BN(eval, folded) -> ReLU) x 2, dropout = identity
        h = (jnp.dot(mixed.astype(jnp.bfloat16), w1_ref[t],
                     preferred_element_type=jnp.float32) + b1_ref[t])
        h = jnp.maximum(h, 0.0)
        h = (jnp.dot(h.astype(jnp.bfloat16), w2_ref[t],
                     preferred_element_type=jnp.float32) + b2_ref[t])
        h = jnp.maximum(h, 0.0)

        o_ref[:, t * hid:(t + 1) * hid] = h                               # lane-aligned 128-wide store


def mmoe_forward(x, packed):
    """Whole MMOELayer forward in a single pallas_call.

    Returns a lane-dense (B, NUM_TASK*128) slab; task t's output is
    out[:, t*128:(t+1)*128].
    """
    B, K = x.shape
    kernel = functools.partial(_mmoe_fused_kernel,
                               num_task=NUM_TASK, n_expert=N_EXPERT, hid=MMOE_HID)
    out = pl.pallas_call(
        kernel,
        out_shape=jax.ShapeDtypeStruct((B, OUT_COLS), jnp.float32),
        grid=(1,),
        in_specs=[
            pl.BlockSpec((B, K), lambda i: (0, 0)),                              # x (f32)
            pl.BlockSpec((K, FUSED_COLS), lambda i: (0, 0)),                     # experts+gates W (bf16)
            pl.BlockSpec((1, FUSED_COLS), lambda i: (0, 0)),                     # experts+gates b (f32)
            pl.BlockSpec((NUM_TASK, MMOE_HID, MMOE_HID), lambda i: (0, 0, 0)),   # task DNN W1 (bf16)
            pl.BlockSpec((NUM_TASK, 1, MMOE_HID), lambda i: (0, 0, 0)),          # task DNN b1 (f32)
            pl.BlockSpec((NUM_TASK, MMOE_HID, MMOE_HID), lambda i: (0, 0, 0)),   # task DNN W2 (bf16)
            pl.BlockSpec((NUM_TASK, 1, MMOE_HID), lambda i: (0, 0, 0)),          # task DNN b2 (f32)
        ],
        out_specs=pl.BlockSpec((B, OUT_COLS), lambda i: (0, 0)),
        compiler_params=pltpu.CompilerParams(dimension_semantics=("arbitrary",)),
    )(x, packed['w'], packed['b'], packed['w1'], packed['b1'], packed['w2'], packed['b2'])
    return out


# ============================== params (synthetic, deterministic) ==============================

class KeyGen:
    def __init__(self, key):
        self.key = key

    def __call__(self):
        self.key, k = jax.random.split(self.key)
        return k


def init_params(key):
    kg = KeyGen(key)
    w = lambda shape, s=0.05: s * jax.random.normal(kg(), shape, dtype=jnp.float32)
    return {
        'experts': w((HIDDEN_SIZE, MMOE_HID, N_EXPERT)),
        'experts_bias': w((MMOE_HID, N_EXPERT)),
        'gates': [w((HIDDEN_SIZE, N_EXPERT)) for _ in range(NUM_TASK)],
        'gates_bias': [w((N_EXPERT,)) for _ in range(NUM_TASK)],
        # task_{i}_dnn = DNN(128, (128, 128), use_bn=True): two Linear(128,128) layers
        'task_dnn': [{'w0': w((MMOE_HID, 128)), 'b0': w((128,)),
                      'w1': w((128, 128)), 'b1': w((128,))} for _ in range(NUM_TASK)],
    }


def pack_params(p):
    """Fold / stack / quantize parameters once, outside the kernel."""
    bn_scale = 1.0 / math.sqrt(1.0 + BN_EPS)   # eval-mode BN (running mean 0, var 1) folded in

    # experts: (K, 128, 5) -> expert-major flat (K, 640)
    ew = jnp.transpose(p['experts'], (0, 2, 1)).reshape(HIDDEN_SIZE, EXPERT_COLS)
    # gates: 7 x (K, 5) -> (K, 35), appended to the expert matrix, padded to a 128-lane group
    gw = jnp.concatenate(p['gates'], axis=1)
    w = jnp.concatenate(
        [ew, gw, jnp.zeros((HIDDEN_SIZE, GATE_PAD), jnp.float32)], axis=1
    ).astype(jnp.bfloat16)                                                 # (K, 768) bf16

    eb = jnp.transpose(p['experts_bias'], (1, 0)).reshape(EXPERT_COLS)
    gb = jnp.concatenate(p['gates_bias'])
    b = jnp.concatenate([eb, gb, jnp.zeros((GATE_PAD,), jnp.float32)]).reshape(1, FUSED_COLS)

    # task DNNs stacked on a leading task axis, BN scale folded into W and b
    w1 = (jnp.stack([t['w0'] for t in p['task_dnn']]) * bn_scale).astype(jnp.bfloat16)
    b1 = (jnp.stack([t['b0'] for t in p['task_dnn']]) * bn_scale).reshape(NUM_TASK, 1, MMOE_HID)
    w2 = (jnp.stack([t['w1'] for t in p['task_dnn']]) * bn_scale).astype(jnp.bfloat16)
    b2 = (jnp.stack([t['b1'] for t in p['task_dnn']]) * bn_scale).reshape(NUM_TASK, 1, MMOE_HID)

    return dict(w=w, b=b, w1=w1, b1=b1, w2=w2, b2=b2)


# ============================== pure-JAX reference (f32) ==============================

def mmoe_reference(x, p):
    hp = jax.lax.Precision.HIGHEST
    bn_scale = 1.0 / math.sqrt(1.0 + BN_EPS)
    experts_out = jnp.einsum('ij,jkl->ikl', x, p['experts'], precision=hp) + p['experts_bias']
    outs = []
    for t in range(NUM_TASK):
        g = jnp.dot(x, p['gates'][t], precision=hp) + p['gates_bias'][t]
        gp = jax.nn.softmax(g, axis=-1)
        mixed = jnp.sum(experts_out * gp[:, None, :], axis=2)            # (B, 128)
        td = p['task_dnn'][t]
        h = jnp.maximum((jnp.dot(mixed, td['w0'], precision=hp) + td['b0']) * bn_scale, 0.0)
        h = jnp.maximum((jnp.dot(h, td['w1'], precision=hp) + td['b1']) * bn_scale, 0.0)
        outs.append(h)
    return outs


# ==================================== main ======================================

if __name__ == "__main__":
    key = jax.random.PRNGKey(0)
    k_params, k_x = jax.random.split(key)

    params = init_params(k_params)
    packed = pack_params(params)
    x = jax.random.normal(k_x, (BATCH, HIDDEN_SIZE), dtype=jnp.float32)

    out = mmoe_forward(x, packed)
    out = jax.block_until_ready(out)

    ref = mmoe_reference(x, params)

    out_np = np.asarray(out)
    assert out_np.shape == (BATCH, OUT_COLS), out_np.shape
    assert np.all(np.isfinite(out_np))
    # per-task validation against the f32 reference (bf16 weights -> loose tolerance)
    for t in range(NUM_TASK):
        o_t = out_np[:, t * MMOE_HID:(t + 1) * MMOE_HID]
        r_t = np.asarray(ref[t])
        err = float(np.max(np.abs(o_t - r_t)))
        scale = float(np.max(np.abs(r_t))) + 1e-6
        assert err / scale < 5e-2, (t, err, scale)

    print("KERNEL_OK")
</pallas_src>

<mosaic_0001>
module attributes {stable_mosaic.version = 11 : i64} {
  func.func @_mmoe_fused_kernel(%arg0: i32, %arg1: memref<2x898xf32, #tpu.memory_space<vmem>>, %arg2: memref<898x768xbf16, #tpu.memory_space<vmem>>, %arg3: memref<1x768xf32, #tpu.memory_space<vmem>>, %arg4: memref<7x128x128xbf16, #tpu.memory_space<vmem>>, %arg5: memref<7x1x128xf32, #tpu.memory_space<vmem>>, %arg6: memref<7x128x128xbf16, #tpu.memory_space<vmem>>, %arg7: memref<7x1x128xf32, #tpu.memory_space<vmem>>, %arg8: memref<2x896xf32, #tpu.memory_space<vmem>>) attributes {dimension_semantics = [#tpu.dimension_semantics<arbitrary>], iteration_bounds = array<i64: 1>, scalar_prefetch = 0 : i64, scratch_operands = 0 : i64, tpu.core_type = #tpu.core_type<tc>, window_params = [{pipeline_mode = #tpu.pipeline_mode<synchronous>, transform_indices = @transform_0, window_bounds = array<i64: 2, 898>}, {pipeline_mode = #tpu.pipeline_mode<synchronous>, transform_indices = @transform_1, window_bounds = array<i64: 898, 768>}, {pipeline_mode = #tpu.pipeline_mode<synchronous>, transform_indices = @transform_2, window_bounds = array<i64: 1, 768>}, {pipeline_mode = #tpu.pipeline_mode<synchronous>, transform_indices = @transform_3, window_bounds = array<i64: 7, 128, 128>}, {pipeline_mode = #tpu.pipeline_mode<synchronous>, transform_indices = @transform_4, window_bounds = array<i64: 7, 1, 128>}, {pipeline_mode = #tpu.pipeline_mode<synchronous>, transform_indices = @transform_5, window_bounds = array<i64: 7, 128, 128>}, {pipeline_mode = #tpu.pipeline_mode<synchronous>, transform_indices = @transform_6, window_bounds = array<i64: 7, 1, 128>}, {pipeline_mode = #tpu.pipeline_mode<synchronous>, transform_indices = @transform_7, window_bounds = array<i64: 2, 896>}]} {
    %c0 = arith.constant 0 : index
    %c0_0 = arith.constant 0 : index
    %0 = vector.load %arg1[%c0, %c0_0] : memref<2x898xf32, #tpu.memory_space<vmem>>, vector<2x898xf32>
    %1 = arith.truncf %0 : vector<2x898xf32> to vector<2x898xbf16>
    %c0_1 = arith.constant 0 : index
    %c0_2 = arith.constant 0 : index
    %2 = vector.load %arg2[%c0_1, %c0_2] : memref<898x768xbf16, #tpu.memory_space<vmem>>, vector<898x768xbf16>
    %cst = arith.constant dense<0.000000e+00> : vector<2x768xf32>
    %3 = tpu.matmul %1, %2, %cst {dimension_numbers = #tpu.dot_dimension_numbers<[1], [0], [0], [1], [0, 0, 1, 1], [], []>} : vector<2x898xbf16>, vector<898x768xbf16>, vector<2x768xf32> -> vector<2x768xf32>
    %c0_3 = arith.constant 0 : index
    %c0_4 = arith.constant 0 : index
    %4 = vector.load %arg3[%c0_3, %c0_4] : memref<1x768xf32, #tpu.memory_space<vmem>>, vector<1x768xf32>
    %5 = vector.broadcast %4 : vector<1x768xf32> to vector<2x768xf32>
    %6 = arith.addf %3, %5 : vector<2x768xf32>
    %7 = vector.extract_strided_slice %6 {offsets = [0, 0], sizes = [2, 640], strides = [1, 1]} : vector<2x768xf32> to vector<2x640xf32>
    %8 = vector.extract_strided_slice %6 {offsets = [0, 640], sizes = [2, 128], strides = [1, 1]} : vector<2x768xf32> to vector<2x128xf32>
    %9 = vector.extract_strided_slice %8 {offsets = [0, 0], sizes = [2, 5], strides = [1, 1]} : vector<2x128xf32> to vector<2x5xf32>
    %cst_5 = arith.constant dense<0xFF800000> : vector<2xf32>
    %10 = vector.multi_reduction <maximumf>, %9, %cst_5 [1] : vector<2x5xf32> to vector<2xf32>
    %11 = vector.shape_cast %10 : vector<2xf32> to vector<2x1xf32>
    %12 = vector.broadcast %11 : vector<2x1xf32> to vector<2x5xf32>
    %13 = arith.subf %9, %12 : vector<2x5xf32>
    %14 = math.exp %13 : vector<2x5xf32>
    %cst_6 = arith.constant dense<0.000000e+00> : vector<2xf32>
    %15 = vector.multi_reduction <add>, %14, %cst_6 [1] : vector<2x5xf32> to vector<2xf32>
    %16 = vector.shape_cast %15 : vector<2xf32> to vector<2x1xf32>
    %17 = tpu.reciprocal %16 {approx = true} : vector<2x1xf32> -> vector<2x1xf32>
    %18 = vector.broadcast %17 : vector<2x1xf32> to vector<2x5xf32>
    %19 = arith.mulf %14, %18 : vector<2x5xf32>
    %20 = vector.extract_strided_slice %19 {offsets = [0, 0], sizes = [2, 1], strides = [1, 1]} : vector<2x5xf32> to vector<2x1xf32>
    %21 = vector.extract_strided_slice %7 {offsets = [0, 0], sizes = [2, 128], strides = [1, 1]} : vector<2x640xf32> to vector<2x128xf32>
    %22 = vector.broadcast %20 : vector<2x1xf32> to vector<2x128xf32>
    %23 = arith.mulf %22, %21 : vector<2x128xf32>
    %24 = vector.extract_strided_slice %19 {offsets = [0, 1], sizes = [2, 1], strides = [1, 1]} : vector<2x5xf32> to vector<2x1xf32>
    %25 = vector.extract_strided_slice %7 {offsets = [0, 128], sizes = [2, 128], strides = [1, 1]} : vector<2x640xf32> to vector<2x128xf32>
    %26 = vector.broadcast %24 : vector<2x1xf32> to vector<2x128xf32>
    %27 = arith.mulf %26, %25 : vector<2x128xf32>
    %28 = arith.addf %23, %27 : vector<2x128xf32>
    %29 = vector.extract_strided_slice %19 {offsets = [0, 2], sizes = [2, 1], strides = [1, 1]} : vector<2x5xf32> to vector<2x1xf32>
    %30 = vector.extract_strided_slice %7 {offsets = [0, 256], sizes = [2, 128], strides = [1, 1]} : vector<2x640xf32> to vector<2x128xf32>
    %31 = vector.broadcast %29 : vector<2x1xf32> to vector<2x128xf32>
    %32 = arith.mulf %31, %30 : vector<2x128xf32>
    %33 = arith.addf %28, %32 : vector<2x128xf32>
    %34 = vector.extract_strided_slice %19 {offsets = [0, 3], sizes = [2, 1], strides = [1, 1]} : vector<2x5xf32> to vector<2x1xf32>
    %35 = vector.extract_strided_slice %7 {offsets = [0, 384], sizes = [2, 128], strides = [1, 1]} : vector<2x640xf32> to vector<2x128xf32>
    %36 = vector.broadcast %34 : vector<2x1xf32> to vector<2x128xf32>
    %37 = arith.mulf %36, %35 : vector<2x128xf32>
    %38 = arith.addf %33, %37 : vector<2x128xf32>
    %39 = vector.extract_strided_slice %19 {offsets = [0, 4], sizes = [2, 1], strides = [1, 1]} : vector<2x5xf32> to vector<2x1xf32>
    %40 = vector.extract_strided_slice %7 {offsets = [0, 512], sizes = [2, 128], strides = [1, 1]} : vector<2x640xf32> to vector<2x128xf32>
    %41 = vector.broadcast %39 : vector<2x1xf32> to vector<2x128xf32>
    %42 = arith.mulf %41, %40 : vector<2x128xf32>
    %43 = arith.addf %38, %42 : vector<2x128xf32>
    %44 = arith.truncf %43 : vector<2x128xf32> to vector<2x128xbf16>
    %c0_7 = arith.constant 0 : index
    %c0_8 = arith.constant 0 : index
    %c0_9 = arith.constant 0 : index
    %45 = vector.load %arg4[%c0_7, %c0_8, %c0_9] : memref<7x128x128xbf16, #tpu.memory_space<vmem>>, vector<1x128x128xbf16>
    %46 = vector.shape_cast %45 : vector<1x128x128xbf16> to vector<128x128xbf16>
    %cst_10 = arith.constant dense<0.000000e+00> : vector<2x128xf32>
    %47 = tpu.matmul %44, %46, %cst_10 {dimension_numbers = #tpu.dot_dimension_numbers<[1], [0], [0], [1], [0, 0, 1, 1], [], []>} : vector<2x128xbf16>, vector<128x128xbf16>, vector<2x128xf32> -> vector<2x128xf32>
    %c0_11 = arith.constant 0 : index
    %c0_12 = arith.constant 0 : index
    %c0_13 = arith.constant 0 : index
    %48 = vector.load %arg5[%c0_11, %c0_12, %c0_13] : memref<7x1x128xf32, #tpu.memory_space<vmem>>, vector<1x1x128xf32>
    %49 = vector.shape_cast %48 : vector<1x1x128xf32> to vector<1x128xf32>
    %50 = vector.broadcast %49 : vector<1x128xf32> to vector<2x128xf32>
    %51 = arith.addf %47, %50 : vector<2x128xf32>
    %cst_14 = arith.constant 0.000000e+00 : f32
    %52 = vector.broadcast %cst_14 : f32 to vector<2x128xf32>
    %53 = arith.maximumf %51, %52 : vector<2x128xf32>
    %54 = arith.truncf %53 : vector<2x128xf32> to vector<2x128xbf16>
    %c0_15 = arith.constant 0 : index
    %c0_16 = arith.constant 0 : index
    %c0_17 = arith.constant 0 : index
    %55 = vector.load %arg6[%c0_15, %c0_16, %c0_17] : memref<7x128x128xbf16, #tpu.memory_space<vmem>>, vector<1x128x128xbf16>
    %56 = vector.shape_cast %55 : vector<1x128x128xbf16> to vector<128x128xbf16>
    %cst_18 = arith.constant dense<0.000000e+00> : vector<2x128xf32>
    %57 = tpu.matmul %54, %56, %cst_18 {dimension_numbers = #tpu.dot_dimension_numbers<[1], [0], [0], [1], [0, 0, 1, 1], [], []>} : vector<2x128xbf16>, vector<128x128xbf16>, vector<2x128xf32> -> vector<2x128xf32>
    %c0_19 = arith.constant 0 : index
    %c0_20 = arith.constant 0 : index
    %c0_21 = arith.constant 0 : index
    %58 = vector.load %arg7[%c0_19, %c0_20, %c0_21] : memref<7x1x128xf32, #tpu.memory_space<vmem>>, vector<1x1x128xf32>
    %59 = vector.shape_cast %58 : vector<1x1x128xf32> to vector<1x128xf32>
    %60 = vector.broadcast %59 : vector<1x128xf32> to vector<2x128xf32>
    %61 = arith.addf %57, %60 : vector<2x128xf32>
    %cst_22 = arith.constant 0.000000e+00 : f32
    %62 = vector.broadcast %cst_22 : f32 to vector<2x128xf32>
    %63 = arith.maximumf %61, %62 : vector<2x128xf32>
    %c0_23 = arith.constant 0 : index
    %c0_24 = arith.constant 0 : index
    %64 = vector.load %arg8[%c0_23, %c0_24] : memref<2x896xf32, #tpu.memory_space<vmem>>, vector<2x128xf32>
    tpu.vector_store %arg8[%c0_23, %c0_24], %63 {strides = array<i32>} : memref<2x896xf32, #tpu.memory_space<vmem>>, vector<2x128xf32>,
    %65 = vector.extract_strided_slice %8 {offsets = [0, 5], sizes = [2, 5], strides = [1, 1]} : vector<2x128xf32> to vector<2x5xf32>
    %cst_25 = arith.constant dense<0xFF800000> : vector<2xf32>
    %66 = vector.multi_reduction <maximumf>, %65, %cst_25 [1] : vector<2x5xf32> to vector<2xf32>
    %67 = vector.shape_cast %66 : vector<2xf32> to vector<2x1xf32>
    %68 = vector.broadcast %67 : vector<2x1xf32> to vector<2x5xf32>
    %69 = arith.subf %65, %68 : vector<2x5xf32>
    %70 = math.exp %69 : vector<2x5xf32>
    %cst_26 = arith.constant dense<0.000000e+00> : vector<2xf32>
    %71 = vector.multi_reduction <add>, %70, %cst_26 [1] : vector<2x5xf32> to vector<2xf32>
    %72 = vector.shape_cast %71 : vector<2xf32> to vector<2x1xf32>
    %73 = tpu.reciprocal %72 {approx = true} : vector<2x1xf32> -> vector<2x1xf32>
    %74 = vector.broadcast %73 : vector<2x1xf32> to vector<2x5xf32>
    %75 = arith.mulf %70, %74 : vector<2x5xf32>
    %76 = vector.extract_strided_slice %75 {offsets = [0, 0], sizes = [2, 1], strides = [1, 1]} : vector<2x5xf32> to vector<2x1xf32>
    %77 = vector.extract_strided_slice %7 {offsets = [0, 0], sizes = [2, 128], strides = [1, 1]} : vector<2x640xf32> to vector<2x128xf32>
    %78 = vector.broadcast %76 : vector<2x1xf32> to vector<2x128xf32>
    %79 = arith.mulf %78, %77 : vector<2x128xf32>
    %80 = vector.extract_strided_slice %75 {offsets = [0, 1], sizes = [2, 1], strides = [1, 1]} : vector<2x5xf32> to vector<2x1xf32>
    %81 = vector.extract_strided_slice %7 {offsets = [0, 128], sizes = [2, 128], strides = [1, 1]} : vector<2x640xf32> to vector<2x128xf32>
    %82 = vector.broadcast %80 : vector<2x1xf32> to vector<2x128xf32>
    %83 = arith.mulf %82, %81 : vector<2x128xf32>
    %84 = arith.addf %79, %83 : vector<2x128xf32>
    %85 = vector.extract_strided_slice %75 {offsets = [0, 2], sizes = [2, 1], strides = [1, 1]} : vector<2x5xf32> to vector<2x1xf32>
    %86 = vector.extract_strided_slice %7 {offsets = [0, 256], sizes = [2, 128], strides = [1, 1]} : vector<2x640xf32> to vector<2x128xf32>
    %87 = vector.broadcast %85 : vector<2x1xf32> to vector<2x128xf32>
    %88 = arith.mulf %87, %86 : vector<2x128xf32>
    %89 = arith.addf %84, %88 : vector<2x128xf32>
    %90 = vector.extract_strided_slice %75 {offsets = [0, 3], sizes = [2, 1], strides = [1, 1]} : vector<2x5xf32> to vector<2x1xf32>
    %91 = vector.extract_strided_slice %7 {offsets = [0, 384], sizes = [2, 128], strides = [1, 1]} : vector<2x640xf32> to vector<2x128xf32>
    %92 = vector.broadcast %90 : vector<2x1xf32> to vector<2x128xf32>
    %93 = arith.mulf %92, %91 : vector<2x128xf32>
    %94 = arith.addf %89, %93 : vector<2x128xf32>
    %95 = vector.extract_strided_slice %75 {offsets = [0, 4], sizes = [2, 1], strides = [1, 1]} : vector<2x5xf32> to vector<2x1xf32>
    %96 = vector.extract_strided_slice %7 {offsets = [0, 512], sizes = [2, 128], strides = [1, 1]} : vector<2x640xf32> to vector<2x128xf32>
    %97 = vector.broadcast %95 : vector<2x1xf32> to vector<2x128xf32>
    %98 = arith.mulf %97, %96 : vector<2x128xf32>
    %99 = arith.addf %94, %98 : vector<2x128xf32>
    %100 = arith.truncf %99 : vector<2x128xf32> to vector<2x128xbf16>
    %c1 = arith.constant 1 : index
    %c0_27 = arith.constant 0 : index
    %c0_28 = arith.constant 0 : index
    %101 = vector.load %arg4[%c1, %c0_27, %c0_28] : memref<7x128x128xbf16, #tpu.memory_space<vmem>>, vector<1x128x128xbf16>
    %102 = vector.shape_cast %101 : vector<1x128x128xbf16> to vector<128x128xbf16>
    %cst_29 = arith.constant dense<0.000000e+00> : vector<2x128xf32>
    %103 = tpu.matmul %100, %102, %cst_29 {dimension_numbers = #tpu.dot_dimension_numbers<[1], [0], [0], [1], [0, 0, 1, 1], [], []>} : vector<2x128xbf16>, vector<128x128xbf16>, vector<2x128xf32> -> vector<2x128xf32>
    %c1_30 = arith.constant 1 : index
    %c0_31 = arith.constant 0 : index
    %c0_32 = arith.constant 0 : index
    %104 = vector.load %arg5[%c1_30, %c0_31, %c0_32] : memref<7x1x128xf32, #tpu.memory_space<vmem>>, vector<1x1x128xf32>
    %105 = vector.shape_cast %104 : vector<1x1x128xf32> to vector<1x128xf32>
    %106 = vector.broadcast %105 : vector<1x128xf32> to vector<2x128xf32>
    %107 = arith.addf %103, %106 : vector<2x128xf32>
    %cst_33 = arith.constant 0.000000e+00 : f32
    %108 = vector.broadcast %cst_33 : f32 to vector<2x128xf32>
    %109 = arith.maximumf %107, %108 : vector<2x128xf32>
    %110 = arith.truncf %109 : vector<2x128xf32> to vector<2x128xbf16>
    %c1_34 = arith.constant 1 : index
    %c0_35 = arith.constant 0 : index
    %c0_36 = arith.constant 0 : index
    %111 = vector.load %arg6[%c1_34, %c0_35, %c0_36] : memref<7x128x128xbf16, #tpu.memory_space<vmem>>, vector<1x128x128xbf16>
    %112 = vector.shape_cast %111 : vector<1x128x128xbf16> to vector<128x128xbf16>
    %cst_37 = arith.constant dense<0.000000e+00> : vector<2x128xf32>
    %113 = tpu.matmul %110, %112, %cst_37 {dimension_numbers = #tpu.dot_dimension_numbers<[1], [0], [0], [1], [0, 0, 1, 1], [], []>} : vector<2x128xbf16>, vector<128x128xbf16>, vector<2x128xf32> -> vector<2x128xf32>
    %c1_38 = arith.constant 1 : index
    %c0_39 = arith.constant 0 : index
    %c0_40 = arith.constant 0 : index
    %114 = vector.load %arg7[%c1_38, %c0_39, %c0_40] : memref<7x1x128xf32, #tpu.memory_space<vmem>>, vector<1x1x128xf32>
    %115 = vector.shape_cast %114 : vector<1x1x128xf32> to vector<1x128xf32>
    %116 = vector.broadcast %115 : vector<1x128xf32> to vector<2x128xf32>
    %117 = arith.addf %113, %116 : vector<2x128xf32>
    %cst_41 = arith.constant 0.000000e+00 : f32
    %118 = vector.broadcast %cst_41 : f32 to vector<2x128xf32>
    %119 = arith.maximumf %117, %118 : vector<2x128xf32>
    %c0_42 = arith.constant 0 : index
    %c128 = arith.constant 128 : index
    %120 = vector.load %arg8[%c0_42, %c128] : memref<2x896xf32, #tpu.memory_space<vmem>>, vector<2x128xf32>
    tpu.vector_store %arg8[%c0_42, %c128], %119 {strides = array<i32>} : memref<2x896xf32, #tpu.memory_space<vmem>>, vector<2x128xf32>,
    %121 = vector.extract_strided_slice %8 {offsets = [0, 10], sizes = [2, 5], strides = [1, 1]} : vector<2x128xf32> to vector<2x5xf32>
    %cst_43 = arith.constant dense<0xFF800000> : vector<2xf32>
    %122 = vector.multi_reduction <maximumf>, %121, %cst_43 [1] : vector<2x5xf32> to vector<2xf32>
    %123 = vector.shape_cast %122 : vector<2xf32> to vector<2x1xf32>
    %124 = vector.broadcast %123 : vector<2x1xf32> to vector<2x5xf32>
    %125 = arith.subf %121, %124 : vector<2x5xf32>
    %126 = math.exp %125 : vector<2x5xf32>
    %cst_44 = arith.constant dense<0.000000e+00> : vector<2xf32>
    %127 = vector.multi_reduction <add>, %126, %cst_44 [1] : vector<2x5xf32> to vector<2xf32>
    %128 = vector.shape_cast %127 : vector<2xf32> to vector<2x1xf32>
    %129 = tpu.reciprocal %128 {approx = true} : vector<2x1xf32> -> vector<2x1xf32>
    %130 = vector.broadcast %129 : vector<2x1xf32> to vector<2x5xf32>
    %131 = arith.mulf %126, %130 : vector<2x5xf32>
    %132 = vector.extract_strided_slice %131 {offsets = [0, 0], sizes = [2, 1], strides = [1, 1]} : vector<2x5xf32> to vector<2x1xf32>
    %133 = vector.extract_strided_slice %7 {offsets = [0, 0], sizes = [2, 128], strides = [1, 1]} : vector<2x640xf32> to vector<2x128xf32>
    %134 = vector.broadcast %132 : vector<2x1xf32> to vector<2x128xf32>
    %135 = arith.mulf %134, %133 : vector<2x128xf32>
    %136 = vector.extract_strided_slice %131 {offsets = [0, 1], sizes = [2, 1], strides = [1, 1]} : vector<2x5xf32> to vector<2x1xf32>
    %137 = vector.extract_strided_slice %7 {offsets = [0, 128], sizes = [2, 128], strides = [1, 1]} : vector<2x640xf32> to vector<2x128xf32>
    %138 = vector.broadcast %136 : vector<2x1xf32> to vector<2x128xf32>
    %139 = arith.mulf %138, %137 : vector<2x128xf32>
    %140 = arith.addf %135, %139 : vector<2x128xf32>
    %141 = vector.extract_strided_slice %131 {offsets = [0, 2], sizes = [2, 1], strides = [1, 1]} : vector<2x5xf32> to vector<2x1xf32>
    %142 = vector.extract_strided_slice %7 {offsets = [0, 256], sizes = [2, 128], strides = [1, 1]} : vector<2x640xf32> to vector<2x128xf32>
    %143 = vector.broadcast %141 : vector<2x1xf32> to vector<2x128xf32>
    %144 = arith.mulf %143, %142 : vector<2x128xf32>
    %145 = arith.addf %140, %144 : vector<2x128xf32>
    %146 = vector.extract_strided_slice %131 {offsets = [0, 3], sizes = [2, 1], strides = [1, 1]} : vector<2x5xf32> to vector<2x1xf32>
    %147 = vector.extract_strided_slice %7 {offsets = [0, 384], sizes = [2, 128], strides = [1, 1]} : vector<2x640xf32> to vector<2x128xf32>
    %148 = vector.broadcast %146 : vector<2x1xf32> to vector<2x128xf32>
    %149 = arith.mulf %148, %147 : vector<2x128xf32>
    %150 = arith.addf %145, %149 : vector<2x128xf32>
    %151 = vector.extract_strided_slice %131 {offsets = [0, 4], sizes = [2, 1], strides = [1, 1]} : vector<2x5xf32> to vector<2x1xf32>
    %152 = vector.extract_strided_slice %7 {offsets = [0, 512], sizes = [2, 128], strides = [1, 1]} : vector<2x640xf32> to vector<2x128xf32>
    %153 = vector.broadcast %151 : vector<2x1xf32> to vector<2x128xf32>
    %154 = arith.mulf %153, %152 : vector<2x128xf32>
    %155 = arith.addf %150, %154 : vector<2x128xf32>
    %156 = arith.truncf %155 : vector<2x128xf32> to vector<2x128xbf16>
    %c2 = arith.constant 2 : index
    %c0_45 = arith.constant 0 : index
    %c0_46 = arith.constant 0 : index
    %157 = vector.load %arg4[%c2, %c0_45, %c0_46] : memref<7x128x128xbf16, #tpu.memory_space<vmem>>, vector<1x128x128xbf16>
    %158 = vector.shape_cast %157 : vector<1x128x128xbf16> to vector<128x128xbf16>
    %cst_47 = arith.constant dense<0.000000e+00> : vector<2x128xf32>
    %159 = tpu.matmul %156, %158, %cst_47 {dimension_numbers = #tpu.dot_dimension_numbers<[1], [0], [0], [1], [0, 0, 1, 1], [], []>} : vector<2x128xbf16>, vector<128x128xbf16>, vector<2x128xf32> -> vector<2x128xf32>
    %c2_48 = arith.constant 2 : index
    %c0_49 = arith.constant 0 : index
    %c0_50 = arith.constant 0 : index
    %160 = vector.load %arg5[%c2_48, %c0_49, %c0_50] : memref<7x1x128xf32, #tpu.memory_space<vmem>>, vector<1x1x128xf32>
    %161 = vector.shape_cast %160 : vector<1x1x128xf32> to vector<1x128xf32>
    %162 = vector.broadcast %161 : vector<1x128xf32> to vector<2x128xf32>
    %163 = arith.addf %159, %162 : vector<2x128xf32>
    %cst_51 = arith.constant 0.000000e+00 : f32
    %164 = vector.broadcast %cst_51 : f32 to vector<2x128xf32>
    %165 = arith.maximumf %163, %164 : vector<2x128xf32>
    %166 = arith.truncf %165 : vector<2x128xf32> to vector<2x128xbf16>
    %c2_52 = arith.constant 2 : index
    %c0_53 = arith.constant 0 : index
    %c0_54 = arith.constant 0 : index
    %167 = vector.load %arg6[%c2_52, %c0_53, %c0_54] : memref<7x128x128xbf16, #tpu.memory_space<vmem>>, vector<1x128x128xbf16>
    %168 = vector.shape_cast %167 : vector<1x128x128xbf16> to vector<128x128xbf16>
    %cst_55 = arith.constant dense<0.000000e+00> : vector<2x128xf32>
    %169 = tpu.matmul %166, %168, %cst_55 {dimension_numbers = #tpu.dot_dimension_numbers<[1], [0], [0], [1], [0, 0, 1, 1], [], []>} : vector<2x128xbf16>, vector<128x128xbf16>, vector<2x128xf32> -> vector<2x128xf32>
    %c2_56 = arith.constant 2 : index
    %c0_57 = arith.constant 0 : index
    %c0_58 = arith.constant 0 : index
    %170 = vector.load %arg7[%c2_56, %c0_57, %c0_58] : memref<7x1x128xf32, #tpu.memory_space<vmem>>, vector<1x1x128xf32>
    %171 = vector.shape_cast %170 : vector<1x1x128xf32> to vector<1x128xf32>
    %172 = vector.broadcast %171 : vector<1x128xf32> to vector<2x128xf32>
    %173 = arith.addf %169, %172 : vector<2x128xf32>
    %cst_59 = arith.constant 0.000000e+00 : f32
    %174 = vector.broadcast %cst_59 : f32 to vector<2x128xf32>
    %175 = arith.maximumf %173, %174 : vector<2x128xf32>
    %c0_60 = arith.constant 0 : index
    %c256 = arith.constant 256 : index
    %176 = vector.load %arg8[%c0_60, %c256] : memref<2x896xf32, #tpu.memory_space<vmem>>, vector<2x128xf32>
    tpu.vector_store %arg8[%c0_60, %c256], %175 {strides = array<i32>} : memref<2x896xf32, #tpu.memory_space<vmem>>, vector<2x128xf32>,
    %177 = vector.extract_strided_slice %8 {offsets = [0, 15], sizes = [2, 5], strides = [1, 1]} : vector<2x128xf32> to vector<2x5xf32>
    %cst_61 = arith.constant dense<0xFF800000> : vector<2xf32>
    %178 = vector.multi_reduction <maximumf>, %177, %cst_61 [1] : vector<2x5xf32> to vector<2xf32>
    %179 = vector.shape_cast %178 : vector<2xf32> to vector<2x1xf32>
    %180 = vector.broadcast %179 : vector<2x1xf32> to vector<2x5xf32>
    %181 = arith.subf %177, %180 : vector<2x5xf32>
    %182 = math.exp %181 : vector<2x5xf32>
    %cst_62 = arith.constant dense<0.000000e+00> : vector<2xf32>
    %183 = vector.multi_reduction <add>, %182, %cst_62 [1] : vector<2x5xf32> to vector<2xf32>
    %184 = vector.shape_cast %183 : vector<2xf32> to vector<2x1xf32>
    %185 = tpu.reciprocal %184 {approx = true} : vector<2x1xf32> -> vector<2x1xf32>
    %186 = vector.broadcast %185 : vector<2x1xf32> to vector<2x5xf32>
    %187 = arith.mulf %182, %186 : vector<2x5xf32>
    %188 = vector.extract_strided_slice %187 {offsets = [0, 0], sizes = [2, 1], strides = [1, 1]} : vector<2x5xf32> to vector<2x1xf32>
    %189 = vector.extract_strided_slice %7 {offsets = [0, 0], sizes = [2, 128], strides = [1, 1]} : vector<2x640xf32> to vector<2x128xf32>
    %190 = vector.broadcast %188 : vector<2x1xf32> to vector<2x128xf32>
    %191 = arith.mulf %190, %189 : vector<2x128xf32>
    %192 = vector.extract_strided_slice %187 {offsets = [0, 1], sizes = [2, 1], strides = [1, 1]} : vector<2x5xf32> to vector<2x1xf32>
    %193 = vector.extract_strided_slice %7 {offsets = [0, 128], sizes = [2, 128], strides = [1, 1]} : vector<2x640xf32> to vector<2x128xf32>
    %194 = vector.broadcast %192 : vector<2x1xf32> to vector<2x128xf32>
    %195 = arith.mulf %194, %193 : vector<2x128xf32>
    %196 = arith.addf %191, %195 : vector<2x128xf32>
    %197 = vector.extract_strided_slice %187 {offsets = [0, 2], sizes = [2, 1], strides = [1, 1]} : vector<2x5xf32> to vector<2x1xf32>
    %198 = vector.extract_strided_slice %7 {offsets = [0, 256], sizes = [2, 128], strides = [1, 1]} : vector<2x640xf32> to vector<2x128xf32>
    %199 = vector.broadcast %197 : vector<2x1xf32> to vector<2x128xf32>
    %200 = arith.mulf %199, %198 : vector<2x128xf32>
    %201 = arith.addf %196, %200 : vector<2x128xf32>
    %202 = vector.extract_strided_slice %187 {offsets = [0, 3], sizes = [2, 1], strides = [1, 1]} : vector<2x5xf32> to vector<2x1xf32>
    %203 = vector.extract_strided_slice %7 {offsets = [0, 384], sizes = [2, 128], strides = [1, 1]} : vector<2x640xf32> to vector<2x128xf32>
    %204 = vector.broadcast %202 : vector<2x1xf32> to vector<2x128xf32>
    %205 = arith.mulf %204, %203 : vector<2x128xf32>
    %206 = arith.addf %201, %205 : vector<2x128xf32>
    %207 = vector.extract_strided_slice %187 {offsets = [0, 4], sizes = [2, 1], strides = [1, 1]} : vector<2x5xf32> to vector<2x1xf32>
    %208 = vector.extract_strided_slice %7 {offsets = [0, 512], sizes = [2, 128], strides = [1, 1]} : vector<2x640xf32> to vector<2x128xf32>
    %209 = vector.broadcast %207 : vector<2x1xf32> to vector<2x128xf32>
    %210 = arith.mulf %209, %208 : vector<2x128xf32>
    %211 = arith.addf %206, %210 : vector<2x128xf32>
    %212 = arith.truncf %211 : vector<2x128xf32> to vector<2x128xbf16>
    %c3 = arith.constant 3 : index
    %c0_63 = arith.constant 0 : index
    %c0_64 = arith.constant 0 : index
    %213 = vector.load %arg4[%c3, %c0_63, %c0_64] : memref<7x128x128xbf16, #tpu.memory_space<vmem>>, vector<1x128x128xbf16>
    %214 = vector.shape_cast %213 : vector<1x128x128xbf16> to vector<128x128xbf16>
    %cst_65 = arith.constant dense<0.000000e+00> : vector<2x128xf32>
    %215 = tpu.matmul %212, %214, %cst_65 {dimension_numbers = #tpu.dot_dimension_numbers<[1], [0], [0], [1], [0, 0, 1, 1], [], []>} : vector<2x128xbf16>, vector<128x128xbf16>, vector<2x128xf32> -> vector<2x128xf32>
    %c3_66 = arith.constant 3 : index
    %c0_67 = arith.constant 0 : index
    %c0_68 = arith.constant 0 : index
    %216 = vector.load %arg5[%c3_66, %c0_67, %c0_68] : memref<7x1x128xf32, #tpu.memory_space<vmem>>, vector<1x1x128xf32>
    %217 = vector.shape_cast %216 : vector<1x1x128xf32> to vector<1x128xf32>
    %218 = vector.broadcast %217 : vector<1x128xf32> to vector<2x128xf32>
    %219 = arith.addf %215, %218 : vector<2x128xf32>
    %cst_69 = arith.constant 0.000000e+00 : f32
    %220 = vector.broadcast %cst_69 : f32 to vector<2x128xf32>
    %221 = arith.maximumf %219, %220 : vector<2x128xf32>
    %222 = arith.truncf %221 : vector<2x128xf32> to vector<2x128xbf16>
    %c3_70 = arith.constant 3 : index
    %c0_71 = arith.constant 0 : index
    %c0_72 = arith.constant 0 : index
    %223 = vector.load %arg6[%c3_70, %c0_71, %c0_72] : memref<7x128x128xbf16, #tpu.memory_space<vmem>>, vector<1x128x128xbf16>
    %224 = vector.shape_cast %223 : vector<1x128x128xbf16> to vector<128x128xbf16>
    %cst_73 = arith.constant dense<0.000000e+00> : vector<2x128xf32>
    %225 = tpu.matmul %222, %224, %cst_73 {dimension_numbers = #tpu.dot_dimension_numbers<[1], [0], [0], [1], [0, 0, 1, 1], [], []>} : vector<2x128xbf16>, vector<128x128xbf16>, vector<2x128xf32> -> vector<2x128xf32>
    %c3_74 = arith.constant 3 : index
    %c0_75 = arith.constant 0 : index
    %c0_76 = arith.constant 0 : index
    %226 = vector.load %arg7[%c3_74, %c0_75, %c0_76] : memref<7x1x128xf32, #tpu.memory_space<vmem>>, vector<1x1x128xf32>
    %227 = vector.shape_cast %226 : vector<1x1x128xf32> to vector<1x128xf32>
    %228 = vector.broadcast %227 : vector<1x128xf32> to vector<2x128xf32>
    %229 = arith.addf %225, %228 : vector<2x128xf32>
    %cst_77 = arith.constant 0.000000e+00 : f32
    %230 = vector.broadcast %cst_77 : f32 to vector<2x128xf32>
    %231 = arith.maximumf %229, %230 : vector<2x128xf32>
    %c0_78 = arith.constant 0 : index
    %c384 = arith.constant 384 : index
    %232 = vector.load %arg8[%c0_78, %c384] : memref<2x896xf32, #tpu.memory_space<vmem>>, vector<2x128xf32>
    tpu.vector_store %arg8[%c0_78, %c384], %231 {strides = array<i32>} : memref<2x896xf32, #tpu.memory_space<vmem>>, vector<2x128xf32>,
    %233 = vector.extract_strided_slice %8 {offsets = [0, 20], sizes = [2, 5], strides = [1, 1]} : vector<2x128xf32> to vector<2x5xf32>
    %cst_79 = arith.constant dense<0xFF800000> : vector<2xf32>
    %234 = vector.multi_reduction <maximumf>, %233, %cst_79 [1] : vector<2x5xf32> to vector<2xf32>
    %235 = vector.shape_cast %234 : vector<2xf32> to vector<2x1xf32>
    %236 = vector.broadcast %235 : vector<2x1xf32> to vector<2x5xf32>
    %237 = arith.subf %233, %236 : vector<2x5xf32>
    %238 = math.exp %237 : vector<2x5xf32>
    %cst_80 = arith.constant dense<0.000000e+00> : vector<2xf32>
    %239 = vector.multi_reduction <add>, %238, %cst_80 [1] : vector<2x5xf32> to vector<2xf32>
    %240 = vector.shape_cast %239 : vector<2xf32> to vector<2x1xf32>
    %241 = tpu.reciprocal %240 {approx = true} : vector<2x1xf32> -> vector<2x1xf32>
    %242 = vector.broadcast %241 : vector<2x1xf32> to vector<2x5xf32>
    %243 = arith.mulf %238, %242 : vector<2x5xf32>
    %244 = vector.extract_strided_slice %243 {offsets = [0, 0], sizes = [2, 1], strides = [1, 1]} : vector<2x5xf32> to vector<2x1xf32>
    %245 = vector.extract_strided_slice %7 {offsets = [0, 0], sizes = [2, 128], strides = [1, 1]} : vector<2x640xf32> to vector<2x128xf32>
    %246 = vector.broadcast %244 : vector<2x1xf32> to vector<2x128xf32>
    %247 = arith.mulf %246, %245 : vector<2x128xf32>
    %248 = vector.extract_strided_slice %243 {offsets = [0, 1], sizes = [2, 1], strides = [1, 1]} : vector<2x5xf32> to vector<2x1xf32>
    %249 = vector.extract_strided_slice %7 {offsets = [0, 128], sizes = [2, 128], strides = [1, 1]} : vector<2x640xf32> to vector<2x128xf32>
    %250 = vector.broadcast %248 : vector<2x1xf32> to vector<2x128xf32>
    %251 = arith.mulf %250, %249 : vector<2x128xf32>
    %252 = arith.addf %247, %251 : vector<2x128xf32>
    %253 = vector.extract_strided_slice %243 {offsets = [0, 2], sizes = [2, 1], strides = [1, 1]} : vector<2x5xf32> to vector<2x1xf32>
    %254 = vector.extract_strided_slice %7 {offsets = [0, 256], sizes = [2, 128], strides = [1, 1]} : vector<2x640xf32> to vector<2x128xf32>
    %255 = vector.broadcast %253 : vector<2x1xf32> to vector<2x128xf32>
    %256 = arith.mulf %255, %254 : vector<2x128xf32>
    %257 = arith.addf %252, %256 : vector<2x128xf32>
    %258 = vector.extract_strided_slice %243 {offsets = [0, 3], sizes = [2, 1], strides = [1, 1]} : vector<2x5xf32> to vector<2x1xf32>
    %259 = vector.extract_strided_slice %7 {offsets = [0, 384], sizes = [2, 128], strides = [1, 1]} : vector<2x640xf32> to vector<2x128xf32>
    %260 = vector.broadcast %258 : vector<2x1xf32> to vector<2x128xf32>
    %261 = arith.mulf %260, %259 : vector<2x128xf32>
    %262 = arith.addf %257, %261 : vector<2x128xf32>
    %263 = vector.extract_strided_slice %243 {offsets = [0, 4], sizes = [2, 1], strides = [1, 1]} : vector<2x5xf32> to vector<2x1xf32>
    %264 = vector.extract_strided_slice %7 {offsets = [0, 512], sizes = [2, 128], strides = [1, 1]} : vector<2x640xf32> to vector<2x128xf32>
    %265 = vector.broadcast %263 : vector<2x1xf32> to vector<2x128xf32>
    %266 = arith.mulf %265, %264 : vector<2x128xf32>
    %267 = arith.addf %262, %266 : vector<2x128xf32>
    %268 = arith.truncf %267 : vector<2x128xf32> to vector<2x128xbf16>
    %c4 = arith.constant 4 : index
    %c0_81 = arith.constant 0 : index
    %c0_82 = arith.constant 0 : index
    %269 = vector.load %arg4[%c4, %c0_81, %c0_82] : memref<7x128x128xbf16, #tpu.memory_space<vmem>>, vector<1x128x128xbf16>
    %270 = vector.shape_cast %269 : vector<1x128x128xbf16> to vector<128x128xbf16>
    %cst_83 = arith.constant dense<0.000000e+00> : vector<2x128xf32>
    %271 = tpu.matmul %268, %270, %cst_83 {dimension_numbers = #tpu.dot_dimension_numbers<[1], [0], [0], [1], [0, 0, 1, 1], [], []>} : vector<2x128xbf16>, vector<128x128xbf16>, vector<2x128xf32> -> vector<2x128xf32>
    %c4_84 = arith.constant 4 : index
    %c0_85 = arith.constant 0 : index
    %c0_86 = arith.constant 0 : index
    %272 = vector.load %arg5[%c4_84, %c0_85, %c0_86] : memref<7x1x128xf32, #tpu.memory_space<vmem>>, vector<1x1x128xf32>
    %273 = vector.shape_cast %272 : vector<1x1x128xf32> to vector<1x128xf32>
    %274 = vector.broadcast %273 : vector<1x128xf32> to vector<2x128xf32>
    %275 = arith.addf %271, %274 : vector<2x128xf32>
    %cst_87 = arith.constant 0.000000e+00 : f32
    %276 = vector.broadcast %cst_87 : f32 to vector<2x128xf32>
    %277 = arith.maximumf %275, %276 : vector<2x128xf32>
    %278 = arith.truncf %277 : vector<2x128xf32> to vector<2x128xbf16>
    %c4_88 = arith.constant 4 : index
    %c0_89 = arith.constant 0 : index
    %c0_90 = arith.constant 0 : index
    %279 = vector.load %arg6[%c4_88, %c0_89, %c0_90] : memref<7x128x128xbf16, #tpu.memory_space<vmem>>, vector<1x128x128xbf16>
    %280 = vector.shape_cast %279 : vector<1x128x128xbf16> to vector<128x128xbf16>
    %cst_91 = arith.constant dense<0.000000e+00> : vector<2x128xf32>
    %281 = tpu.matmul %278, %280, %cst_91 {dimension_numbers = #tpu.dot_dimension_numbers<[1], [0], [0], [1], [0, 0, 1, 1], [], []>} : vector<2x128xbf16>, vector<128x128xbf16>, vector<2x128xf32> -> vector<2x128xf32>
    %c4_92 = arith.constant 4 : index
    %c0_93 = arith.constant 0 : index
    %c0_94 = arith.constant 0 : index
    %282 = vector.load %arg7[%c4_92, %c0_93, %c0_94] : memref<7x1x128xf32, #tpu.memory_space<vmem>>, vector<1x1x128xf32>
    %283 = vector.shape_cast %282 : vector<1x1x128xf32> to vector<1x128xf32>
    %284 = vector.broadcast %283 : vector<1x128xf32> to vector<2x128xf32>
    %285 = arith.addf %281, %284 : vector<2x128xf32>
    %cst_95 = arith.constant 0.000000e+00 : f32
    %286 = vector.broadcast %cst_95 : f32 to vector<2x128xf32>
    %287 = arith.maximumf %285, %286 : vector<2x128xf32>
    %c0_96 = arith.constant 0 : index
    %c512 = arith.constant 512 : index
    %288 = vector.load %arg8[%c0_96, %c512] : memref<2x896xf32, #tpu.memory_space<vmem>>, vector<2x128xf32>
    tpu.vector_store %arg8[%c0_96, %c512], %287 {strides = array<i32>} : memref<2x896xf32, #tpu.memory_space<vmem>>, vector<2x128xf32>,
    %289 = vector.extract_strided_slice %8 {offsets = [0, 25], sizes = [2, 5], strides = [1, 1]} : vector<2x128xf32> to vector<2x5xf32>
    %cst_97 = arith.constant dense<0xFF800000> : vector<2xf32>
    %290 = vector.multi_reduction <maximumf>, %289, %cst_97 [1] : vector<2x5xf32> to vector<2xf32>
    %291 = vector.shape_cast %290 : vector<2xf32> to vector<2x1xf32>
    %292 = vector.broadcast %291 : vector<2x1xf32> to vector<2x5xf32>
    %293 = arith.subf %289, %292 : vector<2x5xf32>
    %294 = math.exp %293 : vector<2x5xf32>
    %cst_98 = arith.constant dense<0.000000e+00> : vector<2xf32>
    %295 = vector.multi_reduction <add>, %294, %cst_98 [1] : vector<2x5xf32> to vector<2xf32>
    %296 = vector.shape_cast %295 : vector<2xf32> to vector<2x1xf32>
    %297 = tpu.reciprocal %296 {approx = true} : vector<2x1xf32> -> vector<2x1xf32>
    %298 = vector.broadcast %297 : vector<2x1xf32> to vector<2x5xf32>
    %299 = arith.mulf %294, %298 : vector<2x5xf32>
    %300 = vector.extract_strided_slice %299 {offsets = [0, 0], sizes = [2, 1], strides = [1, 1]} : vector<2x5xf32> to vector<2x1xf32>
    %301 = vector.extract_strided_slice %7 {offsets = [0, 0], sizes = [2, 128], strides = [1, 1]} : vector<2x640xf32> to vector<2x128xf32>
    %302 = vector.broadcast %300 : vector<2x1xf32> to vector<2x128xf32>
    %303 = arith.mulf %302, %301 : vector<2x128xf32>
    %304 = vector.extract_strided_slice %299 {offsets = [0, 1], sizes = [2, 1], strides = [1, 1]} : vector<2x5xf32> to vector<2x1xf32>
    %305 = vector.extract_strided_slice %7 {offsets = [0, 128], sizes = [2, 128], strides = [1, 1]} : vector<2x640xf32> to vector<2x128xf32>
    %306 = vector.broadcast %304 : vector<2x1xf32> to vector<2x128xf32>
    %307 = arith.mulf %306, %305 : vector<2x128xf32>
    %308 = arith.addf %303, %307 : vector<2x128xf32>
    %309 = vector.extract_strided_slice %299 {offsets = [0, 2], sizes = [2, 1], strides = [1, 1]} : vector<2x5xf32> to vector<2x1xf32>
    %310 = vector.extract_strided_slice %7 {offsets = [0, 256], sizes = [2, 128], strides = [1, 1]} : vector<2x640xf32> to vector<2x128xf32>
    %311 = vector.broadcast %309 : vector<2x1xf32> to vector<2x128xf32>
    %312 = arith.mulf %311, %310 : vector<2x128xf32>
    %313 = arith.addf %308, %312 : vector<2x128xf32>
    %314 = vector.extract_strided_slice %299 {offsets = [0, 3], sizes = [2, 1], strides = [1, 1]} : vector<2x5xf32> to vector<2x1xf32>
    %315 = vector.extract_strided_slice %7 {offsets = [0, 384], sizes = [2, 128], strides = [1, 1]} : vector<2x640xf32> to vector<2x128xf32>
    %316 = vector.broadcast %314 : vector<2x1xf32> to vector<2x128xf32>
    %317 = arith.mulf %316, %315 : vector<2x128xf32>
    %318 = arith.addf %313, %317 : vector<2x128xf32>
    %319 = vector.extract_strided_slice %299 {offsets = [0, 4], sizes = [2, 1], strides = [1, 1]} : vector<2x5xf32> to vector<2x1xf32>
    %320 = vector.extract_strided_slice %7 {offsets = [0, 512], sizes = [2, 128], strides = [1, 1]} : vector<2x640xf32> to vector<2x128xf32>
    %321 = vector.broadcast %319 : vector<2x1xf32> to vector<2x128xf32>
    %322 = arith.mulf %321, %320 : vector<2x128xf32>
    %323 = arith.addf %318, %322 : vector<2x128xf32>
    %324 = arith.truncf %323 : vector<2x128xf32> to vector<2x128xbf16>
    %c5 = arith.constant 5 : index
    %c0_99 = arith.constant 0 : index
    %c0_100 = arith.constant 0 : index
    %325 = vector.load %arg4[%c5, %c0_99, %c0_100] : memref<7x128x128xbf16, #tpu.memory_space<vmem>>, vector<1x128x128xbf16>
    %326 = vector.shape_cast %325 : vector<1x128x128xbf16> to vector<128x128xbf16>
    %cst_101 = arith.constant dense<0.000000e+00> : vector<2x128xf32>
    %327 = tpu.matmul %324, %326, %cst_101 {dimension_numbers = #tpu.dot_dimension_numbers<[1], [0], [0], [1], [0, 0, 1, 1], [], []>} : vector<2x128xbf16>, vector<128x128xbf16>, vector<2x128xf32> -> vector<2x128xf32>
    %c5_102 = arith.constant 5 : index
    %c0_103 = arith.constant 0 : index
    %c0_104 = arith.constant 0 : index
    %328 = vector.load %arg5[%c5_102, %c0_103, %c0_104] : memref<7x1x128xf32, #tpu.memory_space<vmem>>, vector<1x1x128xf32>
    %329 = vector.shape_cast %328 : vector<1x1x128xf32> to vector<1x128xf32>
    %330 = vector.broadcast %329 : vector<1x128xf32> to vector<2x128xf32>
    %331 = arith.addf %327, %330 : vector<2x128xf32>
    %cst_105 = arith.constant 0.000000e+00 : f32
    %332 = vector.broadcast %cst_105 : f32 to vector<2x128xf32>
    %333 = arith.maximumf %331, %332 : vector<2x128xf32>
    %334 = arith.truncf %333 : vector<2x128xf32> to vector<2x128xbf16>
    %c5_106 = arith.constant 5 : index
    %c0_107 = arith.constant 0 : index
    %c0_108 = arith.constant 0 : index
    %335 = vector.load %arg6[%c5_106, %c0_107, %c0_108] : memref<7x128x128xbf16, #tpu.memory_space<vmem>>, vector<1x128x128xbf16>
    %336 = vector.shape_cast %335 : vector<1x128x128xbf16> to vector<128x128xbf16>
    %cst_109 = arith.constant dense<0.000000e+00> : vector<2x128xf32>
    %337 = tpu.matmul %334, %336, %cst_109 {dimension_numbers = #tpu.dot_dimension_numbers<[1], [0], [0], [1], [0, 0, 1, 1], [], []>} : vector<2x128xbf16>, vector<128x128xbf16>, vector<2x128xf32> -> vector<2x128xf32>
    %c5_110 = arith.constant 5 : index
    %c0_111 = arith.constant 0 : index
    %c0_112 = arith.constant 0 : index
    %338 = vector.load %arg7[%c5_110, %c0_111, %c0_112] : memref<7x1x128xf32, #tpu.memory_space<vmem>>, vector<1x1x128xf32>
    %339 = vector.shape_cast %338 : vector<1x1x128xf32> to vector<1x128xf32>
    %340 = vector.broadcast %339 : vector<1x128xf32> to vector<2x128xf32>
    %341 = arith.addf %337, %340 : vector<2x128xf32>
    %cst_113 = arith.constant 0.000000e+00 : f32
    %342 = vector.broadcast %cst_113 : f32 to vector<2x128xf32>
    %343 = arith.maximumf %341, %342 : vector<2x128xf32>
    %c0_114 = arith.constant 0 : index
    %c640 = arith.constant 640 : index
    %344 = vector.load %arg8[%c0_114, %c640] : memref<2x896xf32, #tpu.memory_space<vmem>>, vector<2x128xf32>
    tpu.vector_store %arg8[%c0_114, %c640], %343 {strides = array<i32>} : memref<2x896xf32, #tpu.memory_space<vmem>>, vector<2x128xf32>,
    %345 = vector.extract_strided_slice %8 {offsets = [0, 30], sizes = [2, 5], strides = [1, 1]} : vector<2x128xf32> to vector<2x5xf32>
    %cst_115 = arith.constant dense<0xFF800000> : vector<2xf32>
    %346 = vector.multi_reduction <maximumf>, %345, %cst_115 [1] : vector<2x5xf32> to vector<2xf32>
    %347 = vector.shape_cast %346 : vector<2xf32> to vector<2x1xf32>
    %348 = vector.broadcast %347 : vector<2x1xf32> to vector<2x5xf32>
    %349 = arith.subf %345, %348 : vector<2x5xf32>
    %350 = math.exp %349 : vector<2x5xf32>
    %cst_116 = arith.constant dense<0.000000e+00> : vector<2xf32>
    %351 = vector.multi_reduction <add>, %350, %cst_116 [1] : vector<2x5xf32> to vector<2xf32>
    %352 = vector.shape_cast %351 : vector<2xf32> to vector<2x1xf32>
    %353 = tpu.reciprocal %352 {approx = true} : vector<2x1xf32> -> vector<2x1xf32>
    %354 = vector.broadcast %353 : vector<2x1xf32> to vector<2x5xf32>
    %355 = arith.mulf %350, %354 : vector<2x5xf32>
    %356 = vector.extract_strided_slice %355 {offsets = [0, 0], sizes = [2, 1], strides = [1, 1]} : vector<2x5xf32> to vector<2x1xf32>
    %357 = vector.extract_strided_slice %7 {offsets = [0, 0], sizes = [2, 128], strides = [1, 1]} : vector<2x640xf32> to vector<2x128xf32>
    %358 = vector.broadcast %356 : vector<2x1xf32> to vector<2x128xf32>
    %359 = arith.mulf %358, %357 : vector<2x128xf32>
    %360 = vector.extract_strided_slice %355 {offsets = [0, 1], sizes = [2, 1], strides = [1, 1]} : vector<2x5xf32> to vector<2x1xf32>
    %361 = vector.extract_strided_slice %7 {offsets = [0, 128], sizes = [2, 128], strides = [1, 1]} : vector<2x640xf32> to vector<2x128xf32>
    %362 = vector.broadcast %360 : vector<2x1xf32> to vector<2x128xf32>
    %363 = arith.mulf %362, %361 : vector<2x128xf32>
    %364 = arith.addf %359, %363 : vector<2x128xf32>
    %365 = vector.extract_strided_slice %355 {offsets = [0, 2], sizes = [2, 1], strides = [1, 1]} : vector<2x5xf32> to vector<2x1xf32>
    %366 = vector.extract_strided_slice %7 {offsets = [0, 256], sizes = [2, 128], strides = [1, 1]} : vector<2x640xf32> to vector<2x128xf32>
    %367 = vector.broadcast %365 : vector<2x1xf32> to vector<2x128xf32>
    %368 = arith.mulf %367, %366 : vector<2x128xf32>
    %369 = arith.addf %364, %368 : vector<2x128xf32>
    %370 = vector.extract_strided_slice %355 {offsets = [0, 3], sizes = [2, 1], strides = [1, 1]} : vector<2x5xf32> to vector<2x1xf32>
    %371 = vector.extract_strided_slice %7 {offsets = [0, 384], sizes = [2, 128], strides = [1, 1]} : vector<2x640xf32> to vector<2x128xf32>
    %372 = vector.broadcast %370 : vector<2x1xf32> to vector<2x128xf32>
    %373 = arith.mulf %372, %371 : vector<2x128xf32>
    %374 = arith.addf %369, %373 : vector<2x128xf32>
    %375 = vector.extract_strided_slice %355 {offsets = [0, 4], sizes = [2, 1], strides = [1, 1]} : vector<2x5xf32> to vector<2x1xf32>
    %376 = vector.extract_strided_slice %7 {offsets = [0, 512], sizes = [2, 128], strides = [1, 1]} : vector<2x640xf32> to vector<2x128xf32>
    %377 = vector.broadcast %375 : vector<2x1xf32> to vector<2x128xf32>
    %378 = arith.mulf %377, %376 : vector<2x128xf32>
    %379 = arith.addf %374, %378 : vector<2x128xf32>
    %380 = arith.truncf %379 : vector<2x128xf32> to vector<2x128xbf16>
    %c6 = arith.constant 6 : index
    %c0_117 = arith.constant 0 : index
    %c0_118 = arith.constant 0 : index
    %381 = vector.load %arg4[%c6, %c0_117, %c0_118] : memref<7x128x128xbf16, #tpu.memory_space<vmem>>, vector<1x128x128xbf16>
    %382 = vector.shape_cast %381 : vector<1x128x128xbf16> to vector<128x128xbf16>
    %cst_119 = arith.constant dense<0.000000e+00> : vector<2x128xf32>
    %383 = tpu.matmul %380, %382, %cst_119 {dimension_numbers = #tpu.dot_dimension_numbers<[1], [0], [0], [1], [0, 0, 1, 1], [], []>} : vector<2x128xbf16>, vector<128x128xbf16>, vector<2x128xf32> -> vector<2x128xf32>
    %c6_120 = arith.constant 6 : index
    %c0_121 = arith.constant 0 : index
    %c0_122 = arith.constant 0 : index
    %384 = vector.load %arg5[%c6_120, %c0_121, %c0_122] : memref<7x1x128xf32, #tpu.memory_space<vmem>>, vector<1x1x128xf32>
    %385 = vector.shape_cast %384 : vector<1x1x128xf32> to vector<1x128xf32>
    %386 = vector.broadcast %385 : vector<1x128xf32> to vector<2x128xf32>
    %387 = arith.addf %383, %386 : vector<2x128xf32>
    %cst_123 = arith.constant 0.000000e+00 : f32
    %388 = vector.broadcast %cst_123 : f32 to vector<2x128xf32>
    %389 = arith.maximumf %387, %388 : vector<2x128xf32>
    %390 = arith.truncf %389 : vector<2x128xf32> to vector<2x128xbf16>
    %c6_124 = arith.constant 6 : index
    %c0_125 = arith.constant 0 : index
    %c0_126 = arith.constant 0 : index
    %391 = vector.load %arg6[%c6_124, %c0_125, %c0_126] : memref<7x128x128xbf16, #tpu.memory_space<vmem>>, vector<1x128x128xbf16>
    %392 = vector.shape_cast %391 : vector<1x128x128xbf16> to vector<128x128xbf16>
    %cst_127 = arith.constant dense<0.000000e+00> : vector<2x128xf32>
    %393 = tpu.matmul %390, %392, %cst_127 {dimension_numbers = #tpu.dot_dimension_numbers<[1], [0], [0], [1], [0, 0, 1, 1], [], []>} : vector<2x128xbf16>, vector<128x128xbf16>, vector<2x128xf32> -> vector<2x128xf32>
    %c6_128 = arith.constant 6 : index
    %c0_129 = arith.constant 0 : index
    %c0_130 = arith.constant 0 : index
    %394 = vector.load %arg7[%c6_128, %c0_129, %c0_130] : memref<7x1x128xf32, #tpu.memory_space<vmem>>, vector<1x1x128xf32>
    %395 = vector.shape_cast %394 : vector<1x1x128xf32> to vector<1x128xf32>
    %396 = vector.broadcast %395 : vector<1x128xf32> to vector<2x128xf32>
    %397 = arith.addf %393, %396 : vector<2x128xf32>
    %cst_131 = arith.constant 0.000000e+00 : f32
    %398 = vector.broadcast %cst_131 : f32 to vector<2x128xf32>
    %399 = arith.maximumf %397, %398 : vector<2x128xf32>
    %c0_132 = arith.constant 0 : index
    %c768 = arith.constant 768 : index
    %400 = vector.load %arg8[%c0_132, %c768] : memref<2x896xf32, #tpu.memory_space<vmem>>, vector<2x128xf32>
    tpu.vector_store %arg8[%c0_132, %c768], %399 {strides = array<i32>} : memref<2x896xf32, #tpu.memory_space<vmem>>, vector<2x128xf32>,
    return
  }
  func.func @transform_0(%arg0: i32) -> (i32, i32) {
    %c0_i32 = arith.constant 0 : i32
    %c0_i32_0 = arith.constant 0 : i32
    %c0_i32_1 = arith.constant 0 : i32
    return %c0_i32, %c0_i32_0 : i32, i32
  }
  func.func @transform_1(%arg0: i32) -> (i32, i32) {
    %c0_i32 = arith.constant 0 : i32
    %c0_i32_0 = arith.constant 0 : i32
    %c0_i32_1 = arith.constant 0 : i32
    return %c0_i32, %c0_i32_0 : i32, i32
  }
  func.func @transform_2(%arg0: i32) -> (i32, i32) {
    %c0_i32 = arith.constant 0 : i32
    %c0_i32_0 = arith.constant 0 : i32
    %c0_i32_1 = arith.constant 0 : i32
    return %c0_i32, %c0_i32_0 : i32, i32
  }
  func.func @transform_3(%arg0: i32) -> (i32, i32, i32) {
    %c0_i32 = arith.constant 0 : i32
    %c0_i32_0 = arith.constant 0 : i32
    %c0_i32_1 = arith.constant 0 : i32
    %c0_i32_2 = arith.constant 0 : i32
    return %c0_i32, %c0_i32_0, %c0_i32_1 : i32, i32, i32
  }
  func.func @transform_4(%arg0: i32) -> (i32, i32, i32) {
    %c0_i32 = arith.constant 0 : i32
    %c0_i32_0 = arith.constant 0 : i32
    %c0_i32_1 = arith.constant 0 : i32
    %c0_i32_2 = arith.constant 0 : i32
    return %c0_i32, %c0_i32_0, %c0_i32_1 : i32, i32, i32
  }
  func.func @transform_5(%arg0: i32) -> (i32, i32, i32) {
    %c0_i32 = arith.constant 0 : i32
    %c0_i32_0 = arith.constant 0 : i32
    %c0_i32_1 = arith.constant 0 : i32
    %c0_i32_2 = arith.constant 0 : i32
    return %c0_i32, %c0_i32_0, %c0_i32_1 : i32, i32, i32
  }
  func.func @transform_6(%arg0: i32) -> (i32, i32, i32) {
    %c0_i32 = arith.constant 0 : i32
    %c0_i32_0 = arith.constant 0 : i32
    %c0_i32_1 = arith.constant 0 : i32
    %c0_i32_2 = arith.constant 0 : i32
    return %c0_i32, %c0_i32_0, %c0_i32_1 : i32, i32, i32
  }
  func.func @transform_7(%arg0: i32) -> (i32, i32) {
    %c0_i32 = arith.constant 0 : i32
    %c0_i32_0 = arith.constant 0 : i32
    %c0_i32_1 = arith.constant 0 : i32
    return %c0_i32, %c0_i32_0 : i32, i32
  }
}

</mosaic_0001>

<bundles_post_ra>
// kernel: tpu_custom_call.1
= control target key start
LH: loop header
LB: loop body
LE: loop exit
PB: predicated region body
PF: predicated region fallthrough
CT: control target
= control target key end

     0   :  { %12 = vsyncpa [#allocation3], 0  ;;  %s7332_s0 = inlined_call_operand.hbm [shape: f32[2,898], index: 0, kind: input, shape index: {}]   ;;  %s7333_s1 = inlined_call_operand.hbm [shape: bf16[898,768], index: 1, kind: input, shape index: {}]   ;;  %s7334_s2 = inlined_call_operand.hbm [shape: f32[1,768], index: 2, kind: input, shape index: {}]   ;;  %s7335_s3 = inlined_call_operand.hbm [shape: bf16[7,128,128], index: 3, kind: input, shape index: {}]   ;;  %s7336_s4 = inlined_call_operand.hbm [shape: f32[7,1,128], index: 4, kind: input, shape index: {}]   ;;  %s7337_s5 = inlined_call_operand.hbm [shape: bf16[7,128,128], index: 5, kind: input, shape index: {}]   ;;  %s7338_s6 = inlined_call_operand.hbm [shape: f32[7,1,128], index: 6, kind: input, shape index: {}]   ;;  %s7339_s7 = inlined_call_operand.hbm [shape: f32[2,896], index: 7, kind: output, shape index: {}]  }
   0x1   :  { %13 = vsyncpa [#allocation6], 0 }
   0x2   :  { %14 = vsyncpa [#allocation9], 0 }
   0x3   :  { %15 = vsyncpa [#allocation12], 0  ;;  %s32_s26 = sshll.u32 %s7333_s1, 4  ;;  %s33_s26 = int_to_ptr.hbm [resolvable:$true] %s32_s26 }
   0x4   :  { %16 = vsyncpa [#allocation4], 0  ;;  %s6972_s27 = smov [#allocation5]   ;;  %s56_s8 = sshll.u32 %s7335_s3, 4  ;;  %s57_s8 = int_to_ptr.hbm [resolvable:$true] %s56_s8 }
   0x5   :  { %s34_s28 = sshll.u32 %s6972_s27, 4  ;;  %s6973_s9 = smov 384   ;;  %s35_s28 = int_to_ptr.vmem [resolvable:$true] %s34_s28 }
   0x6   :  { %s6974_s10 = smov 24   ;;  %s6975_s11 = smov [#allocation8]  }
   0x7   :  { %40 = dma.hbm_to_vmem [thread:$0]  %s33_s26, 43392, %s35_s28, [#allocation6], %s6973_s9, %s6973_s9, %s6974_s10  }
   0x8   :  { %s58_s12 = sshll.u32 %s6975_s11, 4  ;;  %s6976_s13 = smov 64   ;;  %s59_s12 = int_to_ptr.vmem [resolvable:$true] %s58_s12 }
   0x9   :  { %s6977_s14 = smov 4   ;;  %s82_s16 = sshll.u32 %s7337_s5, 4  ;;  %s83_s16 = int_to_ptr.hbm [resolvable:$true] %s82_s16 }
   0xa   :  { %64 = dma.hbm_to_vmem [thread:$0]  %s57_s8, 7168, %s59_s12, [#allocation9], %s6976_s13, %s6976_s13, %s6977_s14  }
   0xb   :  { %s6978_s17 = smov [#allocation11]   ;;  %s22_s20 = sshll.u32 %s7332_s0, 4  ;;  %s23_s20 = int_to_ptr.hbm [resolvable:$true] %s22_s20 }
   0xc   :  { %s84_s18 = sshll.u32 %s6978_s17, 4  ;;  %s6979_s21 = smov [#allocation2]   ;;  %s85_s18 = int_to_ptr.vmem [resolvable:$true] %s84_s18 }
   0xd   :  { %90 = dma.hbm_to_vmem [thread:$0]  %s83_s16, 7168, %s85_s18, [#allocation12], %s6976_s13, %s6976_s13, %s6977_s14  }
   0xe   :  { %s24_s22 = sshll.u32 %s6979_s21, 4  ;;  %s46_s25 = sshll.u32 %s7334_s2, 4  ;;  %s25_s22 = int_to_ptr.vmem [resolvable:$true] %s24_s22  ;;  %s47_s25 = int_to_ptr.hbm [resolvable:$true] %s46_s25 }
   0xf   :  { %27 = dma.hbm_to_vmem [thread:$0]  %s23_s20, 256, %s25_s22, [#allocation3]  }
  0x10   :  { %s69_s27 = sshll.u32 %s7336_s4, 4  ;;  %s6980_s28 = smov [#allocation7]   ;;  %s70_s27 = int_to_ptr.hbm [resolvable:$true] %s69_s27 }
  0x11   :  { %s48_s29 = sshll.u32 %s6980_s28, 4  ;;  %s6981_s0 = smov [#allocation10]   ;;  %s49_s29 = int_to_ptr.vmem [resolvable:$true] %s48_s29 }
  0x12   :  { %51 = dma.hbm_to_vmem [thread:$0]  %s47_s25, 96, %s49_s29, [#allocation6]  }
  0x13   :  { %s71_s30 = sshll.u32 %s6981_s0, 4  ;;  %s6982_s8 = smov 16   ;;  %s72_s30 = int_to_ptr.vmem [resolvable:$true] %s71_s30 }
  0x14   :  { %s6983_s9 = smov 1   ;;  %s95_s11 = sshll.u32 %s7338_s6, 4  ;;  %s96_s11 = int_to_ptr.hbm [resolvable:$true] %s95_s11 }
  0x15   :  { %77 = dma.hbm_to_vmem [thread:$0]  %s70_s27, 112, %s72_s30, [#allocation9], %s6982_s8, %s6982_s8, %s6983_s9  }
  0x16   :  { %s6984_s12 = smov [#allocation13]  }
  0x17   :  { %s97_s13 = sshll.u32 %s6984_s12, 4  ;;  %s98_s13 = int_to_ptr.vmem [resolvable:$true] %s97_s13 }
  0x18   :  { %103 = dma.hbm_to_vmem [thread:$0]  %s96_s11, 112, %s98_s13, [#allocation12], %s6982_s8, %s6982_s8, %s6983_s9  }
  0x19   :  { %6962 = dma.done.wait [#allocation3], 256  }
  0x1a   :  { %6963 = vsyncadd [#allocation3], 4294967040 }
  0x1b   :  { %6964 = dma.done.wait [#allocation6], 43488  }
  0x1c   :  { %6965 = vsyncadd [#allocation6], 4294923808 }
  0x1d   :  { %6966 = dma.done.wait [#allocation9], 7280  }
  0x1e   :  { %6967 = vsyncadd [#allocation9], 4294960016 }
  0x1f   :  { %6968 = dma.done.wait [#allocation12], 7280  }
  0x20   :  { %6969 = vsyncadd [#allocation12], 4294960016  ;;  %v4560_v0 = vld [vmem:[#allocation5 + $0x150] sm:$0xf]  ;;  %v6233_v1 = vld [vmem:[#allocation5 + $0x164] sm:$0xf0] }
  0x21   :  { %v4752_v2 = vld [vmem:[#allocation5 + $0x2d0] sm:$0xf]  ;;  %v4561_v3 = vor.u32 %v6233_v1, %v4560_v0  ;;  %v6281_v4 = vld [vmem:[#allocation5 + $0x2e4] sm:$0xf0]  ;;  %v4536_v11 = vld [vmem:[#allocation5 + $0x120] sm:$0xf] }
  0x22   :  { %v4944_v5 = vld [vmem:[#allocation5 + $0x450] sm:$0xf]  ;;  %v6329_v6 = vld [vmem:[#allocation5 + $0x464] sm:$0xf0]  ;;  %v4753_v7 = vor.u32 %v6281_v4, %v4752_v2  ;;  %v6227_v13 = vld [vmem:[#allocation5 + $0x134] sm:$0xf0] }
  0x23   :  { %v4945_v8 = vor.u32 %v6329_v6, %v4944_v5  ;;  %v5136_v9 = vld [vmem:[#allocation5 + $0x5d0] sm:$0xf]  ;;  %v6377_v10 = vld [vmem:[#allocation5 + $0x5e4] sm:$0xf0]  ;;  %2235 = vmatpush.bf16.msra.mxu0 %v4561_v3  ;;  %v4728_v14 = vld [vmem:[#allocation5 + $0x2a0] sm:$0xf]  ;;  %v4537_v16 = vor.u32 %v6227_v13, %v4536_v11 }
  0x24   :  { %v5137_v12 = vor.u32 %v6377_v10, %v5136_v9  ;;  %v6275_v15 = vld [vmem:[#allocation5 + $0x2b4] sm:$0xf0]  ;;  %2248 = vmatpush.bf16.msra.mxu1 %v4753_v7  ;;  %v4920_v18 = vld [vmem:[#allocation5 + $0x420] sm:$0xf]  ;;  %v4512_v23 = vld [vmem:[#allocation5 + $0xf0] sm:$0xf] }
  0x25   :  { %2261 = vmatpush.bf16.msra.mxu2 %v4945_v8  ;;  %v4729_v17 = vor.u32 %v6275_v15, %v4728_v14  ;;  %v6323_v19 = vld [vmem:[#allocation5 + $0x434] sm:$0xf0]  ;;  %v5112_v20 = vld [vmem:[#allocation5 + $0x5a0] sm:$0xf]  ;;  %v6221_v24 = vld [vmem:[#allocation5 + $0x104] sm:$0xf0] }
  0x26   :  { %2274 = vmatpush.bf16.msra.mxu3 %v5137_v12  ;;  %v4921_v21 = vor.u32 %v6323_v19, %v4920_v18  ;;  %v6371_v22 = vld [vmem:[#allocation5 + $0x5b4] sm:$0xf0]  ;;  %v4704_v26 = vld [vmem:[#allocation5 + $0x270] sm:$0xf]  ;;  %v6269_v27 = vld [vmem:[#allocation5 + $0x284] sm:$0xf0]  ;;  %v4513_v29 = vor.u32 %v6221_v24, %v4512_v23 }
  0x27   :  { %v5113_v25 = vor.u32 %v6371_v22, %v5112_v20  ;;  %v4896_v28 = vld [vmem:[#allocation5 + $0x3f0] sm:$0xf]  ;;  %2236 = vmatpush.bf16.msra.mxu0 %v4537_v16  ;;  %v6317_v30 = vld [vmem:[#allocation5 + $0x404] sm:$0xf0]  ;;  %v4705_v33 = vor.u32 %v6269_v27, %v4704_v26  ;;  %v4488_v35 = vld [vmem:[#allocation5 + $0xc0] sm:$0xf] }
  0x28   :  { %v5088_v31 = vld [vmem:[#allocation5 + $0x570] sm:$0xf]  ;;  %v6365_v32 = vld [vmem:[#allocation5 + $0x584] sm:$0xf0]  ;;  %2249 = vmatpush.bf16.msra.mxu1 %v4729_v17  ;;  %v4897_v34 = vor.u32 %v6317_v30, %v4896_v28  ;;  %v6215_v36 = vld [vmem:[#allocation5 + $0xd4] sm:$0xf0] }
  0x29   :  { %2262 = vmatpush.bf16.msra.mxu2 %v4921_v21  ;;  %v4680_v37 = vld [vmem:[#allocation5 + $0x240] sm:$0xf]  ;;  %v5089_v38 = vor.u32 %v6365_v32, %v5088_v31  ;;  %v6263_v39 = vld [vmem:[#allocation5 + $0x254] sm:$0xf0]  ;;  %v4489_v44 = vor.u32 %v6215_v36, %v4488_v35  ;;  %v4464_v47 = vld [vmem:[#allocation5 + $0x90] sm:$0xf] }
  0x2a   :  { %2275 = vmatpush.bf16.msra.mxu3 %v5113_v25  ;;  %v4872_v40 = vld [vmem:[#allocation5 + $0x3c0] sm:$0xf]  ;;  %v6311_v41 = vld [vmem:[#allocation5 + $0x3d4] sm:$0xf0]  ;;  %v4681_v45 = vor.u32 %v6263_v39, %v4680_v37  ;;  %v6209_v48 = vld [vmem:[#allocation5 + $0xa4] sm:$0xf0] }
  0x2b   :  { %v5064_v42 = vld [vmem:[#allocation5 + $0x540] sm:$0xf]  ;;  %v6359_v43 = vld [vmem:[#allocation5 + $0x554] sm:$0xf0]  ;;  %2237 = vmatpush.bf16.msra.mxu0 %v4513_v29  ;;  %v4873_v46 = vor.u32 %v6311_v41, %v4872_v40  ;;  %v4656_v49 = vld [vmem:[#allocation5 + $0x210] sm:$0xf]  ;;  %v4465_v56 = vor.u32 %v6209_v48, %v4464_v47 }
  0x2c   :  { %2250 = vmatpush.bf16.msra.mxu1 %v4705_v33  ;;  %v5065_v50 = vor.u32 %v6359_v43, %v5064_v42  ;;  %v6257_v51 = vld [vmem:[#allocation5 + $0x224] sm:$0xf0]  ;;  %v4848_v52 = vld [vmem:[#allocation5 + $0x390] sm:$0xf]  ;;  %v4440_v59 = vld [vmem:[#allocation5 + $0x60] sm:$0xf] }
  0x2d   :  { %2263 = vmatpush.bf16.msra.mxu2 %v4897_v34  ;;  %v6305_v53 = vld [vmem:[#allocation5 + $0x3a4] sm:$0xf0]  ;;  %v5040_v54 = vld [vmem:[#allocation5 + $0x510] sm:$0xf]  ;;  %v4657_v57 = vor.u32 %v6257_v51, %v4656_v49  ;;  %v6203_v60 = vld [vmem:[#allocation5 + $0x74] sm:$0xf0] }
  0x2e   :  { %2276 = vmatpush.bf16.msra.mxu3 %v5089_v38  ;;  %v6353_v55 = vld [vmem:[#allocation5 + $0x524] sm:$0xf0]  ;;  %v4849_v58 = vor.u32 %v6305_v53, %v4848_v52  ;;  %v4632_v61 = vld [vmem:[#allocation5 + $0x1e0] sm:$0xf]  ;;  %v6251_v63 = vld [vmem:[#allocation5 + $0x1f4] sm:$0xf0]  ;;  %v4441_v4 = vor.u32 %v6203_v60, %v4440_v59 }
  0x2f   :  { %2238 = vmatpush.bf16.msra.mxu0 %v4489_v44  ;;  %v5041_v62 = vor.u32 %v6353_v55, %v5040_v54  ;;  %v4824_v0 = vld [vmem:[#allocation5 + $0x360] sm:$0xf]  ;;  %v6299_v1 = vld [vmem:[#allocation5 + $0x374] sm:$0xf0]  ;;  %v4416_v5 = vld [vmem:[#allocation5 + $0x30] sm:$0xf]  ;;  %v4633_v6 = vor.u32 %v6251_v63, %v4632_v61 }
  0x30   :  { %2251 = vmatpush.bf16.msra.mxu1 %v4681_v45  ;;  %v5016_v2 = vld [vmem:[#allocation5 + $0x4e0] sm:$0xf]  ;;  %v6347_v3 = vld [vmem:[#allocation5 + $0x4f4] sm:$0xf0]  ;;  %v4825_v7 = vor.u32 %v6299_v1, %v4824_v0  ;;  %v6197_v8 = vld [vmem:[#allocation5 + $0x44] sm:$0xf0] }
  0x31   :  { %2264 = vmatpush.bf16.msra.mxu2 %v4873_v46  ;;  %v4608_v9 = vld [vmem:[#allocation5 + $0x1b0] sm:$0xf]  ;;  %v6245_v10 = vld [vmem:[#allocation5 + $0x1c4] sm:$0xf0]  ;;  %v5017_v11 = vor.u32 %v6347_v3, %v5016_v2  ;;  %v4392_v16 = vld [vmem:[#allocation5] sm:$0xf]  ;;  %v4417_v18 = vor.u32 %v6197_v8, %v4416_v5 }
  0x32   :  { %2277 = vmatpush.bf16.msra.mxu3 %v5065_v50  ;;  %v4800_v12 = vld [vmem:[#allocation5 + $0x330] sm:$0xf]  ;;  %v6293_v13 = vld [vmem:[#allocation5 + $0x344] sm:$0xf0]  ;;  %v6191_v17 = vld [vmem:[#allocation5 + $0x14] sm:$0xf0]  ;;  %v4609_v22 = vor.u32 %v6245_v10, %v4608_v9 }
  0x33   :  { %2239 = vmatpush.bf16.msra.mxu0 %v4465_v56  ;;  %v4992_v14 = vld [vmem:[#allocation5 + $0x4b0] sm:$0xf]  ;;  %v6341_v15 = vld [vmem:[#allocation5 + $0x4c4] sm:$0xf0]  ;;  %v4584_v19 = vld [vmem:[#allocation5 + $0x180] sm:$0xf]  ;;  %v4801_v23 = vor.u32 %v6293_v13, %v4800_v12  ;;  %v4393_v34 = vor.u32 %v6191_v17, %v4392_v16 }
  0x34   :  { %2252 = vmatpush.bf16.msra.mxu1 %v4657_v57  ;;  %v6239_v20 = vld [vmem:[#allocation5 + $0x194] sm:$0xf0]  ;;  %v4776_v21 = vld [vmem:[#allocation5 + $0x300] sm:$0xf]  ;;  %v5328_v25 = vld [vmem:[#allocation5 + $0x750] sm:$0xf]  ;;  %v4993_v27 = vor.u32 %v6341_v15, %v4992_v14 }
  0x35   :  { %2265 = vmatpush.bf16.msra.mxu2 %v4849_v58  ;;  %v6287_v24 = vld [vmem:[#allocation5 + $0x314] sm:$0xf0]  ;;  %v6425_v26 = vld [vmem:[#allocation5 + $0x764] sm:$0xf0]  ;;  %v5520_v28 = vld [vmem:[#allocation5 + $0x8d0] sm:$0xf]  ;;  %v4585_v38 = vor.u32 %v6239_v20, %v4584_v19 }
  0x36   :  { %2278 = vmatpush.bf16.msra.mxu3 %v5041_v62  ;;  %v7088_v29 = vld [vmem:[#allocation5 + $0xa80] sm:$0x11]  ;;  %v133_v30 = vld [vmem:[#allocation2] sm:$0xff]  ;;  %v6473_v31 = vld [vmem:[#allocation5 + $0x8e4] sm:$0xf0]  ;;  %v4777_v39 = vor.u32 %v6287_v24, %v4776_v21  ;;  %v5329_v41 = vor.u32 %v6425_v26, %v5328_v25  ;;  %vm2216_vm0 = vcmask 1040384  }
  0x37   :  { %2240 = vmatpush.bf16.msra.mxu0 %v4441_v4  ;;  %v5712_v32 = vld [vmem:[#allocation5 + $0xa50] sm:$0xf]  ;;  %v1528_v33 = vunpack.c.l.b16 %v7088_v29  ;;  %137 = vst [vmem:[#allocation1] ss:$4 sm:$0xff] %v133_v30  ;;  %v6521_v35 = vld [vmem:[#allocation5 + $0xa64] sm:$0xf0]  ;;  %v5521_v42 = vor.u32 %v6473_v31, %v5520_v28 }
  0x38   :  { %2253 = vmatpush.bf16.msra.mxu1 %v4633_v6  ;;  %v4968_v36 = vld [vmem:[#allocation5 + $0x480] sm:$0xf]  ;;  %v6335_v37 = vld [vmem:[#allocation5 + $0x494] sm:$0xf0]  ;;  %v5713_v45 = vor.u32 %v6521_v35, %v5712_v32  ;;  %v6230_v51 = vld [vmem:[#allocation5 + $0x154] sm:$0xf] }
  0x39   :  { %2266 = vmatpush.bf16.msra.mxu2 %v4825_v7  ;;  %v1870_v40 = vpack.c.b16 %v1528_v33, %v1528_v33  ;;  %v5304_v43 = vld [vmem:[#allocation5 + $0x720] sm:$0xf]  ;;  %v6419_v44 = vld [vmem:[#allocation5 + $0x734] sm:$0xf0]  ;;  %v4969_v46 = vor.u32 %v6335_v37, %v4968_v36  ;;  %v4562_v52 = vld [vmem:[#allocation5 + $0x168] sm:$0xf0] }
  0x3a   :  { %2279 = vmatpush.bf16.msra.mxu3 %v5017_v11  ;;  %v5496_v47 = vld [vmem:[#allocation5 + $0x8a0] sm:$0xf]  ;;  %v6467_v48 = vld [vmem:[#allocation5 + $0x8b4] sm:$0xf0]  ;;  %v5280_v54 = vld [vmem:[#allocation5 + $0x6f0] sm:$0xf]  ;;  %v5305_v57 = vor.u32 %v6419_v44, %v5304_v43  ;;  %v4565_v2 = vor.u32 %v6230_v51, %v4562_v52 }
  0x3b   :  { %2241 = vmatpush.bf16.msra.mxu0 %v4417_v18  ;;  %v5688_v49 = vld [vmem:[#allocation5 + $0xa20] sm:$0xf]  ;;  %v6515_v50 = vld [vmem:[#allocation5 + $0xa34] sm:$0xf0]  ;;  %v2218_v53 = vsel %vm2216_vm0, %v1870_v40, 0  ;;  %v5497_v58 = vor.u32 %v6467_v48, %v5496_v47  ;;  %vm2212_vm1 = vcmask 15360  }
  0x3c   :  { %2254 = vmatpush.bf16.msra.mxu1 %v4609_v22  ;;  %v6413_v55 = vld [vmem:[#allocation5 + $0x704] sm:$0xf0]  ;;  %v5472_v56 = vld [vmem:[#allocation5 + $0x870] sm:$0xf]  ;;  %v5689_v61 = vor.u32 %v6515_v50, %v5688_v49  ;;  %v6224_v5 = vld [vmem:[#allocation5 + $0x124] sm:$0xf] }
  0x3d   :  { %2267 = vmatpush.bf16.msra.mxu2 %v4801_v23  ;;  %v6461_v63 = vld [vmem:[#allocation5 + $0x884] sm:$0xf0]  ;;  %v5664_v3 = vld [vmem:[#allocation5 + $0x9f0] sm:$0xf]  ;;  %v4538_v7 = vld [vmem:[#allocation5 + $0x138] sm:$0xf0]  ;;  %v5281_v9 = vor.u32 %v6413_v55, %v5280_v54 }
  0x3e   :  { %2280 = vmatpush.bf16.msra.mxu3 %v4993_v27  ;;  %v143_v59 = vld.sshfl [vmem:[#allocation1 + $0x18] sm:$0xff pattern:$0x73625140]  ;;  %v140_v60 = vld.sshfl [vmem:[#allocation1] sm:$0xff pattern:$0x73625140]  ;;  %v5473_v10 = vor.u32 %v6461_v63, %v5472_v56  ;;  %v4541_v17 = vor.u32 %v6224_v5, %v4538_v7 }
  0x3f   :  { %2242 = vmatpush.bf16.msra.mxu0 %v4393_v34  ;;  %v7092_v62 = vpack.c.bf16 %v143_v59, %v143_v59  ;;  %v7094_v0 = vpack.c.bf16 %v140_v60, %v140_v60  ;;  %v142_v1 = vld.sshfl [vmem:[#allocation1 + $0x10] sm:$0xff pattern:$0x73625140]  ;;  %v6509_v4 = vld [vmem:[#allocation5 + $0xa04] sm:$0xf0]  ;;  %vm3719_vm2 = vcmask 197792  }
  0x40   :  { %2255 = vmatpush.bf16.msra.mxu1 %v4585_v38  ;;  %v7096_v6 = vpack.c.bf16 %v142_v1, %v142_v1  ;;  %v141_v8 = vld.sshfl [vmem:[#allocation1 + $0x8] sm:$0xff pattern:$0x73625140]  ;;  %v5256_v11 = vld [vmem:[#allocation5 + $0x6c0] sm:$0xf]  ;;  %v5665_v13 = vor.u32 %v6509_v4, %v5664_v3  ;;  %v134_v35 = vld [vmem:[#allocation2 + $0x8] sm:$0xff] }
  0x41   :  { %2268 = vmatpush.bf16.msra.mxu2 %v4777_v39  ;;  %v7099_v12 = vpack.c.bf16 %v141_v8, %v141_v8  ;;  %v6407_v14 = vld [vmem:[#allocation5 + $0x6d4] sm:$0xf0]  ;;  %v5448_v15 = vld [vmem:[#allocation5 + $0x840] sm:$0xf]  ;;  %v6218_v20 = vld [vmem:[#allocation5 + $0xf4] sm:$0xf] }
  0x42   :  { %2281 = vmatpush.bf16.msra.mxu3 %v4969_v46  ;;  %2243 = vmatmul.bf16.vlgmr.msra.gmra.mxu0 %v7094_v0  ;;  %v6455_v16 = vld [vmem:[#allocation5 + $0x854] sm:$0xf0]  ;;  %v5640_v18 = vld [vmem:[#allocation5 + $0x9c0] sm:$0xf]  ;;  %v4514_v21 = vld [vmem:[#allocation5 + $0x108] sm:$0xf0]  ;;  %v5257_v22 = vor.u32 %v6407_v14, %v5256_v11 }
  0x43   :  { %2287 = vmatpush.bf16.msrb.mxu0 %v5329_v41  ;;  %v6503_v19 = vld [vmem:[#allocation5 + $0x9d4] sm:$0xf0]  ;;  %2256 = vmatmul.bf16.vlgmr.msra.gmra.mxu1 %v7099_v12  ;;  %v5449_v23 = vor.u32 %v6455_v16, %v5448_v15  ;;  %v5232_v24 = vld [vmem:[#allocation5 + $0x690] sm:$0xf]  ;;  %v6401_v26 = vld [vmem:[#allocation5 + $0x6a4] sm:$0xf0]  ;;  %v4517_v30 = vor.u32 %v6218_v20, %v4514_v21 }
  0x44   :  { %2300 = vmatpush.bf16.msrb.mxu1 %v5521_v42  ;;  %2269 = vmatmul.bf16.vlgmr.msra.gmra.mxu2 %v7096_v6  ;;  %v5641_v25 = vor.u32 %v6503_v19, %v5640_v18  ;;  %v5424_v27 = vld [vmem:[#allocation5 + $0x810] sm:$0xf]  ;;  %v6449_v28 = vld [vmem:[#allocation5 + $0x824] sm:$0xf0]  ;;  %v6212_v33 = vld [vmem:[#allocation5 + $0xc4] sm:$0xf]  ;;  %v5233_v36 = vor.u32 %v6401_v26, %v5232_v24 }
  0x45   :  { %2313 = vmatpush.bf16.msrb.mxu2 %v5713_v45  ;;  %2282 = vmatmul.bf16.vlgmr.msra.gmra.mxu3 %v7092_v62  ;;  %v5616_v31 = vld [vmem:[#allocation5 + $0x990] sm:$0xf]  ;;  %v6497_v32 = vld [vmem:[#allocation5 + $0x9a4] sm:$0xf0]  ;;  %v4490_v34 = vld [vmem:[#allocation5 + $0xd8] sm:$0xf0]  ;;  %v5425_v37 = vor.u32 %v6449_v28, %v5424_v27 }
  0x46   :  { %2333 = vmatpush.bf16.msrb.mxu3 %v2218_v53  ;;  %v5208_v38 = vld [vmem:[#allocation5 + $0x660] sm:$0xf]  ;;  %v5617_v39 = vor.u32 %v6497_v32, %v5616_v31  ;;  %v6395_v40 = vld [vmem:[#allocation5 + $0x674] sm:$0xf0]  ;;  %v4493_v43 = vor.u32 %v6212_v33, %v4490_v34  ;;  %139 = vst [vmem:[#allocation1 + $0x20] ss:$4 sm:$0xff] %v134_v35 }
  0x47   :  { %2288 = vmatpush.bf16.msrb.mxu0 %v5305_v57  ;;  %v5400_v41 = vld [vmem:[#allocation5 + $0x7e0] sm:$0xf]  ;;  %v6443_v42 = vld [vmem:[#allocation5 + $0x7f4] sm:$0xf0]  ;;  %v6206_v46 = vld [vmem:[#allocation5 + $0x94] sm:$0xf]  ;;  %v5209_v48 = vor.u32 %v6395_v40, %v5208_v38 }
  0x48   :  { %2301 = vmatpush.bf16.msrb.mxu1 %v5497_v58  ;;  %v5592_v44 = vld [vmem:[#allocation5 + $0x960] sm:$0xf]  ;;  %v6491_v45 = vld [vmem:[#allocation5 + $0x974] sm:$0xf0]  ;;  %v4466_v47 = vld [vmem:[#allocation5 + $0xa8] sm:$0xf0]  ;;  %v5401_v49 = vor.u32 %v6443_v42, %v5400_v41 }
  0x49   :  { %2314 = vmatpush.bf16.msrb.mxu2 %v5689_v61  ;;  %v5184_v50 = vld [vmem:[#allocation5 + $0x630] sm:$0xf]  ;;  %v6389_v51 = vld [vmem:[#allocation5 + $0x644] sm:$0xf0]  ;;  %v5593_v52 = vor.u32 %v6491_v45, %v5592_v44  ;;  %v4469_v56 = vor.u32 %v6206_v46, %v4466_v47  ;;  %v6200_v58 = vld [vmem:[#allocation5 + $0x64] sm:$0xf] }
  0x4a   :  { %2339 = vmatpush.bf16.msra.mxu3 %v4565_v2  ;;  %v5376_v53 = vld [vmem:[#allocation5 + $0x7b0] sm:$0xf]  ;;  %v6437_v54 = vld [vmem:[#allocation5 + $0x7c4] sm:$0xf0]  ;;  %v4442_v59 = vld [vmem:[#allocation5 + $0x78] sm:$0xf0]  ;;  %v5185_v1 = vor.u32 %v6389_v51, %v5184_v50 }
  0x4b   :  { %2289 = vmatpush.bf16.msrb.mxu0 %v5281_v9  ;;  %v5568_v55 = vld [vmem:[#allocation5 + $0x930] sm:$0xf]  ;;  %v6485_v57 = vld [vmem:[#allocation5 + $0x944] sm:$0xf0]  ;;  %v5160_v60 = vld [vmem:[#allocation5 + $0x600] sm:$0xf]  ;;  %v5377_v2 = vor.u32 %v6437_v54, %v5376_v53  ;;  %v4445_v11 = vor.u32 %v6200_v58, %v4442_v59 }
  0x4c   :  { %2302 = vmatpush.bf16.msrb.mxu1 %v5473_v10  ;;  %v6383_v61 = vld [vmem:[#allocation5 + $0x614] sm:$0xf0]  ;;  %v5352_v63 = vld [vmem:[#allocation5 + $0x780] sm:$0xf]  ;;  %v5569_v7 = vor.u32 %v6485_v57, %v5568_v55  ;;  %v6194_v8 = vld [vmem:[#allocation5 + $0x34] sm:$0xf] }
  0x4d   :  { %2315 = vmatpush.bf16.msrb.mxu2 %v5665_v13  ;;  %v6431_v3 = vld [vmem:[#allocation5 + $0x794] sm:$0xf0]  ;;  %v5544_v4 = vld [vmem:[#allocation5 + $0x900] sm:$0xf]  ;;  %v4418_v9 = vld [vmem:[#allocation5 + $0x48] sm:$0xf0]  ;;  %v5161_v19 = vor.u32 %v6383_v61, %v5160_v60 }
  0x4e   :  { %2340 = vmatpush.bf16.msra.mxu3 %v4541_v17  ;;  %v6479_v5 = vld [vmem:[#allocation5 + $0x914] sm:$0xf0]  ;;  %v6278_v10 = vld [vmem:[#allocation5 + $0x2d4] sm:$0xf]  ;;  %v4754_v13 = vld [vmem:[#allocation5 + $0x2e8] sm:$0xf0]  ;;  %v5353_v20 = vor.u32 %v6431_v3, %v5352_v63  ;;  %v4421_v28 = vor.u32 %v6194_v8, %v4418_v9 }
  0x4f   :  { %2290 = vmatpush.bf16.msrb.mxu0 %v5257_v22  ;;  %v147_v14 = vld.sshfl [vmem:[#allocation1 + $0x38] sm:$0xff pattern:$0x73625140]  ;;  %v6326_v15 = vld [vmem:[#allocation5 + $0x454] sm:$0xf]  ;;  %v4757_v24 = vor.u32 %v6278_v10, %v4754_v13  ;;  %vm3502_vm3 = vcmask 156792  }
  0x50   :  { %2303 = vmatpush.bf16.msrb.mxu1 %v5449_v23  ;;  %v4946_v16 = vld [vmem:[#allocation5 + $0x468] sm:$0xf0]  ;;  %v6374_v17 = vld [vmem:[#allocation5 + $0x5d4] sm:$0xf]  ;;  %v7104_v18 = vpack.c.bf16 %v147_v14, %v147_v14  ;;  %v5545_v23 = vor.u32 %v6479_v5, %v5544_v4  ;;  %v6188_v27 = vld [vmem:[#allocation5 + $0x4] sm:$0xf] }
  0x51   :  { %2316 = vmatpush.bf16.msrb.mxu2 %v5641_v25  ;;  %v5138_v21 = vld [vmem:[#allocation5 + $0x5e8] sm:$0xf0]  ;;  %v146_v25 = vld.sshfl [vmem:[#allocation1 + $0x30] sm:$0xff pattern:$0x73625140]  ;;  %vm3285_vm4 = vcmask 115792  }
  0x52   :  { %2341 = vmatpush.bf16.msra.mxu3 %v4517_v30  ;;  %v144_v22 = vld.sshfl [vmem:[#allocation1 + $0x20] sm:$0xff pattern:$0x73625140]  ;;  %v145_v26 = vld.sshfl [vmem:[#allocation1 + $0x28] sm:$0xff pattern:$0x73625140]  ;;  %v4949_v30 = vor.u32 %v6326_v15, %v4946_v16  ;;  %v5141_v34 = vor.u32 %v6374_v17, %v5138_v21 }
  0x53   :  { %2291 = vmatpush.bf16.msrb.mxu0 %v5233_v36  ;;  %v4394_v31 = vld [vmem:[#allocation5 + $0x18] sm:$0xf0]  ;;  %v6272_v32 = vld [vmem:[#allocation5 + $0x2a4] sm:$0xf]  ;;  %v7108_v35 = vpack.c.bf16 %v144_v22, %v144_v22  ;;  %v7112_v40 = vpack.c.bf16 %v145_v26, %v145_v26  ;;  %v6422_v42 = vld [vmem:[#allocation5 + $0x754] sm:$0xf] }
  0x54   :  { %2304 = vmatpush.bf16.msrb.mxu1 %v5425_v37  ;;  %v4730_v33 = vld [vmem:[#allocation5 + $0x2b8] sm:$0xf0]  ;;  %v6320_v36 = vld [vmem:[#allocation5 + $0x424] sm:$0xf]  ;;  %v4397_v45 = vor.u32 %v6188_v27, %v4394_v31  ;;  %v6266_v47 = vld [vmem:[#allocation5 + $0x274] sm:$0xf] }
  0x55   :  { %2317 = vmatpush.bf16.msrb.mxu2 %v5617_v39  ;;  %5734 = vmatmul.msk.bf16.vlgmr.msrb.gmra.mxu3 %vm2212_vm1, %v7104_v18  ;;  %v4922_v37 = vld [vmem:[#allocation5 + $0x438] sm:$0xf0]  ;;  %v6368_v38 = vld [vmem:[#allocation5 + $0x5a4] sm:$0xf]  ;;  %v7110_v39 = vpack.c.bf16 %v146_v25, %v146_v25  ;;  %v4733_v44 = vor.u32 %v6272_v32, %v4730_v33  ;;  %v6314_v51 = vld [vmem:[#allocation5 + $0x3f4] sm:$0xf] }
  0x56   :  { %2342 = vmatpush.bf16.msra.mxu3 %v4493_v43  ;;  %v5114_v41 = vld [vmem:[#allocation5 + $0x5b8] sm:$0xf0]  ;;  %v5330_v43 = vld [vmem:[#allocation5 + $0x768] sm:$0xf0]  ;;  %v4925_v46 = vor.u32 %v6320_v36, %v4922_v37  ;;  %v6362_v53 = vld [vmem:[#allocation5 + $0x574] sm:$0xf]  ;;  %v1529_v37 = vunpack.c.h.b16 %v7088_v29 }
  0x57   :  { %2292 = vmatpush.bf16.msrb.mxu0 %v5209_v48  ;;  %v4706_v48 = vld [vmem:[#allocation5 + $0x288] sm:$0xf0]  ;;  %v5333_v50 = vor.u32 %v6422_v42, %v5330_v43  ;;  %v6416_v55 = vld [vmem:[#allocation5 + $0x724] sm:$0xf]  ;;  %v4682_v60 = vld [vmem:[#allocation5 + $0x258] sm:$0xf0] }
  0x58   :  { %2305 = vmatpush.bf16.msrb.mxu1 %v5401_v49  ;;  %v5117_v49 = vor.u32 %v6368_v38, %v5114_v41  ;;  %v5090_v54 = vld [vmem:[#allocation5 + $0x588] sm:$0xf0]  ;;  %v4709_v57 = vor.u32 %v6266_v47, %v4706_v48  ;;  %v6260_v59 = vld [vmem:[#allocation5 + $0x244] sm:$0xf]  ;;  %v5066_v4 = vld [vmem:[#allocation5 + $0x558] sm:$0xf0] }
  0x59   :  { %2318 = vmatpush.bf16.msrb.mxu2 %v5593_v52  ;;  %v4898_v52 = vld [vmem:[#allocation5 + $0x408] sm:$0xf0]  ;;  %v5093_v61 = vor.u32 %v6362_v53, %v5090_v54  ;;  %v6356_v3 = vld [vmem:[#allocation5 + $0x544] sm:$0xf]  ;;  %v6410_v5 = vld [vmem:[#allocation5 + $0x6f4] sm:$0xf]  ;;  %v4685_v8 = vor.u32 %v6260_v59, %v4682_v60 }
  0x5a   :  { %2343 = vmatpush.bf16.msra.mxu3 %v4469_v56  ;;  %v5306_v56 = vld [vmem:[#allocation5 + $0x738] sm:$0xf0]  ;;  %v4901_v58 = vor.u32 %v6314_v51, %v4898_v52  ;;  %v6254_v10 = vld [vmem:[#allocation5 + $0x214] sm:$0xf]  ;;  %v5069_v13 = vor.u32 %v6356_v3, %v5066_v4  ;;  %v4850_v16 = vld [vmem:[#allocation5 + $0x3a8] sm:$0xf0] }
  0x5b   :  { %2293 = vmatpush.bf16.msrb.mxu0 %v5185_v1  ;;  %v5309_v63 = vor.u32 %v6416_v55, %v5306_v56  ;;  %v6308_v1 = vld [vmem:[#allocation5 + $0x3c4] sm:$0xf]  ;;  %v6302_v15 = vld [vmem:[#allocation5 + $0x394] sm:$0xf]  ;;  %v5258_v21 = vld [vmem:[#allocation5 + $0x6d8] sm:$0xf0]  ;;  %v1871_v56 = vpack.c.b16 %v1529_v37, %v1529_v37 }
  0x5c   :  { %2306 = vmatpush.bf16.msrb.mxu1 %v5377_v2  ;;  %v4874_v2 = vld [vmem:[#allocation5 + $0x3d8] sm:$0xf0]  ;;  %v6350_v17 = vld [vmem:[#allocation5 + $0x514] sm:$0xf]  ;;  %v6344_v31 = vld [vmem:[#allocation5 + $0x4e4] sm:$0xf] }
  0x5d   :  { %2319 = vmatpush.bf16.msrb.mxu2 %v5569_v7  ;;  %v5282_v7 = vld [vmem:[#allocation5 + $0x708] sm:$0xf0]  ;;  %v4877_v9 = vor.u32 %v6308_v1, %v4874_v2  ;;  %v4634_v25 = vld [vmem:[#allocation5 + $0x1f8] sm:$0xf0]  ;;  %v6398_v33 = vld [vmem:[#allocation5 + $0x694] sm:$0xf] }
  0x5e   :  { %2344 = vmatpush.bf16.msra.mxu3 %v4445_v11  ;;  %v4658_v11 = vld [vmem:[#allocation5 + $0x228] sm:$0xf0]  ;;  %v5285_v14 = vor.u32 %v6410_v5, %v5282_v7  ;;  %v5018_v32 = vld [vmem:[#allocation5 + $0x4f8] sm:$0xf0]  ;;  %v6242_v41 = vld [vmem:[#allocation5 + $0x1b4] sm:$0xf] }
  0x5f   :  { %2294 = vmatpush.bf16.msrb.mxu0 %v5161_v19  ;;  %v5042_v19 = vld [vmem:[#allocation5 + $0x528] sm:$0xf0]  ;;  %v4661_v22 = vor.u32 %v6254_v10, %v4658_v11  ;;  %v5021_v43 = vor.u32 %v6344_v31, %v5018_v32  ;;  %v6338_v47 = vld [vmem:[#allocation5 + $0x4b4] sm:$0xf]  ;;  %v6236_v52 = vld [vmem:[#allocation5 + $0x184] sm:$0xf] }
  0x60   :  { %2307 = vmatpush.bf16.msrb.mxu1 %v5353_v20  ;;  %v6404_v20 = vld [vmem:[#allocation5 + $0x6c4] sm:$0xf]  ;;  %v5045_v26 = vor.u32 %v6350_v17, %v5042_v19  ;;  %v4610_v42 = vld [vmem:[#allocation5 + $0x1c8] sm:$0xf0]  ;;  %v4586_v29 = vld [vmem:[#allocation5 + $0x198] sm:$0xf0] }
  0x61   :  { %2320 = vmatpush.bf16.msrb.mxu2 %v5545_v23  ;;  %v4853_v23 = vor.u32 %v6302_v15, %v4850_v16  ;;  %v5261_v27 = vor.u32 %v6404_v20, %v5258_v21  ;;  %v4994_v48 = vld [vmem:[#allocation5 + $0x4c8] sm:$0xf0]  ;;  %v4613_v51 = vor.u32 %v6242_v41, %v4610_v42  ;;  %v6284_v54 = vld [vmem:[#allocation5 + $0x304] sm:$0xf]  ;;  %v4778_v55 = vld [vmem:[#allocation5 + $0x318] sm:$0xf0]  ;;  %v4589_v3 = vor.u32 %v6236_v52, %v4586_v29 }
  0x62   :  { %2345 = vmatpush.bf16.msra.mxu3 %v4421_v28  ;;  %2295 = vmatmul.bf16.vlgmr.msrb.gmra.mxu0 %v7108_v35  ;;  %v6296_v28 = vld [vmem:[#allocation5 + $0x364] sm:$0xf]  ;;  %v6470_v60 = vld [vmem:[#allocation5 + $0x8d4] sm:$0xf]  ;;  %v5186_v2 = vld [vmem:[#allocation5 + $0x648] sm:$0xf0]  ;;  %v4781_v7 = vor.u32 %v6284_v54, %v4778_v55 }
  0x63   :  { %2352 = vmatpush.bf16.msra.mxu0 %v4757_v24  ;;  %2308 = vmatmul.bf16.vlgmr.msrb.gmra.mxu1 %v7112_v40  ;;  %v6248_v24 = vld [vmem:[#allocation5 + $0x1e4] sm:$0xf]  ;;  %v6386_v1 = vld [vmem:[#allocation5 + $0x634] sm:$0xf]  ;;  %v5714_v5 = vld [vmem:[#allocation5 + $0xa68] sm:$0xf0] }
  0x64   :  { %2365 = vmatpush.bf16.msra.mxu1 %v4949_v30  ;;  %2321 = vmatmul.bf16.vlgmr.msrb.gmra.mxu2 %v7110_v39  ;;  %v4826_v30 = vld [vmem:[#allocation5 + $0x378] sm:$0xf0]  ;;  %v4637_v36 = vor.u32 %v6248_v24, %v4634_v25  ;;  %v6332_v59 = vld [vmem:[#allocation5 + $0x484] sm:$0xf]  ;;  %v6518_v4 = vld [vmem:[#allocation5 + $0xa54] sm:$0xf] }
  0x65   :  { %2378 = vmatpush.bf16.msra.mxu2 %v5141_v34  ;;  %v5234_v34 = vld [vmem:[#allocation5 + $0x6a8] sm:$0xf0]  ;;  %v4829_v38 = vor.u32 %v6296_v28, %v4826_v30  ;;  %v4568_v10 = vld [vmem:[#allocation5 + $0x158] sm:$0xf]  ;;  %v6464_v15 = vld [vmem:[#allocation5 + $0x8a4] sm:$0xf]  ;;  %v5717_v17 = vor.u32 %v6518_v4, %v5714_v5 }
  0x66   :  { %2346 = vmatpush.bf16.msra.mxu3 %v4397_v45  ;;  %v6290_v45 = vld [vmem:[#allocation5 + $0x334] sm:$0xf]  ;;  %v5498_v16 = vld [vmem:[#allocation5 + $0x8b8] sm:$0xf0]  ;;  %v6380_v19 = vld [vmem:[#allocation5 + $0x604] sm:$0xf] }
  0x67   :  { %2353 = vmatpush.bf16.msra.mxu0 %v4733_v44  ;;  %v5237_v44 = vor.u32 %v6398_v33, %v5234_v34  ;;  %v5162_v20 = vld [vmem:[#allocation5 + $0x618] sm:$0xf0]  ;;  %v6512_v21 = vld [vmem:[#allocation5 + $0xa24] sm:$0xf]  ;;  %v6282_v24 = vld [vmem:[#allocation5 + $0x2ec] sm:$0xf0]  ;;  %v5501_v25 = vor.u32 %v6464_v15, %v5498_v16 }
  0x68   :  { %2366 = vmatpush.bf16.msra.mxu1 %v4925_v46  ;;  %v4802_v46 = vld [vmem:[#allocation5 + $0x348] sm:$0xf0]  ;;  %v6458_v28 = vld [vmem:[#allocation5 + $0x874] sm:$0xf]  ;;  %v4544_v33 = vld [vmem:[#allocation5 + $0x128] sm:$0xf] }
  0x69   :  { %2379 = vmatpush.bf16.msra.mxu2 %v5117_v49  ;;  %2347 = vmatmul.bf16.vlgmr.msra.gmra.mxu3 %v7094_v0  ;;  %v6392_v49 = vld [vmem:[#allocation5 + $0x664] sm:$0xf]  ;;  %v4805_v53 = vor.u32 %v6290_v45, %v4802_v46  ;;  %v5474_v30 = vld [vmem:[#allocation5 + $0x888] sm:$0xf0]  ;;  %v6228_v34 = vld [vmem:[#allocation5 + $0x13c] sm:$0xf0] }
  0x6a   :  { %2391 = vmatpush.bf16.msrb.mxu3 %v5333_v50  ;;  %v5210_v50 = vld [vmem:[#allocation5 + $0x678] sm:$0xf0]  ;;  %v5666_v37 = vld [vmem:[#allocation5 + $0xa08] sm:$0xf0]  ;;  %v6276_v41 = vld [vmem:[#allocation5 + $0x2bc] sm:$0xf0]  ;;  %v5477_v42 = vor.u32 %v6458_v28, %v5474_v30 }
  0x6b   :  { %2354 = vmatpush.bf16.msra.mxu0 %v4709_v57  ;;  %v4997_v57 = vor.u32 %v6338_v47, %v4994_v48  ;;  %v5450_v45 = vld [vmem:[#allocation5 + $0x858] sm:$0xf0]  ;;  %v4520_v48 = vld [vmem:[#allocation5 + $0xf8] sm:$0xf]  ;;  %v4496_v54 = vld [vmem:[#allocation5 + $0xc8] sm:$0xf] }
  0x6c   :  { %2367 = vmatpush.bf16.msra.mxu1 %v4901_v58  ;;  %v5213_v58 = vor.u32 %v6392_v49, %v5210_v50  ;;  %v6222_v49 = vld [vmem:[#allocation5 + $0x10c] sm:$0xf0]  ;;  %v6500_v50 = vld [vmem:[#allocation5 + $0x9c4] sm:$0xf]  ;;  %v4712_v52 = vld [vmem:[#allocation5 + $0x278] sm:$0xf] }
  0x6d   :  { %2380 = vmatpush.bf16.msra.mxu2 %v5093_v61  ;;  %v5522_v61 = vld [vmem:[#allocation5 + $0x8e8] sm:$0xf0]  ;;  %v6216_v55 = vld [vmem:[#allocation5 + $0xdc] sm:$0xf0]  ;;  %v4472_v4 = vld [vmem:[#allocation5 + $0x98] sm:$0xf] }
  0x6e   :  { %2392 = vmatpush.bf16.msrb.mxu3 %v5309_v63  ;;  %v4970_v63 = vld [vmem:[#allocation5 + $0x498] sm:$0xf0]  ;;  %v6210_v5 = vld [vmem:[#allocation5 + $0xac] sm:$0xf0]  ;;  %v4664_v15 = vld [vmem:[#allocation5 + $0x218] sm:$0xf] }
  0x6f   :  { %2355 = vmatpush.bf16.msra.mxu0 %v4685_v8  ;;  %v5525_v8 = vor.u32 %v6470_v60, %v5522_v61  ;;  %v4973_v11 = vor.u32 %v6332_v59, %v4970_v63  ;;  %v6494_v59 = vld [vmem:[#allocation5 + $0x994] sm:$0xf]  ;;  %v5618_v60 = vld [vmem:[#allocation5 + $0x9a8] sm:$0xf0]  ;;  %v6258_v16 = vld [vmem:[#allocation5 + $0x22c] sm:$0xf0] }
  0x70   :  { %2368 = vmatpush.bf16.msra.mxu1 %v4877_v9  ;;  %v2221_v9 = vsel %vm2216_vm0, %v1871_v56, 0  ;;  %v6446_v56 = vld [vmem:[#allocation5 + $0x814] sm:$0xf]  ;;  %v4640_v28 = vld [vmem:[#allocation5 + $0x1e8] sm:$0xf]  ;;  %vm4153_vm5 = vcmask 279792  }
  0x71   :  { %2381 = vmatpush.bf16.msra.mxu2 %v5069_v13  ;;  %v5189_v13 = vor.u32 %v6386_v1, %v5186_v2  ;;  %v4688_v1 = vld [vmem:[#allocation5 + $0x248] sm:$0xf]  ;;  %v6264_v2 = vld [vmem:[#allocation5 + $0x25c] sm:$0xf0]  ;;  %vm2859_vm6 = vcmask 33792   ;;  %vm3068_vm7 = vcmask 74792  }
  0x72   :  { %2393 = vmatpush.bf16.msrb.mxu3 %v5285_v14  ;;  %v6234_v14 = vld [vmem:[#allocation5 + $0x16c] sm:$0xf0]  ;;  %v6252_v30 = vld [vmem:[#allocation5 + $0x1fc] sm:$0xf0]  ;;  %vm3936_vm8 = vcmask 238792   ;;  %s6985_s4 = smov 108  }
  0x73   :  { %2356 = vmatpush.bf16.msra.mxu0 %v4661_v22  ;;  %v5690_v22 = vld [vmem:[#allocation5 + $0xa38] sm:$0xf0]  ;;  %s6986_s6 = smov 118   ;;  %s6987_s14 = smov 123  }
  0x74   :  { %2369 = vmatpush.bf16.msra.mxu1 %v4853_v23  ;;  %v4760_v23 = vld [vmem:[#allocation5 + $0x2d8] sm:$0xf]  ;;  %v5693_v31 = vor.u32 %v6512_v21, %v5690_v22  ;;  %v6434_v21 = vld [vmem:[#allocation5 + $0x7b4] sm:$0xf]  ;;  %v4473_v22 = vor.u32 %v6210_v5, %v4472_v4  ;;  %v6474_v5 = vld [vmem:[#allocation5 + $0x8ec] sm:$0xf0] }
  0x75   :  { %2382 = vmatpush.bf16.msra.mxu2 %v5045_v26  ;;  %v4569_v26 = vor.u32 %v6234_v14, %v4568_v10  ;;  %v4761_v32 = vor.u32 %v6282_v24, %v4760_v23  ;;  %v6488_v10 = vld [vmem:[#allocation5 + $0x964] sm:$0xf]  ;;  %v4689_v14 = vor.u32 %v6264_v2, %v4688_v1  ;;  %v5378_v23 = vld [vmem:[#allocation5 + $0x7c8] sm:$0xf0]  ;;  %v6482_v24 = vld [vmem:[#allocation5 + $0x934] sm:$0xf] }
  0x76   :  { %2394 = vmatpush.bf16.msrb.mxu3 %v5261_v27  ;;  %v5165_v27 = vor.u32 %v6380_v19, %v5162_v20  ;;  %v4448_v19 = vld [vmem:[#allocation5 + $0x68] sm:$0xf]  ;;  %v6204_v20 = vld [vmem:[#allocation5 + $0x7c] sm:$0xf0]  ;;  %v5528_v4 = vld [vmem:[#allocation5 + $0x8d8] sm:$0xf] }
  0x77   :  { %2357 = vmatpush.bf16.msra.mxu0 %v4637_v36  ;;  %v6506_v36 = vld [vmem:[#allocation5 + $0x9f4] sm:$0xf]  ;;  %v5120_v1 = vld [vmem:[#allocation5 + $0x5a8] sm:$0xf]  ;;  %v6372_v2 = vld [vmem:[#allocation5 + $0x5bc] sm:$0xf0] }
  0x78   :  { %2370 = vmatpush.bf16.msra.mxu1 %v4829_v38  ;;  %v4736_v38 = vld [vmem:[#allocation5 + $0x2a8] sm:$0xf]  ;;  %v5669_v46 = vor.u32 %v6506_v36, %v5666_v37  ;;  %v4449_v36 = vor.u32 %v6204_v20, %v4448_v19  ;;  %v5354_v37 = vld [vmem:[#allocation5 + $0x798] sm:$0xf0]  ;;  %v6366_v19 = vld [vmem:[#allocation5 + $0x58c] sm:$0xf0] }
  0x79   :  { %2383 = vmatpush.bf16.msra.mxu2 %v5021_v43  ;;  %v4545_v43 = vor.u32 %v6228_v34, %v4544_v33  ;;  %v4737_v47 = vor.u32 %v6276_v41, %v4736_v38  ;;  %v6198_v33 = vld [vmem:[#allocation5 + $0x4c] sm:$0xf0]  ;;  %v6428_v34 = vld [vmem:[#allocation5 + $0x784] sm:$0xf]  ;;  %v4952_v41 = vld [vmem:[#allocation5 + $0x458] sm:$0xf] }
  0x7a   :  { %2395 = vmatpush.bf16.msrb.mxu3 %v5237_v44  ;;  %v6452_v44 = vld [vmem:[#allocation5 + $0x844] sm:$0xf]  ;;  %v5504_v20 = vld [vmem:[#allocation5 + $0x8a8] sm:$0xf]  ;;  %s6988_s1 = smov 113   ;;  %s6989_s15 = smov 98  }
  0x7b   :  { %2358 = vmatpush.bf16.msra.mxu0 %v4613_v51  ;;  %v5642_v51 = vld [vmem:[#allocation5 + $0x9d8] sm:$0xf0]  ;;  %v5453_v29 = vor.u32 %v6452_v44, %v5450_v45  ;;  %v6476_v38 = vld [vmem:[#allocation5 + $0x904] sm:$0xf]  ;;  %v6330_v44 = vld [vmem:[#allocation5 + $0x46c] sm:$0xf0] }
  0x7c   :  { %2371 = vmatpush.bf16.msra.mxu1 %v4805_v53  ;;  %v6270_v53 = vld [vmem:[#allocation5 + $0x28c] sm:$0xf0]  ;;  %v5645_v61 = vor.u32 %v6500_v50, %v5642_v51  ;;  %v5546_v45 = vld [vmem:[#allocation5 + $0x918] sm:$0xf0]  ;;  %s6990_s16 = smov 103   ;;  %s7026_s17 = smov [#allocation14]  }
  0x7d   :  { %2384 = vmatpush.bf16.msra.mxu2 %v4997_v57  ;;  %v4521_v57 = vor.u32 %v6222_v49, %v4520_v48  ;;  %v4713_v63 = vor.u32 %v6270_v53, %v4712_v52  ;;  %v5357_v48 = vor.u32 %v6428_v34, %v5354_v37  ;;  %v5144_v49 = vld [vmem:[#allocation5 + $0x5d8] sm:$0xf]  ;;  %v6378_v50 = vld [vmem:[#allocation5 + $0x5ec] sm:$0xf0]  ;;  %v4953_v52 = vor.u32 %v6330_v44, %v4952_v41  ;;  %v4400_v53 = vld [vmem:[#allocation5 + $0x8] sm:$0xf] }
  0x7e   :  { %2396 = vmatpush.bf16.msrb.mxu3 %v5213_v58  ;;  %v5426_v58 = vld [vmem:[#allocation5 + $0x828] sm:$0xf0]  ;;  %v6462_v34 = vld [vmem:[#allocation5 + $0x88c] sm:$0xf0]  ;;  %v5264_v41 = vld [vmem:[#allocation5 + $0x6c8] sm:$0xf] }
  0x7f   :  { %2359 = vmatpush.bf16.msra.mxu0 %v4589_v3  ;;  %v5429_v3 = vor.u32 %v6446_v56, %v5426_v58  ;;  %v5336_v56 = vld [vmem:[#allocation5 + $0x758] sm:$0xf]  ;;  %v5145_v58 = vor.u32 %v6378_v50, %v5144_v49  ;;  %v6456_v49 = vld [vmem:[#allocation5 + $0x85c] sm:$0xf0]  ;;  %s4375_s18 = sshll.u32 %s7026_s17, 4  ;;  %s4377_s20 = sshll.u32 %s7339_s7, 4  ;;  %s4376_s18 = int_to_ptr.vmem [resolvable:$true] %s4375_s18  ;;  %s4378_s20 = int_to_ptr.hbm [resolvable:$true] %s4377_s20 }
  0x80   :  { %2372 = vmatpush.bf16.msra.mxu1 %v4781_v7  ;;  %v6440_v7 = vld [vmem:[#allocation5 + $0x7e4] sm:$0xf] }
  0x81   :  { %2385 = vmatpush.bf16.msra.mxu2 %v4973_v11  ;;  %v5594_v11 = vld [vmem:[#allocation5 + $0x978] sm:$0xf0] }
  0x82   :  { %2397 = vmatpush.bf16.msrb.mxu3 %v5189_v13  ;;  %2360 = vmatmul.bf16.vlgmr.msra.gmra.mxu0 %v7099_v12  ;;  %v5621_v13 = vor.u32 %v6494_v59, %v5618_v60  ;;  %v4592_v59 = vld [vmem:[#allocation5 + $0x188] sm:$0xf]  ;;  %v6240_v60 = vld [vmem:[#allocation5 + $0x19c] sm:$0xf0] }
  0x83   :  { %2404 = vmatpush.bf16.msrb.mxu0 %v5525_v8  ;;  %2373 = vmatmul.bf16.vlgmr.msra.gmra.mxu1 %v7096_v6  ;;  %v4497_v8 = vor.u32 %v6216_v55, %v4496_v54  ;;  %v6192_v55 = vld [vmem:[#allocation5 + $0x1c] sm:$0xf0] }
  0x84   :  { %2417 = vmatpush.bf16.msrb.mxu1 %v5717_v17  ;;  %2386 = vmatmul.bf16.vlgmr.msra.gmra.mxu2 %v7092_v62 }
  0x85   :  { %2437 = vmatpush.bf16.msrb.mxu2 %v2221_v9  ;;  %v5402_v9 = vld [vmem:[#allocation5 + $0x7f8] sm:$0xf0] }
  0x86   :  { %2398 = vmatpush.bf16.msrb.mxu3 %v5165_v27  ;;  %v5405_v17 = vor.u32 %v6440_v7, %v5402_v9  ;;  %v4665_v27 = vor.u32 %v6258_v16, %v4664_v15  ;;  %v5529_v15 = vor.u32 %v6474_v5, %v5528_v4  ;;  %v6318_v16 = vld [vmem:[#allocation5 + $0x40c] sm:$0xf0]  ;;  %v4808_v4 = vld [vmem:[#allocation5 + $0x338] sm:$0xf]  ;;  %v7130_v5 = vld [vmem:[#allocation5 + $0xa88] sm:$0x11] }
  0x87   :  { %2405 = vmatpush.bf16.msrb.mxu0 %v5501_v25  ;;  %v5570_v25 = vld [vmem:[#allocation5 + $0x948] sm:$0xf0] }
  0x88   :  { %2418 = vmatpush.bf16.msrb.mxu1 %v5693_v31  ;;  %v5381_v31 = vor.u32 %v6434_v21, %v5378_v23  ;;  %v6468_v21 = vld [vmem:[#allocation5 + $0x8bc] sm:$0xf0] }
  0x89   :  { %2443 = vmatpush.bf16.msra.mxu2 %v4569_v26  ;;  %2399 = vmatmul.bf16.vlgmr.msrb.gmra.mxu3 %v7108_v35  ;;  %v5597_v26 = vor.u32 %v6488_v10, %v5594_v11  ;;  %v5121_v10 = vor.u32 %v6372_v2, %v5120_v1  ;;  %v5312_v11 = vld [vmem:[#allocation5 + $0x728] sm:$0xf] }
  0x8a   :  { %2456 = vmatpush.bf16.msra.mxu3 %v4761_v32  ;;  %v4424_v32 = vld [vmem:[#allocation5 + $0x38] sm:$0xf] }
  0x8b   :  { %2406 = vmatpush.bf16.msrb.mxu0 %v5477_v42  ;;  %v5573_v42 = vor.u32 %v6482_v24, %v5570_v25  ;;  %v4425_v51 = vor.u32 %v6198_v33, %v4424_v32  ;;  %v5288_v25 = vld [vmem:[#allocation5 + $0x6f8] sm:$0xf]  ;;  %v6360_v32 = vld [vmem:[#allocation5 + $0x55c] sm:$0xf0] }
  0x8c   :  { %2419 = vmatpush.bf16.msrb.mxu1 %v5669_v46  ;;  %v4616_v46 = vld [vmem:[#allocation5 + $0x1b8] sm:$0xf] }
  0x8d   :  { %2444 = vmatpush.bf16.msra.mxu2 %v4545_v43  ;;  %v4641_v43 = vor.u32 %v6252_v30, %v4640_v28  ;;  %v5505_v28 = vor.u32 %v6468_v21, %v5504_v20  ;;  %v6312_v30 = vld [vmem:[#allocation5 + $0x3dc] sm:$0xf0]  ;;  %v5480_v33 = vld [vmem:[#allocation5 + $0x878] sm:$0xf]  ;;  %v6390_v20 = vld [vmem:[#allocation5 + $0x64c] sm:$0xf0] }
  0x8e   :  { %2457 = vmatpush.bf16.msra.mxu3 %v4737_v47  ;;  %v6246_v47 = vld [vmem:[#allocation5 + $0x1cc] sm:$0xf0]  ;;  %v5481_v44 = vor.u32 %v6462_v34, %v5480_v33  ;;  %v4784_v21 = vld [vmem:[#allocation5 + $0x308] sm:$0xf] }
  0x8f   :  { %2407 = vmatpush.bf16.msrb.mxu0 %v5453_v29  ;;  %v5549_v29 = vor.u32 %v6476_v38, %v5546_v45  ;;  %v4617_v54 = vor.u32 %v6246_v47, %v4616_v46  ;;  %v6306_v45 = vld [vmem:[#allocation5 + $0x3ac] sm:$0xf0]  ;;  %v5048_v46 = vld [vmem:[#allocation5 + $0x518] sm:$0xf] }
  0x90   :  { %2420 = vmatpush.bf16.msrb.mxu1 %v5645_v61  ;;  %v4928_v61 = vld [vmem:[#allocation5 + $0x428] sm:$0xf]  ;;  %v6354_v47 = vld [vmem:[#allocation5 + $0x52c] sm:$0xf0] }
  0x91   :  { %2445 = vmatpush.bf16.msra.mxu2 %v4521_v57  ;;  %v6426_v57 = vld [vmem:[#allocation5 + $0x76c] sm:$0xf0] }
  0x92   :  { %2458 = vmatpush.bf16.msra.mxu3 %v4713_v63  ;;  %v6324_v63 = vld [vmem:[#allocation5 + $0x43c] sm:$0xf0]  ;;  %v5337_v7 = vor.u32 %v6426_v57, %v5336_v56  ;;  %v5024_v57 = vld [vmem:[#allocation5 + $0x4e8] sm:$0xf] }
  0x93   :  { %2408 = vmatpush.bf16.msrb.mxu0 %v5429_v3  ;;  %v4401_v3 = vor.u32 %v6192_v55, %v4400_v53  ;;  %v4929_v9 = vor.u32 %v6324_v63, %v4928_v61  ;;  %v5240_v53 = vld [vmem:[#allocation5 + $0x698] sm:$0xf]  ;;  %v6300_v56 = vld [vmem:[#allocation5 + $0x37c] sm:$0xf0]  ;;  %v5216_v63 = vld [vmem:[#allocation5 + $0x668] sm:$0xf] }
  0x94   :  { %2421 = vmatpush.bf16.msrb.mxu1 %v5621_v13  ;;  %5735 = vmatmul.msk.bf16.vlgmr.msrb.gmra.mxu2 %vm2212_vm1, %v7104_v18  ;;  %v6420_v13 = vld [vmem:[#allocation5 + $0x73c] sm:$0xf0] }
  0x95   :  { %2446 = vmatpush.bf16.msra.mxu2 %v4497_v8  ;;  %v4593_v8 = vor.u32 %v6240_v60, %v4592_v59  ;;  %v5432_v59 = vld [vmem:[#allocation5 + $0x818] sm:$0xf]  ;;  %v6450_v60 = vld [vmem:[#allocation5 + $0x82c] sm:$0xf0] }
  0x96   :  { %2459 = vmatpush.bf16.msra.mxu3 %v4689_v14  ;;  %v4904_v14 = vld [vmem:[#allocation5 + $0x3f8] sm:$0xf] }
  0x97   :  { %2409 = vmatpush.bf16.msrb.mxu0 %v5405_v17  ;;  %v5096_v17 = vld [vmem:[#allocation5 + $0x578] sm:$0xf]  ;;  %v4905_v23 = vor.u32 %v6318_v16, %v4904_v14  ;;  %v1530_v16 = vunpack.c.l.b16 %v7130_v5 }
  0x98   :  { %2422 = vmatpush.bf16.msrb.mxu1 %v5597_v26  ;;  %v5097_v24 = vor.u32 %v6366_v19, %v5096_v17  ;;  %v6414_v26 = vld [vmem:[#allocation5 + $0x70c] sm:$0xf0] }
  0x99   :  { %2447 = vmatpush.bf16.msra.mxu2 %v4473_v22  ;;  %v5313_v22 = vor.u32 %v6420_v13, %v5312_v11  ;;  %v5408_v11 = vld [vmem:[#allocation5 + $0x7e8] sm:$0xf]  ;;  %v6444_v13 = vld [vmem:[#allocation5 + $0x7fc] sm:$0xf0] }
  0x9a   :  { %2460 = vmatpush.bf16.msra.mxu3 %v4665_v27  ;;  %v4880_v27 = vld [vmem:[#allocation5 + $0x3c8] sm:$0xf] }
  0x9b   :  { %2410 = vmatpush.bf16.msrb.mxu0 %v5381_v31  ;;  %v5072_v31 = vld [vmem:[#allocation5 + $0x548] sm:$0xf]  ;;  %v4881_v37 = vor.u32 %v6312_v30, %v4880_v27  ;;  %v6438_v27 = vld [vmem:[#allocation5 + $0x7cc] sm:$0xf0] }
  0x9c   :  { %2423 = vmatpush.bf16.msrb.mxu1 %v5573_v42  ;;  %v5073_v38 = vor.u32 %v6360_v32, %v5072_v31  ;;  %v6408_v42 = vld [vmem:[#allocation5 + $0x6dc] sm:$0xf0]  ;;  %v6522_v30 = vld [vmem:[#allocation5 + $0xa6c] sm:$0xf0]  ;;  %v1872_v32 = vpack.c.b16 %v1530_v16, %v1530_v16  ;;  %v5648_v16 = vld [vmem:[#allocation5 + $0x9c8] sm:$0xf] }
  0x9d   :  { %2448 = vmatpush.bf16.msra.mxu2 %v4449_v36  ;;  %v5289_v36 = vor.u32 %v6414_v26, %v5288_v25  ;;  %v5265_v50 = vor.u32 %v6408_v42, %v5264_v41  ;;  %v6336_v25 = vld [vmem:[#allocation5 + $0x49c] sm:$0xf0]  ;;  %v5384_v26 = vld [vmem:[#allocation5 + $0x7b8] sm:$0xf]  ;;  %v6231_v42 = vld [vmem:[#allocation5 + $0x15c] sm:$0xf] }
  0x9e   :  { %2461 = vmatpush.bf16.msra.mxu3 %v4641_v43  ;;  %v4856_v43 = vld [vmem:[#allocation5 + $0x398] sm:$0xf] }
  0x9f   :  { %2411 = vmatpush.bf16.msrb.mxu0 %v5357_v48  ;;  %v5456_v48 = vld [vmem:[#allocation5 + $0x848] sm:$0xf] }
  0xa0   :  { %2424 = vmatpush.bf16.msrb.mxu1 %v5549_v29  ;;  %v6402_v29 = vld [vmem:[#allocation5 + $0x6ac] sm:$0xf0]  ;;  %v5457_v55 = vor.u32 %v6456_v49, %v5456_v48  ;;  %v2224_v49 = vsel %vm2216_vm0, %v1872_v32, 0 }
  0xa1   :  { %2449 = vmatpush.bf16.msra.mxu2 %v4425_v51  ;;  %v4857_v51 = vor.u32 %v6306_v45, %v4856_v43  ;;  %v5241_v61 = vor.u32 %v6402_v29, %v5240_v53  ;;  %v4570_v43 = vld [vmem:[#allocation5 + $0x170] sm:$0xf0]  ;;  %v6327_v53 = vld [vmem:[#allocation5 + $0x45c] sm:$0xf]  ;;  %v6498_v32 = vld [vmem:[#allocation5 + $0x9ac] sm:$0xf0] }
  0xa2   :  { %2462 = vmatpush.bf16.msra.mxu3 %v4617_v54  ;;  %2412 = vmatmul.bf16.vlgmr.msrb.gmra.mxu0 %v7112_v40  ;;  %v4832_v54 = vld [vmem:[#allocation5 + $0x368] sm:$0xf]  ;;  %v4762_v45 = vld [vmem:[#allocation5 + $0x2f0] sm:$0xf0] }
  0xa3   :  { %2469 = vmatpush.bf16.msra.mxu0 %v4953_v52  ;;  %2425 = vmatmul.bf16.vlgmr.msrb.gmra.mxu1 %v7110_v39  ;;  %v5049_v52 = vor.u32 %v6354_v47, %v5048_v46  ;;  %v4833_v1 = vor.u32 %v6300_v56, %v4832_v54  ;;  %v5360_v46 = vld [vmem:[#allocation5 + $0x788] sm:$0xf]  ;;  %v6432_v47 = vld [vmem:[#allocation5 + $0x79c] sm:$0xf0]  ;;  %v4954_v29 = vld [vmem:[#allocation5 + $0x470] sm:$0xf0] }
  0xa4   :  { %2482 = vmatpush.bf16.msra.mxu1 %v5145_v58  ;;  %v6348_v58 = vld [vmem:[#allocation5 + $0x4fc] sm:$0xf0]  ;;  %v6225_v56 = vld [vmem:[#allocation5 + $0x12c] sm:$0xf] }
  0xa5   :  { %2450 = vmatpush.bf16.msra.mxu2 %v4401_v3  ;;  %v5025_v2 = vor.u32 %v6348_v58, %v5024_v57  ;;  %v6396_v3 = vld [vmem:[#allocation5 + $0x67c] sm:$0xf0]  ;;  %v4546_v57 = vld [vmem:[#allocation5 + $0x140] sm:$0xf0] }
  0xa6   :  { %2463 = vmatpush.bf16.msra.mxu3 %v4593_v8  ;;  %v6294_v8 = vld [vmem:[#allocation5 + $0x34c] sm:$0xf0]  ;;  %v5217_v14 = vor.u32 %v6396_v3, %v5216_v63  ;;  %v5672_v63 = vld [vmem:[#allocation5 + $0x9f8] sm:$0xf]  ;;  %v6321_v3 = vld [vmem:[#allocation5 + $0x42c] sm:$0xf] }
  0xa7   :  { %2470 = vmatpush.bf16.msra.mxu0 %v4929_v9  ;;  %v5000_v9 = vld [vmem:[#allocation5 + $0x4b8] sm:$0xf]  ;;  %v4809_v17 = vor.u32 %v6294_v8, %v4808_v4  ;;  %v4930_v4 = vld [vmem:[#allocation5 + $0x440] sm:$0xf0]  ;;  %v6219_v8 = vld [vmem:[#allocation5 + $0xfc] sm:$0xf] }
  0xa8   :  { %2483 = vmatpush.bf16.msra.mxu1 %v5121_v10  ;;  %2451 = vmatmul.bf16.vlgmr.msra.gmra.mxu2 %v7094_v0  ;;  %v6342_v10 = vld [vmem:[#allocation5 + $0x4cc] sm:$0xf0] }
  0xa9   :  { %2495 = vmatpush.bf16.msrb.mxu2 %v5337_v7  ;;  %2464 = vmatmul.bf16.vlgmr.msra.gmra.mxu3 %v7099_v12  ;;  %v5433_v7 = vor.u32 %v6450_v60, %v5432_v59  ;;  %v5001_v19 = vor.u32 %v6342_v10, %v5000_v9  ;;  %v6273_v59 = vld [vmem:[#allocation5 + $0x2ac] sm:$0xf]  ;;  %v4738_v60 = vld [vmem:[#allocation5 + $0x2c0] sm:$0xf0]  ;;  %v4522_v9 = vld [vmem:[#allocation5 + $0x110] sm:$0xf0] }
  0xaa   :  { %2508 = vmatpush.bf16.msrb.mxu3 %v5529_v15  ;;  %v5192_v15 = vld [vmem:[#allocation5 + $0x638] sm:$0xf] }
  0xab   :  { %2471 = vmatpush.bf16.msra.mxu0 %v4905_v23  ;;  %v5409_v23 = vor.u32 %v6444_v13, %v5408_v11  ;;  %v5193_v31 = vor.u32 %v6390_v20, %v5192_v15  ;;  %v7136_v10 = vld [vmem:[#allocation7] sm:$0x3f]  ;;  %v4933_v15 = vor.u32 %v6321_v3, %v4930_v4  ;;  %v6297_v4 = vld [vmem:[#allocation5 + $0x36c] sm:$0xf] }
  0xac   :  { %2484 = vmatpush.bf16.msra.mxu1 %v5097_v24  ;;  %v4976_v24 = vld [vmem:[#allocation5 + $0x488] sm:$0xf]  ;;  %v6267_v13 = vld [vmem:[#allocation5 + $0x27c] sm:$0xf] }
  0xad   :  { %2496 = vmatpush.bf16.msrb.mxu2 %v5313_v22  ;;  %v6288_v22 = vld [vmem:[#allocation5 + $0x31c] sm:$0xf0]  ;;  %v4977_v34 = vor.u32 %v6336_v25, %v4976_v24  ;;  %v6315_v20 = vld [vmem:[#allocation5 + $0x3fc] sm:$0xf]  ;;  %v6213_v24 = vld [vmem:[#allocation5 + $0xcc] sm:$0xf] }
  0xae   :  { %2509 = vmatpush.bf16.msrb.mxu3 %v5505_v28  ;;  %v5720_v28 = vld [vmem:[#allocation5 + $0xa58] sm:$0xf]  ;;  %v4785_v33 = vor.u32 %v6288_v22, %v4784_v21  ;;  %v4906_v21 = vld [vmem:[#allocation5 + $0x410] sm:$0xf0]  ;;  %v505_v22 = vperm.slane %v7136_v10, 0 }
  0xaf   :  { %2472 = vmatpush.bf16.msra.mxu0 %v4881_v37  ;;  %v6384_v37 = vld [vmem:[#allocation5 + $0x61c] sm:$0xf0]  ;;  %v5721_v41 = vor.u32 %v6522_v30, %v5720_v28  ;;  %v4498_v25 = vld [vmem:[#allocation5 + $0xe0] sm:$0xf0]  ;;  %v4909_v30 = vor.u32 %v6315_v20, %v4906_v21  ;;  %v5552_v20 = vld [vmem:[#allocation5 + $0x908] sm:$0xf] }
  0xb0   :  { %2485 = vmatpush.bf16.msra.mxu1 %v5073_v38  ;;  %v5385_v38 = vor.u32 %v6438_v27, %v5384_v26  ;;  %v6261_v27 = vld [vmem:[#allocation5 + $0x24c] sm:$0xf]  ;;  %v4690_v28 = vld [vmem:[#allocation5 + $0x260] sm:$0xf0]  ;;  %v6480_v21 = vld [vmem:[#allocation5 + $0x91c] sm:$0xf0] }
  0xb1   :  { %2497 = vmatpush.bf16.msrb.mxu2 %v5289_v36  ;;  %v5168_v36 = vld [vmem:[#allocation5 + $0x608] sm:$0xf] }
  0xb2   :  { %2510 = vmatpush.bf16.msrb.mxu3 %v5481_v44  ;;  %v6279_v44 = vld [vmem:[#allocation5 + $0x2dc] sm:$0xf]  ;;  %v5169_v48 = vor.u32 %v6384_v37, %v5168_v36  ;;  %v6309_v36 = vld [vmem:[#allocation5 + $0x3cc] sm:$0xf]  ;;  %v4882_v37 = vld [vmem:[#allocation5 + $0x3e0] sm:$0xf0] }
  0xb3   :  { %2473 = vmatpush.bf16.msra.mxu0 %v4857_v51  ;;  %v6516_v51 = vld [vmem:[#allocation5 + $0xa3c] sm:$0xf0]  ;;  %v4765_v54 = vor.u32 %v6279_v44, %v4762_v45  ;;  %v6255_v45 = vld [vmem:[#allocation5 + $0x21c] sm:$0xf] }
  0xb4   :  { %2486 = vmatpush.bf16.msra.mxu1 %v5049_v52  ;;  %v4573_v52 = vor.u32 %v6231_v42, %v4570_v43  ;;  %v6207_v42 = vld [vmem:[#allocation5 + $0x9c] sm:$0xf]  ;;  %v4474_v43 = vld [vmem:[#allocation5 + $0xb0] sm:$0xf0] }
  0xb5   :  { %2498 = vmatpush.bf16.msrb.mxu2 %v5265_v50  ;;  %v5696_v50 = vld [vmem:[#allocation5 + $0xa28] sm:$0xf] }
  0xb6   :  { %2511 = vmatpush.bf16.msrb.mxu3 %v5457_v55  ;;  %v5361_v55 = vor.u32 %v6432_v47, %v5360_v46  ;;  %v5697_v58 = vor.u32 %v6516_v51, %v5696_v50  ;;  %v4666_v46 = vld [vmem:[#allocation5 + $0x230] sm:$0xf0]  ;;  %v4885_v47 = vor.u32 %v6309_v36, %v4882_v37  ;;  %v4477_v51 = vor.u32 %v6207_v42, %v4474_v43  ;;  %v4594_v36 = vld [vmem:[#allocation5 + $0x1a0] sm:$0xf0]  ;;  %v6423_v37 = vld [vmem:[#allocation5 + $0x75c] sm:$0xf] }
  0xb7   :  { %2474 = vmatpush.bf16.msra.mxu0 %v4833_v1  ;;  %v6510_v1 = vld [vmem:[#allocation5 + $0xa0c] sm:$0xf0]  ;;  %v6471_v43 = vld [vmem:[#allocation5 + $0x8dc] sm:$0xf] }
  0xb8   :  { %2487 = vmatpush.bf16.msra.mxu1 %v5025_v2  ;;  %v4549_v2 = vor.u32 %v6225_v56, %v4546_v57  ;;  %v5673_v11 = vor.u32 %v6510_v1, %v5672_v63  ;;  %v4450_v56 = vld [vmem:[#allocation5 + $0x80] sm:$0xf0]  ;;  %v6486_v63 = vld [vmem:[#allocation5 + $0x94c] sm:$0xf0] }
  0xb9   :  { %2499 = vmatpush.bf16.msrb.mxu2 %v5241_v61  ;;  %v4957_v61 = vor.u32 %v6327_v53, %v4954_v29  ;;  %v4858_v53 = vld [vmem:[#allocation5 + $0x3b0] sm:$0xf0] }
  0xba   :  { %2512 = vmatpush.bf16.msrb.mxu3 %v5433_v7  ;;  %v4741_v7 = vor.u32 %v6273_v59, %v4738_v60  ;;  %v4642_v59 = vld [vmem:[#allocation5 + $0x200] sm:$0xf0] }
  0xbb   :  { %2475 = vmatpush.bf16.msra.mxu0 %v4809_v17  ;;  %v6504_v17 = vld [vmem:[#allocation5 + $0x9dc] sm:$0xf0] }
  0xbc   :  { %2488 = vmatpush.bf16.msra.mxu1 %v5001_v19  ;;  %v4525_v19 = vor.u32 %v6219_v8, %v4522_v9  ;;  %v5649_v26 = vor.u32 %v6504_v17, %v5648_v16  ;;  %v6243_v16 = vld [vmem:[#allocation5 + $0x1bc] sm:$0xf]  ;;  %v4618_v17 = vld [vmem:[#allocation5 + $0x1d0] sm:$0xf0] }
  0xbd   :  { %2500 = vmatpush.bf16.msrb.mxu2 %v5217_v14  ;;  %v4714_v14 = vld [vmem:[#allocation5 + $0x290] sm:$0xf0] }
  0xbe   :  { %2513 = vmatpush.bf16.msrb.mxu3 %v5409_v23  ;;  %v4717_v23 = vor.u32 %v6267_v13, %v4714_v14  ;;  %v4426_v13 = vld [vmem:[#allocation5 + $0x50] sm:$0xf0] }
  0xbf   :  { %2476 = vmatpush.bf16.msra.mxu0 %v4785_v33  ;;  %v2244_v33 = vpop.f32.mrf.mxu0 }
  0xc0   :  { %2489 = vmatpush.bf16.msra.mxu1 %v4977_v34  ;;  %v4501_v34 = vor.u32 %v6213_v24, %v4498_v25  ;;  %v2257_v50 = vpop.f32.mrf.mxu1 }
  0xc1   :  { %2501 = vmatpush.bf16.msrb.mxu2 %v5193_v31  ;;  %v5624_v31 = vld [vmem:[#allocation5 + $0x998] sm:$0xf] }
  0xc2   :  { %2514 = vmatpush.bf16.msrb.mxu3 %v5385_v38  ;;  %2477 = vmatmul.bf16.vlgmr.msra.gmra.mxu0 %v7096_v6  ;;  %v2245_v38 = vadd.f32 %v2244_v33, %v505_v22  ;;  %v5625_v44 = vor.u32 %v6498_v32, %v5624_v31  ;;  %v6291_v22 = vld [vmem:[#allocation5 + $0x33c] sm:$0xf]  ;;  %v6189_v31 = vld [vmem:[#allocation5 + $0xc] sm:$0xf]  ;;  %v4402_v32 = vld [vmem:[#allocation5 + $0x20] sm:$0xf0] }
  0xc3   :  { %2521 = vmatpush.bf16.msrb.mxu0 %v5721_v41  ;;  %2490 = vmatmul.bf16.vlgmr.msra.gmra.mxu1 %v7092_v62  ;;  %v4693_v41 = vor.u32 %v6261_v27, %v4690_v28  ;;  %v6375_v27 = vld [vmem:[#allocation5 + $0x5dc] sm:$0xf]  ;;  %v5146_v28 = vld [vmem:[#allocation5 + $0x5f0] sm:$0xf0]  ;;  %v6237_v33 = vld [vmem:[#allocation5 + $0x18c] sm:$0xf] }
  0xc4   :  { %2541 = vmatpush.bf16.msrb.mxu1 %v2224_v49  ;;  %v6492_v49 = vld [vmem:[#allocation5 + $0x97c] sm:$0xf0]  ;;  %v2258_v29 = vadd.f32 %v2257_v50, %v2245_v38  ;;  %v5338_v38 = vld [vmem:[#allocation5 + $0x770] sm:$0xf0]  ;;  %v5149_v42 = vor.u32 %v6375_v27, %v5146_v28  ;;  %v5122_v50 = vld [vmem:[#allocation5 + $0x5c0] sm:$0xf0] }
  0xc5   :  { %2502 = vmatpush.bf16.msrb.mxu2 %v5169_v48  ;;  %v5600_v48 = vld [vmem:[#allocation5 + $0x968] sm:$0xf]  ;;  %v5266_v28 = vld [vmem:[#allocation5 + $0x6e0] sm:$0xf0] }
  0xc6   :  { %2515 = vmatpush.bf16.msrb.mxu3 %v5361_v55  ;;  %v6201_v55 = vld [vmem:[#allocation5 + $0x6c] sm:$0xf]  ;;  %v5601_v57 = vor.u32 %v6492_v49, %v5600_v48  ;;  %v4786_v48 = vld [vmem:[#allocation5 + $0x320] sm:$0xf0] }
  0xc7   :  { %2522 = vmatpush.bf16.msrb.mxu0 %v5697_v58  ;;  %v6249_v58 = vld [vmem:[#allocation5 + $0x1ec] sm:$0xf]  ;;  %v4453_v3 = vor.u32 %v6201_v55, %v4450_v56  ;;  %v2270_v8 = vpop.f32.mrf.mxu2 }
  0xc8   :  { %2547 = vmatpush.bf16.msra.mxu1 %v4573_v52  ;;  %2503 = vmatmul.bf16.vlgmr.msrb.gmra.mxu2 %v7108_v35  ;;  %v6303_v52 = vld [vmem:[#allocation5 + $0x39c] sm:$0xf]  ;;  %v2283_v1 = vpop.f32.mrf.mxu3  ;;  %v4645_v9 = vor.u32 %v6249_v58, %v4642_v59  ;;  %v2271_v14 = vadd.f32 %v2270_v8, %v2258_v29  ;;  %v6369_v49 = vld [vmem:[#allocation5 + $0x5ac] sm:$0xf]  ;;  %v5722_v29 = vld [vmem:[#allocation5 + $0xa70] sm:$0xf0] }
  0xc9   :  { %2560 = vmatpush.bf16.msra.mxu2 %v4765_v54  ;;  %2516 = vmatmul.bf16.vlgmr.msrb.gmra.mxu3 %v7112_v40  ;;  %v4669_v54 = vor.u32 %v6255_v45, %v4666_v46  ;;  %v4861_v60 = vor.u32 %v6303_v52, %v4858_v53  ;;  %v6285_v45 = vld [vmem:[#allocation5 + $0x30c] sm:$0xf]  ;;  %v4597_v52 = vor.u32 %v6237_v33, %v4594_v36  ;;  %v6519_v53 = vld [vmem:[#allocation5 + $0xa5c] sm:$0xf]  ;;  %v5314_v59 = vld [vmem:[#allocation5 + $0x740] sm:$0xf0] }
  0xca   :  { %2573 = vmatpush.bf16.msra.mxu3 %v4957_v61  ;;  %v5576_v61 = vld [vmem:[#allocation5 + $0x938] sm:$0xf]  ;;  %v7143_v24 = vadd.f32 %v2283_v1, %v2271_v14  ;;  %v6417_v56 = vld [vmem:[#allocation5 + $0x72c] sm:$0xf]  ;;  %v5125_v58 = vor.u32 %v6369_v49, %v5122_v50  ;;  %v6363_v1 = vld [vmem:[#allocation5 + $0x57c] sm:$0xf] }
  0xcb   :  { %2523 = vmatpush.bf16.msrb.mxu0 %v5673_v11  ;;  %v6195_v11 = vld [vmem:[#allocation5 + $0x3c] sm:$0xf]  ;;  %v5434_v50 = vld [vmem:[#allocation5 + $0x830] sm:$0xf0] }
  0xcc   :  { %2548 = vmatpush.bf16.msra.mxu1 %v4549_v2  ;;  %v2246_v2 = vpop.f32.mrf.mxu0  ;;  %v4429_v25 = vor.u32 %v6195_v11, %v4426_v13  ;;  %v5290_v13 = vld [vmem:[#allocation5 + $0x710] sm:$0xf0]  ;;  %v6459_v14 = vld [vmem:[#allocation5 + $0x87c] sm:$0xf] }
  0xcd   :  { %2561 = vmatpush.bf16.msra.mxu2 %v4741_v7  ;;  %v4834_v7 = vld [vmem:[#allocation5 + $0x380] sm:$0xf0]  ;;  %v5098_v2 = vld [vmem:[#allocation5 + $0x590] sm:$0xf0]  ;;  %v6447_v49 = vld [vmem:[#allocation5 + $0x81c] sm:$0xf] }
  0xce   :  { %2574 = vmatpush.bf16.msra.mxu3 %v4933_v15  ;;  %v5577_v15 = vor.u32 %v6486_v63, %v5576_v61  ;;  %v5506_v61 = vld [vmem:[#allocation5 + $0x8c0] sm:$0xf0]  ;;  %v5725_v63 = vor.u32 %v6519_v53, %v5722_v29  ;;  %v5101_v11 = vor.u32 %v6363_v1, %v5098_v2  ;;  %v6495_v53 = vld [vmem:[#allocation5 + $0x99c] sm:$0xf]  ;;  %v5626_v29 = vld [vmem:[#allocation5 + $0x9b0] sm:$0xf0] }
  0xcf   :  { %2524 = vmatpush.bf16.msrb.mxu0 %v5649_v26  ;;  %v4810_v26 = vld [vmem:[#allocation5 + $0x350] sm:$0xf0] }
  0xd0   :  { %2549 = vmatpush.bf16.msra.mxu1 %v4525_v19  ;;  %v4837_v19 = vor.u32 %v6297_v4, %v4834_v7  ;;  %v2285_v46 = vpop.f32.mrf.mxu3  ;;  %v5698_v4 = vld [vmem:[#allocation5 + $0xa40] sm:$0xf0]  ;;  %v5317_v7 = vor.u32 %v6417_v56, %v5314_v59  ;;  %v5437_v56 = vor.u32 %v6447_v49, %v5434_v50  ;;  %v6331_v49 = vld [vmem:[#allocation5 + $0x474] sm:$0xf0] }
  0xd1   :  { %2562 = vmatpush.bf16.msra.mxu2 %v4717_v23  ;;  %v2259_v23 = vpop.f32.mrf.mxu1  ;;  %v6399_v46 = vld [vmem:[#allocation5 + $0x69c] sm:$0xf] }
  0xd2   :  { %2575 = vmatpush.bf16.msra.mxu3 %v4909_v30  ;;  %v4621_v30 = vor.u32 %v6243_v16, %v4618_v17  ;;  %v6357_v17 = vld [vmem:[#allocation5 + $0x54c] sm:$0xf] }
  0xd3   :  { %2525 = vmatpush.bf16.msrb.mxu0 %v5625_v44  ;;  %5736 = vmatmul.msk.bf16.vlgmr.msrb.gmra.mxu1 %vm2212_vm1, %v7104_v18  ;;  %v5530_v44 = vld [vmem:[#allocation5 + $0x8f0] sm:$0xf0] }
  0xd4   :  { %2550 = vmatpush.bf16.msra.mxu1 %v4501_v34  ;;  %v5553_v34 = vor.u32 %v6480_v21, %v5552_v20  ;;  %v5533_v55 = vor.u32 %v6471_v43, %v5530_v44  ;;  %v6507_v20 = vld [vmem:[#allocation5 + $0x9fc] sm:$0xf]  ;;  %v5674_v21 = vld [vmem:[#allocation5 + $0xa10] sm:$0xf0] }
  0xd5   :  { %2563 = vmatpush.bf16.msra.mxu2 %v4693_v41  ;;  %v4813_v41 = vor.u32 %v6291_v22, %v4810_v26  ;;  %v5677_v36 = vor.u32 %v6507_v20, %v5674_v21  ;;  %v5194_v20 = vld [vmem:[#allocation5 + $0x650] sm:$0xf0]  ;;  %v6435_v21 = vld [vmem:[#allocation5 + $0x7bc] sm:$0xf] }
  0xd6   :  { %2576 = vmatpush.bf16.msra.mxu3 %v4885_v47  ;;  %v4405_v47 = vor.u32 %v6189_v31, %v4402_v32  ;;  %v5458_v31 = vld [vmem:[#allocation5 + $0x860] sm:$0xf0] }
  0xd7   :  { %2526 = vmatpush.bf16.msrb.mxu0 %v5601_v57  ;;  %v4789_v57 = vor.u32 %v6285_v45, %v4786_v48  ;;  %v5242_v48 = vld [vmem:[#allocation5 + $0x6b0] sm:$0xf0] }
  0xd8   :  { %2551 = vmatpush.bf16.msra.mxu1 %v4477_v51  ;;  %v2272_v51 = vpop.f32.mrf.mxu2  ;;  %v2335_v32 = vpop.f32.mrf.mxu3 }
  0xd9   :  { %2564 = vmatpush.bf16.msra.mxu2 %v4669_v54  ;;  %v5341_v54 = vor.u32 %v6423_v37, %v5338_v38  ;;  %v6351_v37 = vld [vmem:[#allocation5 + $0x51c] sm:$0xf]  ;;  %v5050_v38 = vld [vmem:[#allocation5 + $0x530] sm:$0xf0] }
  0xda   :  { %2577 = vmatpush.bf16.msra.mxu3 %v4861_v60  ;;  %v6465_v60 = vld [vmem:[#allocation5 + $0x8ac] sm:$0xf] }
  0xdb   :  { %2527 = vmatpush.bf16.msrb.mxu0 %v5577_v15  ;;  %v5509_v8 = vor.u32 %v6465_v60, %v5506_v61  ;;  %v5482_v15 = vld [vmem:[#allocation5 + $0x890] sm:$0xf0]  ;;  %v5218_v60 = vld [vmem:[#allocation5 + $0x680] sm:$0xf0]  ;;  %v6441_v61 = vld [vmem:[#allocation5 + $0x7ec] sm:$0xf] }
  0xdc   :  { %2552 = vmatpush.bf16.msra.mxu1 %v4453_v3  ;;  %v6513_v3 = vld [vmem:[#allocation5 + $0xa2c] sm:$0xf]  ;;  %v5485_v23 = vor.u32 %v6459_v14, %v5482_v15  ;;  %v5602_v14 = vld [vmem:[#allocation5 + $0x980] sm:$0xf0] }
  0xdd   :  { %2565 = vmatpush.bf16.msra.mxu2 %v4645_v9  ;;  %v6411_v9 = vld [vmem:[#allocation5 + $0x6fc] sm:$0xf]  ;;  %v5701_v16 = vor.u32 %v6513_v3, %v5698_v4  ;;  %v5629_v3 = vor.u32 %v6495_v53, %v5626_v29  ;;  %v5152_v29 = vld [vmem:[#allocation5 + $0x5e0] sm:$0xf] }
  0xde   :  { %2578 = vmatpush.bf16.msra.mxu3 %v4837_v19  ;;  %v5074_v19 = vld [vmem:[#allocation5 + $0x560] sm:$0xf0]  ;;  %v5293_v22 = vor.u32 %v6411_v9, %v5290_v13  ;;  %v6339_v4 = vld [vmem:[#allocation5 + $0x4bc] sm:$0xf]  ;;  %v6489_v13 = vld [vmem:[#allocation5 + $0x96c] sm:$0xf] }
  0xdf   :  { %2528 = vmatpush.bf16.msrb.mxu0 %v5553_v34  ;;  %v2296_v26 = vpop.f32.mrf.mxu0  ;;  %v5077_v27 = vor.u32 %v6357_v17, %v5074_v19  ;;  %v6387_v17 = vld [vmem:[#allocation5 + $0x63c] sm:$0xf] }
  0xe0   :  { %2553 = vmatpush.bf16.msra.mxu1 %v4429_v25  ;;  %v6405_v25 = vld [vmem:[#allocation5 + $0x6cc] sm:$0xf]  ;;  %v2297_v33 = vadd.f32 %v2296_v26, %v7143_v24  ;;  %v2309_v34 = vpop.f32.mrf.mxu1  ;;  %v2337_v1 = vpop.f32.mrf.mxu3  ;;  %v4978_v26 = vld [vmem:[#allocation5 + $0x4a0] sm:$0xf0] }
  0xe1   :  { %2566 = vmatpush.bf16.msra.mxu2 %v4621_v30  ;;  %v6453_v30 = vld [vmem:[#allocation5 + $0x84c] sm:$0xf]  ;;  %v5269_v44 = vor.u32 %v6405_v25, %v5266_v28  ;;  %v5578_v28 = vld [vmem:[#allocation5 + $0x950] sm:$0xf0]  ;;  %v6325_v1 = vld [vmem:[#allocation5 + $0x444] sm:$0xf0] }
  0xe2   :  { %2579 = vmatpush.bf16.msra.mxu3 %v4813_v41  ;;  %2529 = vmatmul.bf16.vlgmr.msrb.gmra.mxu0 %v7110_v39  ;;  %v6501_v41 = vld [vmem:[#allocation5 + $0x9cc] sm:$0xf]  ;;  %v2310_v43 = vadd.f32 %v2309_v34, %v2297_v33  ;;  %v5461_v45 = vor.u32 %v6453_v30, %v5458_v31  ;;  %v5197_v30 = vor.u32 %v6387_v17, %v5194_v20  ;;  %v5170_v33 = vld [vmem:[#allocation5 + $0x620] sm:$0xf0]  ;;  %v4720_v17 = vld [vmem:[#allocation5 + $0x280] sm:$0xf] }
  0xe3   :  { %2586 = vmatpush.bf16.msra.mxu0 %v5149_v42  ;;  %v5650_v42 = vld [vmem:[#allocation5 + $0x9e0] sm:$0xf0]  ;;  %v6345_v24 = vld [vmem:[#allocation5 + $0x4ec] sm:$0xf]  ;;  %v4912_v20 = vld [vmem:[#allocation5 + $0x400] sm:$0xf] }
  0xe4   :  { %2554 = vmatpush.bf16.msra.mxu1 %v4405_v47  ;;  %v5053_v47 = vor.u32 %v6351_v37, %v5050_v38  ;;  %v5653_v51 = vor.u32 %v6501_v41, %v5650_v42  ;;  %v6333_v25 = vld [vmem:[#allocation5 + $0x48c] sm:$0xf]  ;;  %v5362_v38 = vld [vmem:[#allocation5 + $0x7a0] sm:$0xf0]  ;;  %v4576_v41 = vld [vmem:[#allocation5 + $0x160] sm:$0xf] }
  0xe5   :  { %2567 = vmatpush.bf16.msra.mxu2 %v4597_v52  ;;  %v5026_v52 = vld [vmem:[#allocation5 + $0x500] sm:$0xf0]  ;;  %v6429_v37 = vld [vmem:[#allocation5 + $0x78c] sm:$0xf] }
  0xe6   :  { %2580 = vmatpush.bf16.msra.mxu3 %v4789_v57  ;;  %v6393_v57 = vld [vmem:[#allocation5 + $0x66c] sm:$0xf]  ;;  %v5029_v59 = vor.u32 %v6345_v24, %v5026_v52  ;;  %v5554_v24 = vld [vmem:[#allocation5 + $0x920] sm:$0xf0]  ;;  %v5365_v52 = vor.u32 %v6429_v37, %v5362_v38  ;;  %v4888_v37 = vld [vmem:[#allocation5 + $0x3d0] sm:$0xf] }
  0xe7   :  { %2587 = vmatpush.bf16.msra.mxu0 %v5125_v58  ;;  %2555 = vmatmul.bf16.vlgmr.msra.gmra.mxu1 %v7094_v0  ;;  %v2298_v2 = vpop.f32.mrf.mxu0  ;;  %v5221_v15 = vor.u32 %v6393_v57, %v5218_v60  ;;  %v4552_v57 = vld [vmem:[#allocation5 + $0x130] sm:$0xf]  ;;  %v6313_v38 = vld [vmem:[#allocation5 + $0x3e4] sm:$0xf0] }
  0xe8   :  { %2599 = vmatpush.bf16.msrb.mxu1 %v5341_v54  ;;  %2568 = vmatmul.bf16.vlgmr.msra.gmra.mxu2 %v7099_v12  ;;  %v2322_v54 = vpop.f32.mrf.mxu2  ;;  %v2311_v9 = vpop.f32.mrf.mxu1  ;;  %v4744_v60 = vld [vmem:[#allocation5 + $0x2b0] sm:$0xf] }
  0xe9   :  { %2612 = vmatpush.bf16.msrb.mxu2 %v5533_v55  ;;  %2581 = vmatmul.bf16.vlgmr.msra.gmra.mxu3 %v7096_v6  ;;  %v5245_v55 = vor.u32 %v6399_v46, %v5242_v48  ;;  %v2323_v58 = vadd.f32 %v2322_v54, %v2310_v43  ;;  %v4768_v46 = vld [vmem:[#allocation5 + $0x2e0] sm:$0xf]  ;;  %v6379_v54 = vld [vmem:[#allocation5 + $0x5f4] sm:$0xf0] }
  0xea   :  { %2625 = vmatpush.bf16.msrb.mxu3 %v5725_v63  ;;  %v5410_v63 = vld [vmem:[#allocation5 + $0x800] sm:$0xf0]  ;;  %v4960_v48 = vld [vmem:[#allocation5 + $0x460] sm:$0xf]  ;;  %v5153_v2 = vor.u32 %v6379_v54, %v5152_v29 }
  0xeb   :  { %2588 = vmatpush.bf16.msra.mxu0 %v5101_v11  ;;  %v7151_v11 = vadd.f32 %v2335_v32, %v2323_v58  ;;  %v6381_v32 = vld [vmem:[#allocation5 + $0x60c] sm:$0xf]  ;;  %v6229_v58 = vld [vmem:[#allocation5 + $0x144] sm:$0xf0] }
  0xec   :  { %2600 = vmatpush.bf16.msrb.mxu1 %v5317_v7  ;;  %v5002_v7 = vld [vmem:[#allocation5 + $0x4d0] sm:$0xf0]  ;;  %v2348_v42 = vpop.f32.mrf.mxu3  ;;  %v5173_v50 = vor.u32 %v6381_v32, %v5170_v33  ;;  %v4696_v32 = vld [vmem:[#allocation5 + $0x250] sm:$0xf]  ;;  %v6265_v33 = vld [vmem:[#allocation5 + $0x264] sm:$0xf0] }
  0xed   :  { %2613 = vmatpush.bf16.msrb.mxu2 %v5509_v8  ;;  %v1531_v8 = vunpack.c.h.b16 %v7130_v5  ;;  %v5005_v19 = vor.u32 %v6339_v4, %v5002_v7  ;;  %v4553_v4 = vor.u32 %v6229_v58, %v4552_v57  ;;  %v5128_v7 = vld [vmem:[#allocation5 + $0x5b0] sm:$0xf] }
  0xee   :  { %2626 = vmatpush.bf16.msrb.mxu3 %v5701_v16  ;;  %v5413_v16 = vor.u32 %v6441_v61, %v5410_v63  ;;  %v6277_v61 = vld [vmem:[#allocation5 + $0x2c4] sm:$0xf0]  ;;  %v4936_v63 = vld [vmem:[#allocation5 + $0x430] sm:$0xf] }
  0xef   :  { %2589 = vmatpush.bf16.msra.mxu0 %v5077_v27  ;;  %v1873_v5 = vpack.c.b16 %v1531_v8, %v1531_v8  ;;  %v6483_v27 = vld [vmem:[#allocation5 + $0x93c] sm:$0xf]  ;;  %v6373_v8 = vld [vmem:[#allocation5 + $0x5c4] sm:$0xf0] }
  0xf0   :  { %2601 = vmatpush.bf16.msrb.mxu1 %v5293_v22  ;;  %v5386_v22 = vld [vmem:[#allocation5 + $0x7d0] sm:$0xf0]  ;;  %v2324_v34 = vpop.f32.mrf.mxu2  ;;  %v5581_v43 = vor.u32 %v6483_v27, %v5578_v28  ;;  %v4504_v28 = vld [vmem:[#allocation5 + $0xd0] sm:$0xf] }
  0xf1   :  { %2614 = vmatpush.bf16.msrb.mxu2 %v5485_v23  ;;  %v5605_v23 = vor.u32 %v6489_v13, %v5602_v14  ;;  %v5389_v31 = vor.u32 %v6435_v21, %v5386_v22  ;;  %v4745_v13 = vor.u32 %v6277_v61, %v4744_v60  ;;  %v4528_v14 = vld [vmem:[#allocation5 + $0x100] sm:$0xf]  ;;  %v6319_v21 = vld [vmem:[#allocation5 + $0x414] sm:$0xf0]  ;;  %v6205_v60 = vld [vmem:[#allocation5 + $0x84] sm:$0xf0] }
  0xf2   :  { %2627 = vmatpush.bf16.msrb.mxu3 %v5677_v36  ;;  %v4981_v36 = vor.u32 %v6333_v25, %v4978_v26  ;;  %v5104_v26 = vld [vmem:[#allocation5 + $0x580] sm:$0xf] }
  0xf3   :  { %2590 = vmatpush.bf16.msra.mxu0 %v5053_v47  ;;  %v6283_v47 = vld [vmem:[#allocation5 + $0x2f4] sm:$0xf0] }
  0xf4   :  { %2602 = vmatpush.bf16.msrb.mxu1 %v5269_v44  ;;  %v2227_v44 = vsel %vm2216_vm0, %v1873_v5, 0  ;;  %v2350_v9 = vpop.f32.mrf.mxu3  ;;  %v6367_v5 = vld [vmem:[#allocation5 + $0x594] sm:$0xf0] }
  0xf5   :  { %2615 = vmatpush.bf16.msrb.mxu2 %v5461_v45  ;;  %v6235_v45 = vld [vmem:[#allocation5 + $0x174] sm:$0xf0] }
  0xf6   :  { %2628 = vmatpush.bf16.msrb.mxu3 %v5653_v51  ;;  %v6477_v51 = vld [vmem:[#allocation5 + $0x90c] sm:$0xf]  ;;  %v4577_v53 = vor.u32 %v6235_v45, %v4576_v41  ;;  %v5105_v41 = vor.u32 %v6367_v5, %v5104_v26  ;;  %v6361_v45 = vld [vmem:[#allocation5 + $0x564] sm:$0xf0]  ;;  %v7163_v26 = vld [vmem:[#allocation5 + $0xa90] sm:$0x11] }
  0xf7   :  { %2591 = vmatpush.bf16.msra.mxu0 %v5029_v59  ;;  %v5557_v59 = vor.u32 %v6477_v51, %v5554_v24  ;;  %v4672_v51 = vld [vmem:[#allocation5 + $0x220] sm:$0xf]  ;;  %v6259_v24 = vld [vmem:[#allocation5 + $0x234] sm:$0xf0] }
  0xf8   :  { %2603 = vmatpush.bf16.msrb.mxu1 %v5245_v55  ;;  %v4769_v55 = vor.u32 %v6283_v47, %v4768_v46  ;;  %v4697_v46 = vor.u32 %v6265_v33, %v4696_v32  ;;  %v4480_v47 = vld [vmem:[#allocation5 + $0xa0] sm:$0xf]  ;;  %v4673_v57 = vor.u32 %v6259_v24, %v4672_v51  ;;  %v6193_v32 = vld [vmem:[#allocation5 + $0x24] sm:$0xf0] }
  0xf9   :  { %2616 = vmatpush.bf16.msrb.mxu2 %v5437_v56  ;;  %v4961_v56 = vor.u32 %v6331_v49, %v4960_v48  ;;  %v6211_v48 = vld [vmem:[#allocation5 + $0xb4] sm:$0xf0]  ;;  %v4816_v5 = vld [vmem:[#allocation5 + $0x340] sm:$0xf] }
  0xfa   :  { %2629 = vmatpush.bf16.msrb.mxu3 %v5629_v3  ;;  %v506_v3 = vperm.slane %v7136_v10, 1  ;;  %v4481_v54 = vor.u32 %v6211_v48, %v4480_v47  ;;  %v5008_v33 = vld [vmem:[#allocation5 + $0x4c0] sm:$0xf]  ;;  %v6427_v47 = vld [vmem:[#allocation5 + $0x774] sm:$0xf0] }
  0xfb   :  { %2592 = vmatpush.bf16.msra.mxu0 %v5005_v19  ;;  %v6271_v19 = vld [vmem:[#allocation5 + $0x294] sm:$0xf0]  ;;  %v5536_v48 = vld [vmem:[#allocation5 + $0x8e0] sm:$0xf] }
  0xfc   :  { %2604 = vmatpush.bf16.msrb.mxu1 %v5221_v15  ;;  %v6223_v15 = vld [vmem:[#allocation5 + $0x114] sm:$0xf0]  ;;  %v2349_v22 = vadd.f32 %v2348_v42, %v506_v3  ;;  %v4721_v27 = vor.u32 %v6271_v19, %v4720_v17  ;;  %v4432_v17 = vld [vmem:[#allocation5 + $0x40] sm:$0xf] }
  0xfd   :  { %2617 = vmatpush.bf16.msrb.mxu2 %v5413_v16  ;;  %v4937_v16 = vor.u32 %v6325_v1, %v4936_v63  ;;  %v4529_v25 = vor.u32 %v6223_v15, %v4528_v14  ;;  %v4648_v63 = vld [vmem:[#allocation5 + $0x1f0] sm:$0xf]  ;;  %v6253_v1 = vld [vmem:[#allocation5 + $0x204] sm:$0xf0]  ;;  %v6199_v19 = vld [vmem:[#allocation5 + $0x54] sm:$0xf0] }
  0xfe   :  { %2630 = vmatpush.bf16.msrb.mxu3 %v5605_v23  ;;  %v5129_v23 = vor.u32 %v6373_v8, %v5128_v7  ;;  %v4840_v7 = vld [vmem:[#allocation5 + $0x370] sm:$0xf]  ;;  %v6301_v8 = vld [vmem:[#allocation5 + $0x384] sm:$0xf0] }
  0xff   :  { %2593 = vmatpush.bf16.msra.mxu0 %v4981_v36  ;;  %v2361_v34 = vpop.f32.mrf.mxu0  ;;  %v5032_v14 = vld [vmem:[#allocation5 + $0x4f0] sm:$0xf]  ;;  %v6349_v15 = vld [vmem:[#allocation5 + $0x504] sm:$0xf0] }
 0x100   :  { %2605 = vmatpush.bf16.msrb.mxu1 %v5197_v30  ;;  %v6217_v30 = vld [vmem:[#allocation5 + $0xe4] sm:$0xf0]  ;;  %v2374_v36 = vpop.f32.mrf.mxu1  ;;  %v2362_v42 = vadd.f32 %v2361_v34, %v2349_v22  ;;  %v4624_v22 = vld [vmem:[#allocation5 + $0x1c0] sm:$0xf]  ;;  %v6343_v34 = vld [vmem:[#allocation5 + $0x4d4] sm:$0xf0] }
 0x101   :  { %2618 = vmatpush.bf16.msrb.mxu2 %v5389_v31  ;;  %v4913_v31 = vor.u32 %v6319_v21, %v4912_v20  ;;  %v4841_v21 = vor.u32 %v6301_v8, %v4840_v7  ;;  %v5009_v51 = vor.u32 %v6343_v34, %v5008_v33  ;;  %v6517_v7 = vld [vmem:[#allocation5 + $0xa44] sm:$0xf0]  ;;  %v6232_v8 = vld [vmem:[#allocation5 + $0x164] sm:$0xf]  ;;  %v5272_v34 = vld [vmem:[#allocation5 + $0x6d0] sm:$0xf] }
 0x102   :  { %2631 = vmatpush.bf16.msrb.mxu3 %v5581_v43  ;;  %2594 = vmatmul.bf16.vlgmr.msra.gmra.mxu0 %v7092_v62  ;;  %v4505_v43 = vor.u32 %v6217_v30, %v4504_v28  ;;  %v2375_v49 = vadd.f32 %v2374_v36, %v2362_v42  ;;  %v4408_v28 = vld [vmem:[#allocation5 + $0x10] sm:$0xf]  ;;  %v5033_v30 = vor.u32 %v6349_v15, %v5032_v14 }
 0x103   :  { %2645 = vmatpush.bf16.msrb.mxu0 %v2227_v44  ;;  %v5080_v44 = vld [vmem:[#allocation5 + $0x550] sm:$0xf]  ;;  %v4409_v24 = vor.u32 %v6193_v32, %v4408_v28  ;;  %v6226_v28 = vld [vmem:[#allocation5 + $0x134] sm:$0xf] }
 0x104   :  { %2606 = vmatpush.bf16.msrb.mxu1 %v5173_v50  ;;  %v4889_v50 = vor.u32 %v6313_v38, %v4888_v37  ;;  %v5081_v29 = vor.u32 %v6361_v45, %v5080_v44  ;;  %v4600_v38 = vld [vmem:[#allocation5 + $0x190] sm:$0xf]  ;;  %v6289_v45 = vld [vmem:[#allocation5 + $0x324] sm:$0xf0] }
 0x105   :  { %2619 = vmatpush.bf16.msrb.mxu2 %v5365_v52  ;;  %v4864_v52 = vld [vmem:[#allocation5 + $0x3a0] sm:$0xf]  ;;  %v4792_v42 = vld [vmem:[#allocation5 + $0x310] sm:$0xf] }
 0x106   :  { %2632 = vmatpush.bf16.msrb.mxu3 %v5557_v59  ;;  %v4456_v59 = vld [vmem:[#allocation5 + $0x70] sm:$0xf] }
 0x107   :  { %2651 = vmatpush.bf16.msra.mxu0 %v4577_v53  ;;  %2607 = vmatmul.bf16.vlgmr.msrb.gmra.mxu1 %v7108_v35  ;;  %v6307_v53 = vld [vmem:[#allocation5 + $0x3b4] sm:$0xf0]  ;;  %v2387_v58 = vpop.f32.mrf.mxu2  ;;  %v2363_v3 = vpop.f32.mrf.mxu0 }
 0x108   :  { %2664 = vmatpush.bf16.msra.mxu1 %v4769_v55  ;;  %2620 = vmatmul.bf16.vlgmr.msrb.gmra.mxu2 %v7112_v40  ;;  %v5056_v55 = vld [vmem:[#allocation5 + $0x520] sm:$0xf]  ;;  %v4865_v61 = vor.u32 %v6307_v53, %v4864_v52  ;;  %v6523_v52 = vld [vmem:[#allocation5 + $0xa74] sm:$0xf0]  ;;  %v4984_v53 = vld [vmem:[#allocation5 + $0x490] sm:$0xf] }
 0x109   :  { %2677 = vmatpush.bf16.msra.mxu2 %v4961_v56  ;;  %2633 = vmatmul.bf16.vlgmr.msrb.gmra.mxu3 %v7110_v39  ;;  %v6355_v56 = vld [vmem:[#allocation5 + $0x534] sm:$0xf0]  ;;  %v5704_v3 = vld [vmem:[#allocation5 + $0xa30] sm:$0xf] }
 0x10a   :  { %2690 = vmatpush.bf16.msra.mxu3 %v5153_v2  ;;  %v2388_v2 = vadd.f32 %v2387_v58, %v2375_v49  ;;  %v5057_v9 = vor.u32 %v6355_v56, %v5056_v55  ;;  %v6475_v49 = vld [vmem:[#allocation5 + $0x8f4] sm:$0xf0]  ;;  %v4793_v58 = vor.u32 %v6289_v45, %v4792_v42  ;;  %v6457_v42 = vld [vmem:[#allocation5 + $0x864] sm:$0xf0] }
 0x10b   :  { %2652 = vmatpush.bf16.msra.mxu0 %v4553_v4  ;;  %v2376_v4 = vpop.f32.mrf.mxu1 }
 0x10c   :  { %2665 = vmatpush.bf16.msra.mxu1 %v4745_v13  ;;  %v4457_v13 = vor.u32 %v6205_v60, %v4456_v59  ;;  %v2400_v20 = vpop.f32.mrf.mxu3  ;;  %v5537_v59 = vor.u32 %v6475_v49, %v5536_v48  ;;  %v5320_v60 = vld [vmem:[#allocation5 + $0x730] sm:$0xf]  ;;  %v4530_v48 = vld [vmem:[#allocation5 + $0x118] sm:$0xf0] }
 0x10d   :  { %2678 = vmatpush.bf16.msra.mxu2 %v4937_v16  ;;  %v4649_v16 = vor.u32 %v6253_v1, %v4648_v63  ;;  %v5512_v1 = vld [vmem:[#allocation5 + $0x8b0] sm:$0xf] }
 0x10e   :  { %2691 = vmatpush.bf16.msra.mxu3 %v5129_v23  ;;  %v6247_v23 = vld [vmem:[#allocation5 + $0x1d4] sm:$0xf0] }
 0x10f   :  { %2653 = vmatpush.bf16.msra.mxu0 %v4529_v25  ;;  %v7161_v25 = vadd.f32 %v2400_v20, %v2388_v2  ;;  %v4625_v36 = vor.u32 %v6247_v23, %v4624_v22  ;;  %v2389_v37 = vpop.f32.mrf.mxu2  ;;  %v6469_v2 = vld [vmem:[#allocation5 + $0x8c4] sm:$0xf0]  ;;  %v5705_v20 = vor.u32 %v6517_v7, %v5704_v3  ;;  %v6463_v22 = vld [vmem:[#allocation5 + $0x894] sm:$0xf0]  ;;  %v5680_v23 = vld [vmem:[#allocation5 + $0xa00] sm:$0xf] }
 0x110   :  { %2666 = vmatpush.bf16.msra.mxu1 %v4721_v27  ;;  %v6295_v27 = vld [vmem:[#allocation5 + $0x354] sm:$0xf0] }
 0x111   :  { %2679 = vmatpush.bf16.msra.mxu2 %v4913_v31  ;;  %v4433_v31 = vor.u32 %v6199_v19, %v4432_v17  ;;  %v4817_v44 = vor.u32 %v6295_v27, %v4816_v5  ;;  %v5296_v17 = vld [vmem:[#allocation5 + $0x700] sm:$0xf]  ;;  %v6415_v19 = vld [vmem:[#allocation5 + $0x714] sm:$0xf0] }
 0x112   :  { %2692 = vmatpush.bf16.msra.mxu3 %v5105_v41  ;;  %5737 = vmatmul.msk.bf16.vlgmr.msrb.gmra.mxu0 %vm2212_vm1, %v7104_v18  ;;  %v6241_v41 = vld [vmem:[#allocation5 + $0x1a4] sm:$0xf0]  ;;  %v6511_v27 = vld [vmem:[#allocation5 + $0xa14] sm:$0xf0] }
 0x113   :  { %2654 = vmatpush.bf16.msra.mxu0 %v4505_v43  ;;  %v1532_v43 = vunpack.c.l.b16 %v7163_v26 }
 0x114   :  { %2667 = vmatpush.bf16.msra.mxu1 %v4697_v46  ;;  %v5344_v46 = vld [vmem:[#allocation5 + $0x760] sm:$0xf] }
 0x115   :  { %2680 = vmatpush.bf16.msra.mxu2 %v4889_v50  ;;  %v5728_v50 = vld [vmem:[#allocation5 + $0xa60] sm:$0xf]  ;;  %v5345_v55 = vor.u32 %v6427_v47, %v5344_v46  ;;  %v1874_v56 = vpack.c.b16 %v1532_v43, %v1532_v43  ;;  %v5656_v43 = vld [vmem:[#allocation5 + $0x9d0] sm:$0xf]  ;;  %v6505_v46 = vld [vmem:[#allocation5 + $0x9e4] sm:$0xf0] }
 0x116   :  { %2693 = vmatpush.bf16.msra.mxu3 %v5081_v29  ;;  %v6337_v29 = vld [vmem:[#allocation5 + $0x4a4] sm:$0xf0]  ;;  %v5729_v63 = vor.u32 %v6523_v52, %v5728_v50  ;;  %v6220_v47 = vld [vmem:[#allocation5 + $0x104] sm:$0xf]  ;;  %v5248_v52 = vld [vmem:[#allocation5 + $0x6a0] sm:$0xf] }
 0x117   :  { %2655 = vmatpush.bf16.msra.mxu0 %v4481_v54  ;;  %v4601_v54 = vor.u32 %v6241_v41, %v4600_v38  ;;  %v4985_v4 = vor.u32 %v6337_v29, %v4984_v53  ;;  %v2439_v14 = vpop.f32.mrf.mxu2  ;;  %v2230_v15 = vsel %vm2216_vm0, %v1874_v56, 0  ;;  %v5681_v38 = vor.u32 %v6511_v27, %v5680_v23  ;;  %v5464_v41 = vld [vmem:[#allocation5 + $0x850] sm:$0xf]  ;;  %v5632_v56 = vld [vmem:[#allocation5 + $0x9a0] sm:$0xf] }
 0x118   :  { %2668 = vmatpush.bf16.msra.mxu1 %v4673_v57  ;;  %v2402_v57 = vpop.f32.mrf.mxu3  ;;  %v5657_v29 = vor.u32 %v6505_v46, %v5656_v43  ;;  %v5200_v23 = vld [vmem:[#allocation5 + $0x640] sm:$0xf]  ;;  %v6433_v46 = vld [vmem:[#allocation5 + $0x7a4] sm:$0xf0] }
 0x119   :  { %2681 = vmatpush.bf16.msra.mxu2 %v4865_v61  ;;  %v6421_v61 = vld [vmem:[#allocation5 + $0x744] sm:$0xf0]  ;;  %v4533_v57 = vor.u32 %v6220_v47, %v4530_v48  ;;  %v5560_v48 = vld [vmem:[#allocation5 + $0x910] sm:$0xf] }
 0x11a   :  { %2694 = vmatpush.bf16.msra.mxu3 %v5057_v9  ;;  %v4578_v9 = vld [vmem:[#allocation5 + $0x178] sm:$0xf0] }
 0x11b   :  { %2656 = vmatpush.bf16.msra.mxu0 %v4457_v13  ;;  %v5321_v13 = vor.u32 %v6421_v61, %v5320_v60  ;;  %v4581_v5 = vor.u32 %v6232_v8, %v4578_v9  ;;  %v4506_v60 = vld [vmem:[#allocation5 + $0xe8] sm:$0xf0]  ;;  %v5416_v8 = vld [vmem:[#allocation5 + $0x7f0] sm:$0xf]  ;;  %v6445_v9 = vld [vmem:[#allocation5 + $0x804] sm:$0xf0] }
 0x11c   :  { %2669 = vmatpush.bf16.msra.mxu1 %v4649_v16  ;;  %v5513_v16 = vor.u32 %v6469_v2, %v5512_v1  ;;  %v5224_v1 = vld [vmem:[#allocation5 + $0x670] sm:$0xf]  ;;  %v6397_v2 = vld [vmem:[#allocation5 + $0x684] sm:$0xf0] }
 0x11d   :  { %2682 = vmatpush.bf16.msra.mxu2 %v4841_v21  ;;  %v5488_v21 = vld [vmem:[#allocation5 + $0x880] sm:$0xf] }
 0x11e   :  { %2695 = vmatpush.bf16.msra.mxu3 %v5033_v30  ;;  %v4554_v30 = vld [vmem:[#allocation5 + $0x148] sm:$0xf0]  ;;  %v5489_v33 = vor.u32 %v6463_v22, %v5488_v21  ;;  %v5417_v22 = vor.u32 %v6445_v9, %v5416_v8  ;;  %v6370_v9 = vld [vmem:[#allocation5 + $0x5b4] sm:$0xf] }
 0x11f   :  { %2657 = vmatpush.bf16.msra.mxu0 %v4433_v31  ;;  %v5297_v31 = vor.u32 %v6415_v19, %v5296_v17  ;;  %v2413_v32 = vpop.f32.mrf.mxu0  ;;  %v6208_v17 = vld [vmem:[#allocation5 + $0xa4] sm:$0xf]  ;;  %v4482_v19 = vld [vmem:[#allocation5 + $0xb8] sm:$0xf0]  ;;  %v4938_v8 = vld [vmem:[#allocation5 + $0x448] sm:$0xf0] }
 0x120   :  { %2670 = vmatpush.bf16.msra.mxu1 %v4625_v36  ;;  %v6409_v36 = vld [vmem:[#allocation5 + $0x6e4] sm:$0xf0]  ;;  %v2414_v37 = vadd.f32 %v2413_v32, %v7161_v25  ;;  %v2426_v45 = vpop.f32.mrf.mxu1  ;;  %v6403_v25 = vld [vmem:[#allocation5 + $0x6b4] sm:$0xf0]  ;;  %v5584_v32 = vld [vmem:[#allocation5 + $0x940] sm:$0xf] }
 0x121   :  { %2683 = vmatpush.bf16.msra.mxu2 %v4817_v44  ;;  %v4557_v44 = vor.u32 %v6226_v28, %v4554_v30  ;;  %v5273_v50 = vor.u32 %v6409_v36, %v5272_v34  ;;  %v5249_v61 = vor.u32 %v6403_v25, %v5248_v52  ;;  %v5392_v30 = vld [vmem:[#allocation5 + $0x7c0] sm:$0xf]  ;;  %v6487_v34 = vld [vmem:[#allocation5 + $0x954] sm:$0xf0]  ;;  %v6328_v52 = vld [vmem:[#allocation5 + $0x464] sm:$0xf] }
 0x122   :  { %2696 = vmatpush.bf16.msra.mxu3 %v5009_v51  ;;  %v2427_v49 = vadd.f32 %v2426_v45, %v2414_v37  ;;  %v2441_v51 = vpop.f32.mrf.mxu2  ;;  %v6202_v37 = vld [vmem:[#allocation5 + $0x74] sm:$0xf]  ;;  %v5368_v45 = vld [vmem:[#allocation5 + $0x790] sm:$0xf]  ;;  %v5585_v47 = vor.u32 %v6487_v34, %v5584_v32  ;;  %v4962_v25 = vld [vmem:[#allocation5 + $0x478] sm:$0xf0] }
 0x123   :  { %2658 = vmatpush.bf16.msra.mxu0 %v4409_v24  ;;  %v5465_v24 = vor.u32 %v6457_v42, %v5464_v41  ;;  %v5176_v42 = vld [vmem:[#allocation5 + $0x610] sm:$0xf] }
 0x124   :  { %2671 = vmatpush.bf16.msra.mxu1 %v4601_v54  ;;  %v7172_v53 = vadd.f32 %v2439_v14, %v2427_v49  ;;  %v5440_v54 = vld [vmem:[#allocation5 + $0x820] sm:$0xf]  ;;  %v6280_v49 = vld [vmem:[#allocation5 + $0x2e4] sm:$0xf] }
 0x125   :  { %2684 = vmatpush.bf16.msra.mxu2 %v4793_v58  ;;  %v6499_v58 = vld [vmem:[#allocation5 + $0x9b4] sm:$0xf0] }
 0x126   :  { %2697 = vmatpush.bf16.msra.mxu3 %v4985_v4  ;;  %2659 = vmatmul.bf16.vlgmr.msra.gmra.mxu0 %v7094_v0  ;;  %v507_v4 = vperm.slane %v7136_v10, 2  ;;  %v5633_v7 = vor.u32 %v6499_v58, %v5632_v56 }
 0x127   :  { %2703 = vmatpush.bf16.msrb.mxu0 %v5345_v55  ;;  %2672 = vmatmul.bf16.vlgmr.msra.gmra.mxu1 %v7099_v12  ;;  %v6451_v55 = vld [vmem:[#allocation5 + $0x834] sm:$0xf0]  ;;  %v2415_v3 = vpop.f32.mrf.mxu0 }
 0x128   :  { %2716 = vmatpush.bf16.msrb.mxu1 %v5537_v59  ;;  %2685 = vmatmul.bf16.vlgmr.msra.gmra.mxu2 %v7096_v6  ;;  %v6214_v59 = vld [vmem:[#allocation5 + $0xd4] sm:$0xf]  ;;  %v4746_v3 = vld [vmem:[#allocation5 + $0x2c8] sm:$0xf0] }
 0x129   :  { %2729 = vmatpush.bf16.msrb.mxu2 %v5729_v63  ;;  %2698 = vmatmul.bf16.vlgmr.msra.gmra.mxu3 %v7092_v62  ;;  %v5441_v63 = vor.u32 %v6451_v55, %v5440_v54  ;;  %v4509_v14 = vor.u32 %v6214_v59, %v4506_v60  ;;  %v6376_v54 = vld [vmem:[#allocation5 + $0x5e4] sm:$0xf]  ;;  %v5154_v55 = vld [vmem:[#allocation5 + $0x5f8] sm:$0xf0] }
 0x12a   :  { %2749 = vmatpush.bf16.msrb.mxu3 %v2230_v15  ;;  %v6493_v15 = vld [vmem:[#allocation5 + $0x984] sm:$0xf0]  ;;  %v6196_v59 = vld [vmem:[#allocation5 + $0x44] sm:$0xf]  ;;  %v4434_v60 = vld [vmem:[#allocation5 + $0x58] sm:$0xf0] }
 0x12b   :  { %2704 = vmatpush.bf16.msrb.mxu0 %v5321_v13  ;;  %v5608_v13 = vld [vmem:[#allocation5 + $0x970] sm:$0xf]  ;;  %v2452_v21 = vpop.f32.mrf.mxu2 }
 0x12c   :  { %2717 = vmatpush.bf16.msrb.mxu1 %v5513_v16  ;;  %v2428_v16 = vpop.f32.mrf.mxu1  ;;  %v2453_v27 = vadd.f32 %v2452_v21, %v507_v4  ;;  %v2465_v10 = vpop.f32.mrf.mxu3  ;;  %v5609_v28 = vor.u32 %v6493_v15, %v5608_v13  ;;  %v5157_v4 = vor.u32 %v6376_v54, %v5154_v55  ;;  %v5130_v13 = vld [vmem:[#allocation5 + $0x5c8] sm:$0xf0]  ;;  %v4722_v21 = vld [vmem:[#allocation5 + $0x298] sm:$0xf0]  ;;  %v6412_v54 = vld [vmem:[#allocation5 + $0x704] sm:$0xf] }
 0x12d   :  { %2730 = vmatpush.bf16.msrb.mxu2 %v5705_v20  ;;  %v5225_v20 = vor.u32 %v6397_v2, %v5224_v1  ;;  %v4965_v1 = vor.u32 %v6328_v52, %v4962_v25  ;;  %v6274_v2 = vld [vmem:[#allocation5 + $0x2b4] sm:$0xf]  ;;  %v6268_v16 = vld [vmem:[#allocation5 + $0x284] sm:$0xf]  ;;  %v5298_v55 = vld [vmem:[#allocation5 + $0x718] sm:$0xf0] }
 0x12e   :  { %2755 = vmatpush.bf16.msra.mxu3 %v4581_v5  ;;  %v6391_v5 = vld [vmem:[#allocation5 + $0x654] sm:$0xf0]  ;;  %v7175_v36 = vadd.f32 %v2465_v10, %v2453_v27  ;;  %v4749_v15 = vor.u32 %v6274_v2, %v4746_v3  ;;  %v6316_v27 = vld [vmem:[#allocation5 + $0x404] sm:$0xf]  ;;  %v4914_v10 = vld [vmem:[#allocation5 + $0x418] sm:$0xf0]  ;;  %v4725_v32 = vor.u32 %v6268_v16, %v4722_v21  ;;  %v5301_v2 = vor.u32 %v6412_v54, %v5298_v55 }
 0x12f   :  { %2705 = vmatpush.bf16.msrb.mxu0 %v5297_v31  ;;  %v6439_v31 = vld [vmem:[#allocation5 + $0x7d4] sm:$0xf0]  ;;  %v5201_v41 = vor.u32 %v6391_v5, %v5200_v23  ;;  %v5346_v23 = vld [vmem:[#allocation5 + $0x778] sm:$0xf0]  ;;  %v5133_v5 = vor.u32 %v6370_v9, %v5130_v13  ;;  %v4650_v3 = vld [vmem:[#allocation5 + $0x208] sm:$0xf0] }
 0x130   :  { %2718 = vmatpush.bf16.msrb.mxu1 %v5489_v33  ;;  %v4485_v33 = vor.u32 %v6208_v17, %v4482_v19  ;;  %v5393_v43 = vor.u32 %v6439_v31, %v5392_v30  ;;  %v6190_v17 = vld [vmem:[#allocation5 + $0x14] sm:$0xf]  ;;  %v4410_v19 = vld [vmem:[#allocation5 + $0x28] sm:$0xf0]  ;;  %v5106_v30 = vld [vmem:[#allocation5 + $0x598] sm:$0xf0] }
 0x131   :  { %2731 = vmatpush.bf16.msrb.mxu2 %v5681_v38  ;;  %v4458_v38 = vld [vmem:[#allocation5 + $0x88] sm:$0xf0]  ;;  %v4413_v31 = vor.u32 %v6190_v17, %v4410_v19  ;;  %v6298_v9 = vld [vmem:[#allocation5 + $0x374] sm:$0xf]  ;;  %v6244_v19 = vld [vmem:[#allocation5 + $0x1c4] sm:$0xf] }
 0x132   :  { %2756 = vmatpush.bf16.msra.mxu3 %v4557_v44  ;;  %v6385_v44 = vld [vmem:[#allocation5 + $0x624] sm:$0xf0]  ;;  %v4461_v51 = vor.u32 %v6202_v37, %v4458_v38  ;;  %v4917_v37 = vor.u32 %v6316_v27, %v4914_v10  ;;  %v4698_v38 = vld [vmem:[#allocation5 + $0x268] sm:$0xf0]  ;;  %v6400_v27 = vld [vmem:[#allocation5 + $0x6a4] sm:$0xf] }
 0x133   :  { %2706 = vmatpush.bf16.msrb.mxu0 %v5273_v50  ;;  %v4770_v50 = vld [vmem:[#allocation5 + $0x2f8] sm:$0xf0]  ;;  %v2454_v56 = vpop.f32.mrf.mxu2  ;;  %v4842_v13 = vld [vmem:[#allocation5 + $0x388] sm:$0xf0] }
 0x134   :  { %2719 = vmatpush.bf16.msrb.mxu1 %v5465_v24  ;;  %v6481_v24 = vld [vmem:[#allocation5 + $0x924] sm:$0xf0]  ;;  %v4773_v58 = vor.u32 %v6280_v49, %v4770_v50  ;;  %v5250_v10 = vld [vmem:[#allocation5 + $0x6b8] sm:$0xf0]  ;;  %v4986_v54 = vld [vmem:[#allocation5 + $0x4a8] sm:$0xf0] }
 0x135   :  { %2732 = vmatpush.bf16.msrb.mxu2 %v5657_v29  ;;  %v5177_v29 = vor.u32 %v6385_v44, %v5176_v42  ;;  %v5322_v42 = vld [vmem:[#allocation5 + $0x748] sm:$0xf0]  ;;  %v6310_v44 = vld [vmem:[#allocation5 + $0x3d4] sm:$0xf] }
 0x136   :  { %2757 = vmatpush.bf16.msra.mxu3 %v4533_v57  ;;  %v5369_v57 = vor.u32 %v6433_v46, %v5368_v45  ;;  %v4890_v45 = vld [vmem:[#allocation5 + $0x3e8] sm:$0xf0] }
 0x137   :  { %2707 = vmatpush.bf16.msrb.mxu0 %v5249_v61  ;;  %v2467_v61 = vpop.f32.mrf.mxu3  ;;  %v4893_v25 = vor.u32 %v6310_v44, %v4890_v45  ;;  %v5253_v44 = vor.u32 %v6400_v27, %v5250_v10  ;;  %v1533_v45 = vunpack.c.h.b16 %v7163_v26  ;;  %v6454_v10 = vld [vmem:[#allocation5 + $0x854] sm:$0xf] }
 0x138   :  { %2720 = vmatpush.bf16.msrb.mxu1 %v5441_v63  ;;  %v5561_v63 = vor.u32 %v6481_v24, %v5560_v48  ;;  %v5082_v48 = vld [vmem:[#allocation5 + $0x568] sm:$0xf0]  ;;  %v5058_v61 = vld [vmem:[#allocation5 + $0x538] sm:$0xf0] }
 0x139   :  { %2733 = vmatpush.bf16.msrb.mxu2 %v5633_v7  ;;  %5738 = vmatmul.msk.bf16.vlgmr.msrb.gmra.mxu3 %vm2212_vm1, %v7104_v18  ;;  %v6322_v7 = vld [vmem:[#allocation5 + $0x434] sm:$0xf]  ;;  %v1875_v26 = vpack.c.b16 %v1533_v45, %v1533_v45 }
 0x13a   :  { %2758 = vmatpush.bf16.msra.mxu3 %v4509_v14  ;;  %v4437_v14 = vor.u32 %v6196_v59, %v4434_v60  ;;  %v6352_v60 = vld [vmem:[#allocation5 + $0x524] sm:$0xf] }
 0x13b   :  { %2708 = vmatpush.bf16.msrb.mxu0 %v5225_v20  ;;  %v4941_v20 = vor.u32 %v6322_v7, %v4938_v8  ;;  %v5274_v7 = vld [vmem:[#allocation5 + $0x6e8] sm:$0xf0]  ;;  %v5061_v8 = vor.u32 %v6352_v60, %v5058_v61  ;;  %v6388_v61 = vld [vmem:[#allocation5 + $0x644] sm:$0xf] }
 0x13c   :  { %2721 = vmatpush.bf16.msrb.mxu1 %v5417_v22  ;;  %v6424_v22 = vld [vmem:[#allocation5 + $0x764] sm:$0xf] }
 0x13d   :  { %2734 = vmatpush.bf16.msrb.mxu2 %v5609_v28  ;;  %v6364_v28 = vld [vmem:[#allocation5 + $0x584] sm:$0xf]  ;;  %v5349_v34 = vor.u32 %v6424_v22, %v5346_v23  ;;  %v4845_v23 = vor.u32 %v6298_v9, %v4842_v13  ;;  %v2233_v13 = vsel %vm2216_vm0, %v1875_v26, 0 }
 0x13e   :  { %2759 = vmatpush.bf16.msra.mxu3 %v4485_v33  ;;  %v6262_v33 = vld [vmem:[#allocation5 + $0x254] sm:$0xf] }
 0x13f   :  { %2709 = vmatpush.bf16.msrb.mxu0 %v5201_v41  ;;  %v6418_v41 = vld [vmem:[#allocation5 + $0x734] sm:$0xf]  ;;  %v2478_v49 = vpop.f32.mrf.mxu0  ;;  %v4701_v50 = vor.u32 %v6262_v33, %v4698_v38 }
 0x140   :  { %2722 = vmatpush.bf16.msrb.mxu1 %v5393_v43  ;;  %v5109_v43 = vor.u32 %v6364_v28, %v5106_v30  ;;  %v2491_v46 = vpop.f32.mrf.mxu1  ;;  %v5325_v24 = vor.u32 %v6418_v41, %v5322_v42  ;;  %v2479_v52 = vadd.f32 %v2478_v49, %v7175_v36  ;;  %v6238_v41 = vld [vmem:[#allocation5 + $0x194] sm:$0xf]  ;;  %v4602_v42 = vld [vmem:[#allocation5 + $0x1a8] sm:$0xf0] }
 0x141   :  { %2735 = vmatpush.bf16.msrb.mxu2 %v5585_v47  ;;  %v6358_v47 = vld [vmem:[#allocation5 + $0x554] sm:$0xf]  ;;  %v5226_v49 = vld [vmem:[#allocation5 + $0x688] sm:$0xf0] }
 0x142   :  { %2760 = vmatpush.bf16.msra.mxu3 %v4461_v51  ;;  %v6256_v51 = vld [vmem:[#allocation5 + $0x224] sm:$0xf]  ;;  %v5085_v56 = vor.u32 %v6358_v47, %v5082_v48  ;;  %v2492_v59 = vadd.f32 %v2491_v46, %v2479_v52  ;;  %v4794_v47 = vld [vmem:[#allocation5 + $0x328] sm:$0xf0]  ;;  %v6394_v48 = vld [vmem:[#allocation5 + $0x674] sm:$0xf] }
 0x143   :  { %2710 = vmatpush.bf16.msrb.mxu0 %v5177_v29  ;;  %v4674_v29 = vld [vmem:[#allocation5 + $0x238] sm:$0xf0]  ;;  %v6520_v52 = vld [vmem:[#allocation5 + $0xa64] sm:$0xf] }
 0x144   :  { %2723 = vmatpush.bf16.msrb.mxu1 %v5369_v57  ;;  %v6304_v57 = vld [vmem:[#allocation5 + $0x3a4] sm:$0xf] }
 0x145   :  { %2736 = vmatpush.bf16.msrb.mxu2 %v5561_v63  ;;  %v4677_v63 = vor.u32 %v6256_v51, %v4674_v29  ;;  %v6472_v51 = vld [vmem:[#allocation5 + $0x8e4] sm:$0xf]  ;;  %v6334_v29 = vld [vmem:[#allocation5 + $0x494] sm:$0xf] }
 0x146   :  { %2711 = vmatmul.bf16.vlgmr.msrb.gmra.mxu0 %v7108_v35  ;;  %2761 = vmatpush.bf16.msra.mxu3 %v4437_v14 }
 0x147   :  { %2768 = vmatpush.bf16.msra.mxu0 %v4773_v58  ;;  %2724 = vmatmul.bf16.vlgmr.msrb.gmra.mxu1 %v7112_v40  ;;  %v4866_v58 = vld [vmem:[#allocation5 + $0x3b8] sm:$0xf0]  ;;  %v2480_v21 = vpop.f32.mrf.mxu0 }
 0x148   :  { %2781 = vmatpush.bf16.msra.mxu1 %v4965_v1  ;;  %2737 = vmatmul.bf16.vlgmr.msrb.gmra.mxu2 %v7110_v39  ;;  %v6250_v1 = vld [vmem:[#allocation5 + $0x1f4] sm:$0xf]  ;;  %v4869_v36 = vor.u32 %v6304_v57, %v4866_v58  ;;  %v2493_v14 = vpop.f32.mrf.mxu1  ;;  %v5229_v57 = vor.u32 %v6394_v48, %v5226_v49  ;;  %v5682_v21 = vld [vmem:[#allocation5 + $0xa18] sm:$0xf0]  ;;  %v5418_v48 = vld [vmem:[#allocation5 + $0x808] sm:$0xf0] }
 0x149   :  { %2794 = vmatpush.bf16.msra.mxu2 %v5157_v4  ;;  %v6406_v4 = vld [vmem:[#allocation5 + $0x6d4] sm:$0xf]  ;;  %v4653_v17 = vor.u32 %v6250_v1, %v4650_v3  ;;  %v5514_v3 = vld [vmem:[#allocation5 + $0x8c8] sm:$0xf0] }
 0x14a   :  { %2762 = vmatpush.bf16.msra.mxu3 %v4413_v31  ;;  %v6292_v31 = vld [vmem:[#allocation5 + $0x344] sm:$0xf]  ;;  %v6490_v49 = vld [vmem:[#allocation5 + $0x974] sm:$0xf] }
 0x14b   :  { %2769 = vmatpush.bf16.msra.mxu0 %v4749_v15  ;;  %v6346_v15 = vld [vmem:[#allocation5 + $0x4f4] sm:$0xf]  ;;  %v2504_v16 = vpop.f32.mrf.mxu2 }
 0x14c   :  { %2782 = vmatpush.bf16.msra.mxu1 %v4941_v20  ;;  %v5277_v20 = vor.u32 %v6406_v4, %v5274_v7  ;;  %v2505_v22 = vadd.f32 %v2504_v16, %v2492_v59  ;;  %v2517_v28 = vpop.f32.mrf.mxu3  ;;  %v6514_v7 = vld [vmem:[#allocation5 + $0xa34] sm:$0xf] }
 0x14d   :  { %2795 = vmatpush.bf16.msra.mxu2 %v5133_v5  ;;  %2763 = vmatmul.bf16.vlgmr.msra.gmra.mxu3 %v7094_v0  ;;  %v5034_v0 = vld [vmem:[#allocation5 + $0x508] sm:$0xf0]  ;;  %v4626_v5 = vld [vmem:[#allocation5 + $0x1d8] sm:$0xf0] }
 0x14e   :  { %2807 = vmatpush.bf16.msrb.mxu3 %v5349_v34  ;;  %v5037_v30 = vor.u32 %v6346_v15, %v5034_v0  ;;  %v7184_v33 = vadd.f32 %v2517_v28, %v2505_v22  ;;  %v6340_v34 = vld [vmem:[#allocation5 + $0x4c4] sm:$0xf]  ;;  %v4629_v38 = vor.u32 %v6244_v19, %v4626_v5  ;;  %v6382_v15 = vld [vmem:[#allocation5 + $0x614] sm:$0xf]  ;;  %v5178_v0 = vld [vmem:[#allocation5 + $0x628] sm:$0xf0] }
 0x14f   :  { %2770 = vmatpush.bf16.msra.mxu0 %v4725_v32  ;;  %v4818_v32 = vld [vmem:[#allocation5 + $0x358] sm:$0xf0]  ;;  %v5466_v28 = vld [vmem:[#allocation5 + $0x868] sm:$0xf0] }
 0x150   :  { %2783 = vmatpush.bf16.msra.mxu1 %v4917_v37  ;;  %v5010_v37 = vld [vmem:[#allocation5 + $0x4d8] sm:$0xf0]  ;;  %v4821_v46 = vor.u32 %v6292_v31, %v4818_v32  ;;  %v7187_v55 = vpop.f32.mrf.mxu1  ;;  %v5658_v31 = vld [vmem:[#allocation5 + $0x9e8] sm:$0xf0]  ;;  %v5469_v32 = vor.u32 %v6454_v10, %v5466_v28 }
 0x151   :  { %2796 = vmatpush.bf16.msra.mxu2 %v5109_v43  ;;  %v6286_v43 = vld [vmem:[#allocation5 + $0x314] sm:$0xf]  ;;  %v5490_v19 = vld [vmem:[#allocation5 + $0x898] sm:$0xf0] }
 0x152   :  { %2808 = vmatpush.bf16.msrb.mxu3 %v5325_v24  ;;  %v5538_v24 = vld [vmem:[#allocation5 + $0x8f8] sm:$0xf0]  ;;  %v4797_v59 = vor.u32 %v6286_v43, %v4794_v47  ;;  %v6442_v47 = vld [vmem:[#allocation5 + $0x7f4] sm:$0xf] }
 0x153   :  { %2771 = vmatpush.bf16.msra.mxu0 %v4701_v50  ;;  %v5013_v50 = vor.u32 %v6340_v34, %v5010_v37  ;;  %v2506_v58 = vpop.f32.mrf.mxu2  ;;  %v5541_v60 = vor.u32 %v6472_v51, %v5538_v24  ;;  %v7198_v43 = vld [vmem:[#allocation7] sm:$0x3f] }
 0x154   :  { %2784 = vmatpush.bf16.msra.mxu1 %v4893_v25  ;;  %v5730_v25 = vld [vmem:[#allocation5 + $0xa78] sm:$0xf0]  ;;  %v2519_v4 = vpop.f32.mrf.mxu3 }
 0x155   :  { %2797 = vmatpush.bf16.msra.mxu2 %v5085_v56  ;;  %v4605_v56 = vor.u32 %v6238_v41, %v4602_v42  ;;  %v5733_v1 = vor.u32 %v6520_v52, %v5730_v25  ;;  %v5634_v41 = vld [vmem:[#allocation5 + $0x9b8] sm:$0xf0]  ;;  %v6436_v25 = vld [vmem:[#allocation5 + $0x7c4] sm:$0xf] }
 0x156   :  { %2809 = vmatpush.bf16.msrb.mxu3 %v5301_v2  ;;  %v4989_v2 = vor.u32 %v6334_v29, %v4986_v54  ;;  %v5394_v29 = vld [vmem:[#allocation5 + $0x7d8] sm:$0xf0]  ;;  %v6484_v54 = vld [vmem:[#allocation5 + $0x944] sm:$0xf] }
 0x157   :  { %2772 = vmatpush.bf16.msra.mxu0 %v4677_v63  ;;  %v5202_v63 = vld [vmem:[#allocation5 + $0x658] sm:$0xf0]  ;;  %v5397_v58 = vor.u32 %v6436_v25, %v5394_v29 }
 0x158   :  { %2785 = vmatpush.bf16.msra.mxu1 %v4869_v36  ;;  %v6466_v36 = vld [vmem:[#allocation5 + $0x8b4] sm:$0xf]  ;;  %v5205_v9 = vor.u32 %v6388_v61, %v5202_v63  ;;  %v2545_v22 = vpop.f32.mrf.mxu1  ;;  %v5370_v63 = vld [vmem:[#allocation5 + $0x7a8] sm:$0xf0] }
 0x159   :  { %2798 = vmatpush.bf16.msra.mxu2 %v5061_v8  ;;  %v5706_v8 = vld [vmem:[#allocation5 + $0xa48] sm:$0xf0]  ;;  %v5517_v14 = vor.u32 %v6466_v36, %v5514_v3  ;;  %v6430_v61 = vld [vmem:[#allocation5 + $0x794] sm:$0xf] }
 0x15a   :  { %2810 = vmatpush.bf16.msrb.mxu3 %v5277_v20  ;;  %v5709_v16 = vor.u32 %v6514_v7, %v5706_v8  ;;  %v6508_v20 = vld [vmem:[#allocation5 + $0xa04] sm:$0xf]  ;;  %v5562_v36 = vld [vmem:[#allocation5 + $0x928] sm:$0xf0]  ;;  %v5373_v3 = vor.u32 %v6430_v61, %v5370_v63 }
 0x15b   :  { %2773 = vmatpush.bf16.msra.mxu0 %v4653_v17  ;;  %v6460_v17 = vld [vmem:[#allocation5 + $0x884] sm:$0xf]  ;;  %v5685_v27 = vor.u32 %v6508_v20, %v5682_v21 }
 0x15c   :  { %2786 = vmatpush.bf16.msra.mxu1 %v4845_v23  ;;  %v5181_v23 = vor.u32 %v6382_v15, %v5178_v0  ;;  %v5493_v5 = vor.u32 %v6460_v17, %v5490_v19 }
 0x15d   :  { %2799 = vmatpush.bf16.msra.mxu2 %v5037_v30  ;;  %v6502_v30 = vld [vmem:[#allocation5 + $0x9d4] sm:$0xf] }
 0x15e   :  { %2811 = vmatpush.bf16.msrb.mxu3 %v5253_v44  ;;  %v5661_v37 = vor.u32 %v6502_v30, %v5658_v31  ;;  %v508_v44 = vperm.slane %v7198_v43, 3 }
 0x15f   :  { %2774 = vmatpush.bf16.msra.mxu0 %v4629_v38  ;;  %v5442_v38 = vld [vmem:[#allocation5 + $0x838] sm:$0xf0] }
 0x160   :  { %2787 = vmatpush.bf16.msra.mxu1 %v4821_v46 }
 0x161   :  { %2800 = vmatpush.bf16.msra.mxu2 %v5013_v50  ;;  %v5610_v50 = vld [vmem:[#allocation5 + $0x988] sm:$0xf0] }
 0x162   :  { %2812 = vmatpush.bf16.msrb.mxu3 %v5229_v57  ;;  %v5613_v52 = vor.u32 %v6490_v49, %v5610_v50 }
 0x163   :  { %2775 = vmatpush.bf16.msra.mxu0 %v4605_v56 }
 0x164   :  { %2788 = vmatpush.bf16.msra.mxu1 %v4797_v59  ;;  %v2556_v45 = vpop.f32.mrf.mxu1 }
 0x165   :  { %2801 = vmatpush.bf16.msra.mxu2 %v4989_v2  ;;  %v2557_v51 = vadd.f32 %v2556_v45, %v508_v44  ;;  %v6478_v2 = vld [vmem:[#allocation5 + $0x914] sm:$0xf] }
 0x166   :  { %2776 = vmatmul.bf16.vlgmr.msra.gmra.mxu0 %v7099_v12  ;;  %2813 = vmatpush.bf16.msrb.mxu3 %v5205_v9  ;;  %v2530_v12 = vpop.f32.mrf.mxu0  ;;  %v5565_v4 = vor.u32 %v6478_v2, %v5562_v36 }
 0x167   :  { %2820 = vmatpush.bf16.msrb.mxu0 %v5541_v60  ;;  %2789 = vmatmul.bf16.vlgmr.msra.gmra.mxu1 %v7096_v6  ;;  %v2531_v34 = vadd.f32 %v2530_v12, %v7184_v33  ;;  %v6448_v6 = vld [vmem:[#allocation5 + $0x824] sm:$0xf] }
 0x168   :  { %2833 = vmatpush.bf16.msrb.mxu1 %v5733_v1  ;;  %2802 = vmatmul.bf16.vlgmr.msra.gmra.mxu2 %v7092_v62  ;;  %v6496_v62 = vld [vmem:[#allocation5 + $0x9a4] sm:$0xf]  ;;  %v5445_v46 = vor.u32 %v6448_v6, %v5442_v38 }
 0x169   :  { %2853 = vmatpush.bf16.msrb.mxu2 %v2233_v13  ;;  %v7196_v42 = vadd.f32 %v7187_v55, %v2531_v34  ;;  %v5637_v33 = vor.u32 %v6496_v62, %v5634_v41  ;;  %v5586_v55 = vld [vmem:[#allocation5 + $0x958] sm:$0xf0] }
 0x16a   :  { %2814 = vmatpush.bf16.msrb.mxu3 %v5181_v23  ;;  %v5589_v60 = vor.u32 %v6484_v54, %v5586_v55  ;;  %v510_v55 = vperm.slane %v7198_v43, 5 }
 0x16b   :  { %2821 = vmatpush.bf16.msrb.mxu0 %v5517_v14  ;;  %v2569_v56 = vpop.f32.mrf.mxu2 }
 0x16c   :  { %2834 = vmatpush.bf16.msrb.mxu1 %v5709_v16  ;;  %v2570_v57 = vadd.f32 %v2569_v56, %v2557_v51  ;;  %v2558_v26 = vpop.f32.mrf.mxu1  ;;  %v2582_v59 = vpop.f32.mrf.mxu3 }
 0x16d   :  { %2815 = vmatmul.bf16.vlgmr.msrb.gmra.mxu3 %v7108_v35  ;;  %v5421_v35 = vor.u32 %v6442_v47, %v5418_v48 }
 0x16e   :  { %v2532_v24 = vpop.f32.mrf.mxu0  ;;  %v2583_v1 = vadd.f32 %v2582_v59, %v2570_v57 }
 0x16f   :  { %2822 = vmatpush.bf16.msrb.mxu0 %v5493_v5 }
 0x170   :  { %2835 = vmatpush.bf16.msrb.mxu1 %v5685_v27 }
 0x173   :  { %2823 = vmatpush.bf16.msrb.mxu0 %v5469_v32  ;;  %v2571_v7 = vpop.f32.mrf.mxu2 }
 0x174   :  { %2836 = vmatpush.bf16.msrb.mxu1 %v5661_v37  ;;  %v2584_v8 = vpop.f32.mrf.mxu3 }
 0x177   :  { %2824 = vmatpush.bf16.msrb.mxu0 %v5445_v46 }
 0x178   :  { %2837 = vmatpush.bf16.msrb.mxu1 %v5637_v33  ;;  %5739 = vmatmul.msk.bf16.vlgmr.msrb.gmra.mxu2 %vm2212_vm1, %v7104_v18 }
 0x17b   :  { %2825 = vmatpush.bf16.msrb.mxu0 %v5421_v35 }
 0x17c   :  { %2838 = vmatpush.bf16.msrb.mxu1 %v5613_v52 }
 0x17f   :  { %2826 = vmatpush.bf16.msrb.mxu0 %v5397_v58  ;;  %v2595_v18 = vpop.f32.mrf.mxu0 }
 0x180   :  { %2839 = vmatpush.bf16.msrb.mxu1 %v5589_v60  ;;  %v2596_v9 = vadd.f32 %v2595_v18, %v2583_v1 }
 0x183   :  { %2827 = vmatpush.bf16.msrb.mxu0 %v5373_v3 }
 0x184   :  { %2840 = vmatpush.bf16.msrb.mxu1 %v5565_v4  ;;  %v2608_v13 = vpop.f32.mrf.mxu1 }
 0x185   :  { %v2609_v14 = vadd.f32 %v2608_v13, %v2596_v9 }
 0x186   :  { %2828 = vmatmul.bf16.vlgmr.msrb.gmra.mxu0 %v7112_v40  ;;  %v509_v40 = vperm.slane %v7198_v43, 4 }
 0x187   :  { %2841 = vmatmul.bf16.vlgmr.msrb.gmra.mxu1 %v7110_v39  ;;  %v2597_v15 = vpop.f32.mrf.mxu0 }
 0x18b   :  { %v2621_v0 = vpop.f32.mrf.mxu2 }
 0x18c   :  { %v2622_v16 = vadd.f32 %v2621_v0, %v2609_v14  ;;  %v2610_v17 = vpop.f32.mrf.mxu1  ;;  %v2634_v19 = vpop.f32.mrf.mxu3 }
 0x18e   :  { %v2635_v20 = vadd.f32 %v2634_v19, %v2622_v16 }
 0x18f   :  { %v2647_v21 = vpop.f32.mrf.mxu0 }
 0x190   :  { %v7205_v22 = vadd.f32 %v2647_v21, %v2635_v20 }
 0x193   :  { %v2623_v23 = vpop.f32.mrf.mxu2 }
 0x194   :  { %v2636_v5 = vpop.f32.mrf.mxu3 }
 0x197   :  { %v2649_v27 = vpop.f32.mrf.mxu0 }
 0x1a3   :  { %v2660_v10 = vpop.f32.mrf.mxu0 }
 0x1a4   :  { %v2661_v39 = vadd.f32 %v2660_v10, %v509_v40  ;;  %v2673_v28 = vpop.f32.mrf.mxu1 }
 0x1a6   :  { %v2674_v30 = vadd.f32 %v2673_v28, %v2661_v39 }
 0x1ab   :  { %v2686_v31 = vpop.f32.mrf.mxu2  ;;  %v2662_v34 = vpop.f32.mrf.mxu0 }
 0x1ac   :  { %v2699_v12 = vpop.f32.mrf.mxu3  ;;  %v2687_v32 = vadd.f32 %v2686_v31, %v2674_v30  ;;  %v2675_v6 = vpop.f32.mrf.mxu1 }
 0x1ae   :  { %v2700_v37 = vadd.f32 %v2699_v12, %v2687_v32 }
 0x1b3   :  { %v2688_v38 = vpop.f32.mrf.mxu2 }
 0x1b4   :  { %v2701_v62 = vpop.f32.mrf.mxu3 }
 0x1bc   :  { %v2751_v41 = vpop.f32.mrf.mxu3 }
 0x1c3   :  { %v2712_v44 = vpop.f32.mrf.mxu0 }
 0x1c4   :  { %v2713_v45 = vadd.f32 %v2712_v44, %v2700_v37  ;;  %v2725_v46 = vpop.f32.mrf.mxu1  ;;  %v2753_v47 = vpop.f32.mrf.mxu3 }
 0x1c6   :  { %v2726_v33 = vadd.f32 %v2725_v46, %v2713_v45 }
 0x1cb   :  { %v2738_v48 = vpop.f32.mrf.mxu2  ;;  %v2714_v49 = vpop.f32.mrf.mxu0 }
 0x1cc   :  { %v2739_v50 = vadd.f32 %v2738_v48, %v2726_v33  ;;  %v2727_v51 = vpop.f32.mrf.mxu1 }
 0x1ce   :  { %v7208_v35 = vadd.f32 %v2751_v41, %v2739_v50 }
 0x1d0   :  { %v2764_v24 = vpop.f32.mrf.mxu3 }
 0x1d1   :  { %v2765_v58 = vadd.f32 %v2764_v24, %v510_v55 }
 0x1d3   :  { %v2740_v52 = vpop.f32.mrf.mxu2 }
 0x1d8   :  { %v2766_v25 = vpop.f32.mrf.mxu3 }
 0x1e3   :  { %v2777_v29 = vpop.f32.mrf.mxu0 }
 0x1e4   :  { %v2790_v54 = vpop.f32.mrf.mxu1  ;;  %v2778_v60 = vadd.f32 %v2777_v29, %v2765_v58 }
 0x1e6   :  { %v2791_v63 = vadd.f32 %v2790_v54, %v2778_v60 }
 0x1eb   :  { %v2803_v56 = vpop.f32.mrf.mxu2  ;;  %v2779_v57 = vpop.f32.mrf.mxu0 }
 0x1ec   :  { %v2792_v26 = vpop.f32.mrf.mxu1  ;;  %v2804_v2 = vadd.f32 %v2803_v56, %v2791_v63 }
 0x1f0   :  { %v2816_v59 = vpop.f32.mrf.mxu3 }
 0x1f1   :  { %v2817_v3 = vadd.f32 %v2816_v59, %v2804_v2  ;;  %v6991_v2 = vmov 3  }
 0x1f2   :  { %6694 = vset.pattern.permute.xlu2 %v6991_v2 }
 0x1f3   :  { %v2805_v61 = vpop.f32.mrf.mxu2 }
 0x1f8   :  { %v2818_v1 = vpop.f32.mrf.mxu3 }
 0x1fb   :  { %v2855_v36 = vpop.f32.mrf.mxu2 }
 0x203   :  { %v2829_v4 = vpop.f32.mrf.mxu0  ;;  %v2857_v9 = vpop.f32.mrf.mxu2 }
 0x204   :  { %v2830_v7 = vadd.f32 %v2829_v4, %v2817_v3  ;;  %v2842_v8 = vpop.f32.mrf.mxu1  ;;  %v6993_v3 = vmov 0   ;;  %v6995_v9 = vmov 4  }
 0x205   :  { %6691 = vset.pattern.permute.xlu1 %v6993_v3 }
 0x206   :  { %v2843_v18 = vadd.f32 %v2842_v8, %v2830_v7 }
 0x208   :  { %v7211_v43 = vadd.f32 %v2855_v36, %v2843_v18  ;;  %v6992_v36 = vmov 2   ;;  %v6994_v18 = vmov 1  }
 0x209   :  { %6693 = vset.pattern.permute.xlu0 %v6992_v36 }
 0x20a   :  { %v3720_v13 = vsel %vm3719_vm2, %v7211_v43, -inf  ;;  %v3503_v14 = vsel %vm3502_vm3, %v7211_v43, -inf  ;;  %v3286_v15 = vsel %vm3285_vm4, %v7211_v43, -inf  ;;  %v4154_v17 = vsel %vm4153_vm5, %v7211_v43, -inf }
 0x20b   :  { %v2831_v0 = vpop.f32.mrf.mxu0  ;;  %3721 = vmax.xlane.f32.xlu1 %v3720_v13  ;;  %3504 = vmax.xlane.f32.xlu2 %v3503_v14  ;;  %v2860_v19 = vsel %vm2859_vm6, %v7211_v43, -inf  ;;  %v3069_v20 = vsel %vm3068_vm7, %v7211_v43, -inf  ;;  %v3937_v21 = vsel %vm3936_vm8, %v7211_v43, -inf  ;;  %v6997_v13 = vmov 12  }
 0x20c   :  { %v2844_v16 = vpop.f32.mrf.mxu1  ;;  %3287 = vmax.xlane.f32.xlu0 %v3286_v15  ;;  %v6998_v14 = vmov 10  }
 0x213   :  { %4155 = vmax.xlane.f32.xlu2 %v4154_v17  ;;  %2861 = vmax.xlane.f32.xlu1 %v2860_v19 }
 0x214   :  { %3070 = vmax.xlane.f32.xlu0 %v3069_v20  ;;  %v6999_v20 = vmov 23  }
 0x21b   :  { %3938 = vmax.xlane.f32.xlu2 %v3937_v21 }
 0x27e   :  { %v3722_v23 = vpop.xlane.xlu1 %3721  ;;  %v3505_v5 = vpop.xlane.xlu2 %3504 }
 0x27f   :  { %v3723_v27 = vsub.f32 %v7211_v43, %v3722_v23  ;;  %v3288_v40 = vpop.xlane.xlu0 %3287  ;;  %v3506_v30 = vsub.f32 %v7211_v43, %v3505_v5 }
 0x280   :  { %v3289_v10 = vsub.f32 %v7211_v43, %v3288_v40 }
 0x281   :  { %v3724_v39 = vmul.f32 1.442695, %v3723_v27  ;;  %v3507_v37 = vmul.f32 1.442695, %v3506_v30  ;;  %v6531_v30 = vld [vmem:[#allocation8 + $0x38] sm:$0xff] }
 0x282   :  { %v3290_v28 = vmul.f32 1.442695, %v3289_v10  ;;  %2970 = vmatpush.bf16.msra.mxu2 %v6531_v30  ;;  %v6557_v30 = vld [vmem:[#allocation8 + $0x88] sm:$0xff] }
 0x283   :  { %6741 = vpow2.f32 %v3724_v39 }
 0x284   :  { %6743 = vpow2.f32 %v3290_v28  ;;  %v7000_v28 = vmov 15  }
 0x286   :  { %v4156_v31 = vpop.xlane.xlu2 %4155  ;;  %v2862_v50 = vpop.xlane.xlu1 %2861 }
 0x287   :  { %v3071_v12 = vpop.xlane.xlu0 %3070  ;;  %v4157_v62 = vsub.f32 %v7211_v43, %v4156_v31  ;;  %v2863_v51 = vsub.f32 %v7211_v43, %v2862_v50  ;;  %v7001_v31 = vmov 5   ;;  %v6527_v50 = vld [vmem:[#allocation8 + $0x18] sm:$0xff] }
 0x288   :  { %v3072_v32 = vsub.f32 %v7211_v43, %v3071_v12  ;;  %v7002_v12 = vmov 11  }
 0x289   :  { %v7225_v34 = vpop.eup %6741  ;;  %v4158_v41 = vmul.f32 1.442695, %v4157_v62  ;;  %v2864_v24 = vmul.f32 1.442695, %v2863_v51  ;;  %v6529_v62 = vld [vmem:[#allocation8 + $0x28] sm:$0xff] }
 0x28a   :  { %v3073_v6 = vmul.f32 1.442695, %v3072_v32  ;;  %3727 = vrot.lane.b32.xlu1 %v7225_v34, %s6985_s4  ;;  %v7228_v38 = vpop.eup %6743 }
 0x28b   :  { %3293 = vrot.lane.b32.xlu0 %v7228_v38, %s6986_s6 }
 0x28c   :  { %6745 = vpow2.f32 %v3073_v6  ;;  %v7004_v6 = vmov 18  }
 0x28d   :  { %6747 = vpow2.f32 %v3507_v37  ;;  %v7003_v37 = vmov 13  }
 0x28e   :  { %v3939_v44 = vpop.xlane.xlu2 %3938  ;;  %6749 = vpow2.f32 %v4158_v41 }
 0x28f   :  { %v3940_v33 = vsub.f32 %v7211_v43, %v3939_v44  ;;  %v6996_v43 = vmov 7   ;;  %v6528_v44 = vld [vmem:[#allocation8 + $0x20] sm:$0xff] }
 0x291   :  { %v3941_v47 = vmul.f32 1.442695, %v3940_v33  ;;  %v7007_v33 = vmov 31  }
 0x292   :  { %v7232_v45 = vpop.eup %6745 }
 0x293   :  { %v7234_v46 = vpop.eup %6747  ;;  %3076 = vrot.lane.b32.xlu2 %v7232_v45, %s6987_s14  ;;  %6751 = vpow2.f32 %v3941_v47  ;;  %v7008_v47 = vmov 22  }
 0x294   :  { %3510 = vrot.lane.b32.xlu0 %v7234_v46, %s6988_s1  ;;  %v7239_v48 = vpop.eup %6749  ;;  %6753 = vpow2.f32 %v2864_v24  ;;  %v6526_v24 = vld [vmem:[#allocation8 + $0x10] sm:$0xff] }
 0x299   :  { %v7242_v49 = vpop.eup %6751 }
 0x29a   :  { %v6754_v52 = vpop.eup %6753 }
 0x29b   :  { %4161 = vrot.lane.b32.xlu2 %v7239_v48, %s6989_s15  ;;  %v2866_v25 = vsel %vm2859_vm6, %v6754_v52, 0.0 }
 0x2a3   :  { %3944 = vrot.lane.b32.xlu2 %v7242_v49, %s6990_s16 }
 0x2be   :  { %2867 = vadd.xlane.f32.xlu0 %v2866_v25  ;;  %v7010_v25 = vmov 17  }
 0x2ed   :  { %v3077_v29 = vpop.permute.xlu2 %3076 }
 0x2ee   :  { %v3079_v54 = vsel %vm2859_vm6, %v3077_v29, 0.0  ;;  %v6525_v29 = vld [vmem:[#allocation8 + $0x8] sm:$0xff] }
 0x2ef   :  { %3080 = vadd.xlane.f32.xlu1 %v3079_v54 }
 0x2f5   :  { %v4162_v55 = vpop.permute.xlu2 %4161 }
 0x2f6   :  { %v4164_v56 = vsel %vm2859_vm6, %v4162_v55, 0.0  ;;  %v6524_v55 = vld [vmem:[#allocation8] sm:$0xff] }
 0x2f7   :  { %4165 = vadd.xlane.f32.xlu1 %v4164_v56  ;;  %v7012_v56 = vmov 8  }
 0x2fc   :  { %v3728_v57 = vpop.permute.xlu1 %3727 }
 0x2fd   :  { %v3730_v26 = vsel %vm2859_vm6, %v3728_v57, 0.0  ;;  %v3294_v58 = vpop.permute.xlu0 %3293  ;;  %v3945_v60 = vpop.permute.xlu2 %3944 }
 0x2fe   :  { %3731 = vadd.xlane.f32.xlu2 %v3730_v26  ;;  %v3296_v59 = vsel %vm2859_vm6, %v3294_v58, 0.0  ;;  %v3947_v61 = vsel %vm2859_vm6, %v3945_v60, 0.0  ;;  %v7013_v26 = vmov 32   ;;  %v7014_v58 = vmov 25  }
 0x2ff   :  { %3297 = vadd.xlane.f32.xlu0 %v3296_v59  ;;  %v7015_v60 = vmov 21  }
 0x306   :  { %v3511_v63 = vpop.permute.xlu0 %3510  ;;  %3948 = vadd.xlane.f32.xlu2 %v3947_v61  ;;  %v7016_v61 = vmov 27  }
 0x307   :  { %v3513_v1 = vsel %vm2859_vm6, %v3511_v63, 0.0  ;;  %v7017_v63 = vmov 28  }
 0x308   :  { %3514 = vadd.xlane.f32.xlu0 %v3513_v1 }
 0x331   :  { %v2868_v4 = vpop.xlane.xlu0 %2867 }
 0x332   :  { %6755 = vrcp.f32 %v2868_v4 }
 0x338   :  { %v6756_v7 = vpop.eup %6755 }
 0x339   :  { %v2870_v8 = vmul.f32 %v6756_v7, %v6754_v52  ;;  %v7009_v52 = vmov 6  }
 0x33b   :  { %2884 = vperm.xlu0 %6693, %v2870_v8   ;;  %2873 = vperm.xlu1 %6691, %v2870_v8  }
 0x33c   :  { %2890 = vperm.xlu2 %6694, %v2870_v8  }
 0x343   :  { %6692 = vset.pattern.permute.xlu1 %v6994_v18  ;;  %6698 = vset.pattern.permute.xlu0 %v6997_v13  ;;  %v7018_v18 = vmov 9  }
 0x344   :  { %2878 = vperm.xlu1 %6692, %v2870_v8   ;;  %6703 = vset.pattern.permute.xlu2 %v6996_v43 }
 0x34c   :  { %6695 = vset.pattern.permute.xlu1 %v6995_v9 }
 0x34d   :  { %2896 = vperm.xlu1 %6695, %v2870_v8  }
 0x355   :  { %6696 = vset.pattern.permute.xlu1 %v6998_v14 }
 0x362   :  { %v3081_v15 = vpop.xlane.xlu1 %3080 }
 0x363   :  { %6757 = vrcp.f32 %v3081_v15 }
 0x369   :  { %v6758_v0 = vpop.eup %6757 }
 0x36a   :  { %v7254_v16 = vmul.f32 %v6758_v0, %v7232_v45  ;;  %v4166_v32 = vpop.xlane.xlu1 %4165  ;;  %v7006_v45 = vmov 14   ;;  %v7019_v0 = vmov 34  }
 0x36c   :  { %3097 = vperm.xlu2 %6703, %v7254_v16  }
 0x371   :  { %v3732_v17 = vpop.xlane.xlu2 %3731 }
 0x372   :  { %6759 = vrcp.f32 %v3732_v17  ;;  %v3298_v19 = vpop.xlane.xlu0 %3297 }
 0x373   :  { %6761 = vrcp.f32 %v3298_v19  ;;  %v7020_v19 = vmov 24  }
 0x374   :  { %6709 = vset.pattern.permute.xlu2 %v6999_v20  ;;  %v7021_v20 = vmov 16  }
 0x378   :  { %v6760_v21 = vpop.eup %6759 }
 0x379   :  { %v7258_v23 = vmul.f32 %v6760_v21, %v7225_v34  ;;  %v6762_v5 = vpop.eup %6761  ;;  %v6530_v34 = vld [vmem:[#allocation8 + $0x30] sm:$0xff]  ;;  %v3949_v51 = vpop.xlane.xlu2 %3948  ;;  %v6563_v21 = vld [vmem:[#allocation8 + $0xb8] sm:$0xff] }
 0x37a   :  { %v3300_v27 = vmul.f32 %v6762_v5, %v7228_v38  ;;  %v7005_v38 = vmov 20   ;;  %2971 = vmatpush.bf16.msra.mxu2 %v6530_v34  ;;  %v7022_v5 = vmov 30   ;;  %v6547_v34 = vld [vmem:[#allocation8 + $0x78] sm:$0xff] }
 0x37b   :  { %v3515_v40 = vpop.xlane.xlu0 %3514  ;;  %3754 = vperm.xlu2 %6709, %v7258_v23   ;;  %3185 = vmatpush.bf16.msra.mxu0 %v6547_v34  ;;  %v6532_v34 = vld [vmem:[#allocation11] sm:$0xff] }
 0x37c   :  { %6763 = vrcp.f32 %v3515_v40  ;;  %3314 = vperm.xlu0 %6698, %v3300_v27   ;;  %3303 = vperm.xlu1 %6696, %v3300_v27   ;;  %v6560_v40 = vld [vmem:[#allocation8 + $0xa0] sm:$0xff] }
 0x37d   :  { %6765 = vrcp.f32 %v4166_v32  ;;  %v7024_v32 = vmov 26  }
 0x37e   :  { %2972 = vmatpush.bf16.msra.mxu2 %v6529_v62  ;;  %6767 = vrcp.f32 %v3949_v51  ;;  %v6595_v62 = vld [vmem:[#allocation8 + $0x138] sm:$0xff] }
 0x37f   :  { %v6543_v51 = vld [vmem:[#allocation8 + $0x58] sm:$0xff] }
 0x382   :  { %v6764_v10 = vpop.eup %6763  ;;  %2973 = vmatpush.bf16.msra.mxu2 %v6528_v44  ;;  %v6544_v44 = vld [vmem:[#allocation8 + $0x60] sm:$0xff] }
 0x383   :  { %v7263_v39 = vmul.f32 %v6764_v10, %v7234_v46  ;;  %6711 = vset.pattern.permute.xlu2 %v7000_v28  ;;  %v6766_v41 = vpop.eup %6765  ;;  %v7023_v10 = vmov 19   ;;  %v6558_v28 = vld [vmem:[#allocation8 + $0x90] sm:$0xff] }
 0x384   :  { %6701 = vset.pattern.permute.xlu0 %v7001_v31  ;;  %6697 = vset.pattern.permute.xlu1 %v7002_v12  ;;  %v7270_v46 = vmul.f32 %v6766_v41, %v7239_v48  ;;  %v7011_v48 = vmov 33   ;;  %v6768_v54 = vpop.eup %6767  ;;  %v6556_v12 = vld [vmem:[#allocation8 + $0x80] sm:$0xff] }
 0x385   :  { %3308 = vperm.xlu1 %6697, %v3300_v27   ;;  %3520 = vperm.xlu2 %6711, %v7263_v39   ;;  %v7278_v57 = vmul.f32 %v6768_v54, %v7242_v49  ;;  %v6542_v54 = vld [vmem:[#allocation8 + $0x50] sm:$0xff] }
 0x386   :  { %3086 = vperm.xlu0 %6701, %v7254_v16   ;;  %2974 = vmatpush.bf16.msra.mxu2 %v6527_v50 }
 0x38a   :  { %2975 = vmatpush.bf16.msra.mxu2 %v6526_v24 }
 0x38d   :  { %6699 = vset.pattern.permute.xlu1 %v7003_v37  ;;  %6714 = vset.pattern.permute.xlu2 %v7004_v6  ;;  %v7025_v6 = vmov 29  }
 0x38e   :  { %6705 = vset.pattern.permute.xlu0 %v7005_v38  ;;  %3320 = vperm.xlu1 %6699, %v3300_v27   ;;  %v6545_v38 = vld [vmem:[#allocation8 + $0x68] sm:$0xff] }
 0x38f   :  { %3537 = vperm.xlu2 %6714, %v7263_v39   ;;  %3737 = vperm.xlu0 %6705, %v7258_v23  }
 0x390   :  { %2976 = vmatpush.bf16.msra.mxu2 %v6525_v29 }
 0x394   :  { %2977 = vmatpush.bf16.msra.mxu2 %v6524_v55 }
 0x396   :  { %6700 = vset.pattern.permute.xlu1 %v7006_v45  ;;  %v2891_v7 = vpop.permute.xlu2 %2890 }
 0x397   :  { %6716 = vset.pattern.permute.xlu2 %v7007_v33  ;;  %6708 = vset.pattern.permute.xlu0 %v7008_v47  ;;  %v2893_v9 = vmul.f32 %v2891_v7, %v7205_v22  ;;  %v6588_v7 = vld [vmem:[#allocation8 + $0x100] sm:$0xff] }
 0x398   :  { %3326 = vperm.xlu1 %6700, %v3300_v27   ;;  %3748 = vperm.xlu0 %6708, %v7258_v23   ;;  %v6561_v27 = vld [vmem:[#allocation8 + $0xa8] sm:$0xff] }
 0x399   :  { %4176 = vperm.xlu2 %6716, %v7270_v46   ;;  %3402 = vmatpush.bf16.msrb.mxu2 %v6563_v21 }
 0x3a0   :  { %6702 = vset.pattern.permute.xlu1 %v7009_v52  ;;  %6713 = vset.pattern.permute.xlu0 %v7010_v25  ;;  %v6593_v25 = vld [vmem:[#allocation8 + $0x128] sm:$0xff] }
 0x3a1   :  { %6719 = vset.pattern.permute.xlu2 %v7011_v48  ;;  %3091 = vperm.xlu1 %6702, %v7254_v16  }
 0x3a2   :  { %3531 = vperm.xlu0 %6713, %v7263_v39   ;;  %4188 = vperm.xlu2 %6719, %v7270_v46  }
 0x3a9   :  { %6704 = vset.pattern.permute.xlu1 %v7012_v56 }
 0x3aa   :  { %6718 = vset.pattern.permute.xlu0 %v7013_v26  ;;  %6721 = vset.pattern.permute.xlu2 %v7014_v58  ;;  %v6541_v26 = vld [vmem:[#allocation8 + $0x48] sm:$0xff] }
 0x3ab   :  { %3103 = vperm.xlu1 %6704, %v7254_v16   ;;  %4182 = vperm.xlu0 %6718, %v7270_v46  }
 0x3ac   :  { %3954 = vperm.xlu2 %6721, %v7278_v57  }
 0x3ad   :  { %v2874_v59 = vpop.permute.xlu1 %2873  ;;  %v2885_v1 = vpop.permute.xlu0 %2884 }
 0x3ae   :  { %v2876_v2 = vmul.f32 %v2874_v59, %v7151_v11  ;;  %v2887_v4 = vmul.f32 %v2885_v1, %v7196_v42  ;;  %v6590_v1 = vld [vmem:[#allocation8 + $0x110] sm:$0xff] }
 0x3b3   :  { %6706 = vset.pattern.permute.xlu1 %v7015_v60  ;;  %6723 = vset.pattern.permute.xlu0 %v7016_v61  ;;  %v6591_v60 = vld [vmem:[#allocation8 + $0x118] sm:$0xff]  ;;  %v6539_v61 = vld [vmem:[#allocation11 + $0x38] sm:$0xff] }
 0x3b4   :  { %6724 = vset.pattern.permute.xlu2 %v7017_v63  ;;  %3742 = vperm.xlu1 %6706, %v7258_v23   ;;  %v6540_v63 = vld [vmem:[#allocation8 + $0x40] sm:$0xff] }
 0x3b5   :  { %3965 = vperm.xlu0 %6723, %v7278_v57   ;;  %3971 = vperm.xlu2 %6724, %v7278_v57  }
 0x3b6   :  { %v2879_v49 = vpop.permute.xlu1 %2878  ;;  %3053 = vmatpush.bf16.msra.mxu3 %v6539_v61 }
 0x3b7   :  { %v2881_v36 = vmul.f32 %v2879_v49, %v7172_v53 }
 0x3b9   :  { %v2882_v3 = vadd.f32 %v2881_v36, %v2876_v2  ;;  %v6538_v2 = vld [vmem:[#allocation11 + $0x30] sm:$0xff]  ;;  %v6589_v36 = vld [vmem:[#allocation8 + $0x108] sm:$0xff] }
 0x3ba   :  { %3054 = vmatpush.bf16.msra.mxu3 %v6538_v2  ;;  %v6608_v2 = vld [vmem:[#allocation8 + $0x160] sm:$0xff] }
 0x3bb   :  { %v2888_v8 = vadd.f32 %v2887_v4, %v2882_v3  ;;  %v6579_v3 = vld [vmem:[#allocation8 + $0xf8] sm:$0xff]  ;;  %v6537_v4 = vld [vmem:[#allocation11 + $0x28] sm:$0xff] }
 0x3bc   :  { %6707 = vset.pattern.permute.xlu1 %v7018_v18  ;;  %v6578_v18 = vld [vmem:[#allocation8 + $0xf0] sm:$0xff] }
 0x3bd   :  { %3109 = vperm.xlu1 %6707, %v7254_v16   ;;  %v2894_v13 = vadd.f32 %v2893_v9, %v2888_v8  ;;  %6726 = vset.pattern.permute.xlu0 %v7019_v0  ;;  %v6562_v16 = vld [vmem:[#allocation8 + $0xb0] sm:$0xff] }
 0x3be   :  { %3403 = vmatpush.bf16.msrb.mxu2 %v6562_v16  ;;  %3055 = vmatpush.bf16.msra.mxu3 %v6537_v4  ;;  %v6607_v4 = vld [vmem:[#allocation8 + $0x158] sm:$0xff] }
 0x3bf   :  { %v2897_v43 = vpop.permute.xlu1 %2896 }
 0x3c0   :  { %v2899_v14 = vmul.f32 %v2897_v43, %v7208_v35  ;;  %v6536_v43 = vld [vmem:[#allocation11 + $0x20] sm:$0xff] }
 0x3c2   :  { %v2900_v15 = vadd.f32 %v2899_v14, %v2894_v13  ;;  %3404 = vmatpush.bf16.msrb.mxu2 %v6561_v27  ;;  %3056 = vmatpush.bf16.msra.mxu3 %v6536_v43  ;;  %v6577_v13 = vld [vmem:[#allocation8 + $0xe8] sm:$0xff]  ;;  %v6535_v14 = vld [vmem:[#allocation11 + $0x18] sm:$0xff]  ;;  %v6575_v27 = vld [vmem:[#allocation8 + $0xd8] sm:$0xff] }
 0x3c4   :  { %v2901_v17 = vpack.c.bf16 %v2900_v15, %v2900_v15  ;;  %v6627_v15 = vld [vmem:[#allocation8 + $0x1b8] sm:$0xff] }
 0x3c5   :  { %6710 = vset.pattern.permute.xlu1 %v7020_v19  ;;  %v6534_v19 = vld [vmem:[#allocation11 + $0x10] sm:$0xff] }
 0x3c6   :  { %2978 = vmatmul.bf16.vlgmr.msra.gmra.mxu2 %v2901_v17  ;;  %3760 = vperm.xlu1 %6710, %v7258_v23   ;;  %v6559_v23 = vld [vmem:[#allocation8 + $0x98] sm:$0xff]  ;;  %v3098_v17 = vpop.permute.xlu2 %3097 }
 0x3c7   :  { %3405 = vmatpush.bf16.msrb.mxu2 %v6560_v40  ;;  %3057 = vmatpush.bf16.msra.mxu3 %v6535_v14  ;;  %v6533_v40 = vld [vmem:[#allocation11 + $0x8] sm:$0xff] }
 0x3cb   :  { %3406 = vmatpush.bf16.msrb.mxu2 %v6559_v23  ;;  %3058 = vmatpush.bf16.msra.mxu3 %v6534_v19 }
 0x3ce   :  { %6712 = vset.pattern.permute.xlu1 %v7021_v20 }
 0x3cf   :  { %3525 = vperm.xlu1 %6712, %v7263_v39   ;;  %3407 = vmatpush.bf16.msrb.mxu2 %v6558_v28  ;;  %v6625_v28 = vld [vmem:[#allocation8 + $0x1a8] sm:$0xff] }
 0x3d0   :  { %3059 = vmatpush.bf16.msra.mxu3 %v6533_v40  ;;  %v6604_v40 = vld [vmem:[#allocation8 + $0x140] sm:$0xff] }
 0x3d3   :  { %3408 = vmatpush.bf16.msrb.mxu2 %v6557_v30  ;;  %v3100_v30 = vmul.f32 %v3098_v17, %v7196_v42 }
 0x3d4   :  { %3060 = vmatpush.bf16.msra.mxu3 %v6532_v34  ;;  %v6571_v34 = vld [vmem:[#allocation11 + $0xb8] sm:$0xff] }
 0x3d7   :  { %6715 = vset.pattern.permute.xlu1 %v7022_v5  ;;  %3409 = vmatpush.bf16.msrb.mxu2 %v6556_v12  ;;  %v6626_v5 = vld [vmem:[#allocation8 + $0x1b0] sm:$0xff] }
 0x3d8   :  { %4171 = vperm.xlu1 %6715, %v7270_v46   ;;  %v6574_v12 = vld [vmem:[#allocation8 + $0xd0] sm:$0xff]  ;;  %3487 = vmatpush.bf16.msrb.mxu3 %v6571_v34  ;;  %v6729_v34 = vld [vmem:[#allocation10 + $0x1] ss:$0 sm:$0xff] }
 0x3db   :  { %3836 = vmatpush.bf16.msra.mxu2 %v6595_v62  ;;  %v6624_v62 = vld [vmem:[#allocation8 + $0x1a0] sm:$0xff] }
 0x3e0   :  { %6717 = vset.pattern.permute.xlu1 %v7023_v10 }
 0x3e1   :  { %3543 = vperm.xlu1 %6717, %v7263_v39   ;;  %v6546_v39 = vld [vmem:[#allocation8 + $0x70] sm:$0xff] }
 0x3e2   :  { %3186 = vmatpush.bf16.msra.mxu0 %v6546_v39 }
 0x3e6   :  { %3187 = vmatpush.bf16.msra.mxu0 %v6545_v38 }
 0x3e9   :  { %6720 = vset.pattern.permute.xlu1 %v7019_v0  ;;  %v6576_v0 = vld [vmem:[#allocation8 + $0xe0] sm:$0xff] }
 0x3ea   :  { %4194 = vperm.xlu1 %6720, %v7270_v46   ;;  %v6594_v46 = vld [vmem:[#allocation8 + $0x130] sm:$0xff]  ;;  %3188 = vmatpush.bf16.msra.mxu0 %v6544_v44 }
 0x3eb   :  { %3837 = vmatpush.bf16.msra.mxu2 %v6594_v46 }
 0x3ee   :  { %v3304_v31 = vpop.permute.xlu1 %3303  ;;  %v3315_v47 = vpop.permute.xlu0 %3314  ;;  %3189 = vmatpush.bf16.msra.mxu0 %v6543_v51  ;;  %v6623_v51 = vld [vmem:[#allocation8 + $0x198] sm:$0xff] }
 0x3ef   :  { %v3306_v33 = vmul.f32 %v3304_v31, %v7151_v11  ;;  %v3317_v24 = vmul.f32 %v3315_v47, %v7196_v42  ;;  %3838 = vmatpush.bf16.msra.mxu2 %v6593_v25 }
 0x3f2   :  { %6722 = vset.pattern.permute.xlu1 %v7024_v32  ;;  %3190 = vmatpush.bf16.msra.mxu0 %v6542_v54  ;;  %v6622_v54 = vld [vmem:[#allocation8 + $0x190] sm:$0xff] }
 0x3f3   :  { %3959 = vperm.xlu1 %6722, %v7278_v57  }
 0x3f6   :  { %3191 = vmatpush.bf16.msra.mxu0 %v6541_v26 }
 0x3f7   :  { %v3309_v37 = vpop.permute.xlu1 %3308 }
 0x3f8   :  { %v3311_v45 = vmul.f32 %v3309_v37, %v7172_v53  ;;  %v3087_v8 = vpop.permute.xlu0 %3086  ;;  %v3755_v37 = vpop.permute.xlu2 %3754 }
 0x3f9   :  { %v3089_v10 = vmul.f32 %v3087_v8, %v7151_v11 }
 0x3fa   :  { %v3312_v50 = vadd.f32 %v3311_v45, %v3306_v33  ;;  %3192 = vmatpush.bf16.msra.mxu0 %v6540_v63  ;;  %v6609_v63 = vld [vmem:[#allocation8 + $0x168] sm:$0xff] }
 0x3fb   :  { %6725 = vset.pattern.permute.xlu1 %v7025_v6 }
 0x3fc   :  { %3977 = vperm.xlu1 %6725, %v7278_v57   ;;  %v3318_v48 = vadd.f32 %v3317_v24, %v3312_v50  ;;  %v6592_v57 = vld [vmem:[#allocation8 + $0x120] sm:$0xff] }
 0x3fd   :  { %3839 = vmatpush.bf16.msra.mxu2 %v6592_v57 }
 0x3fe   :  { %3619 = vmatpush.bf16.msrb.mxu0 %v6579_v3  ;;  %v6727_v3 = vld [vmem:[#allocation10] ss:$0 sm:$0xff] }
 0x400   :  { %v3321_v41 = vpop.permute.xlu1 %3320 }
 0x401   :  { %v3323_v52 = vmul.f32 %v3321_v41, %v7205_v22  ;;  %3840 = vmatpush.bf16.msra.mxu2 %v6591_v60  ;;  %v3738_v20 = vpop.permute.xlu0 %3737  ;;  %v6573_v41 = vld [vmem:[#allocation8 + $0xc8] sm:$0xff] }
 0x402   :  { %3620 = vmatpush.bf16.msrb.mxu0 %v6578_v18  ;;  %v3740_v6 = vmul.f32 %v3738_v20, %v7151_v11  ;;  %v6621_v60 = vld [vmem:[#allocation8 + $0x188] sm:$0xff] }
 0x403   :  { %v3324_v55 = vadd.f32 %v3323_v52, %v3318_v48  ;;  %v6572_v52 = vld [vmem:[#allocation8 + $0xc0] sm:$0xff]  ;;  %v6611_v48 = vld [vmem:[#allocation8 + $0x178] sm:$0xff]  ;;  %v6605_v20 = vld [vmem:[#allocation8 + $0x148] sm:$0xff] }
 0x405   :  { %3841 = vmatpush.bf16.msra.mxu2 %v6590_v1 }
 0x406   :  { %3621 = vmatpush.bf16.msrb.mxu0 %v6577_v13 }
 0x409   :  { %3842 = vmatpush.bf16.msra.mxu2 %v6589_v36 }
 0x40a   :  { %v3327_v29 = vpop.permute.xlu1 %3326  ;;  %3622 = vmatpush.bf16.msrb.mxu0 %v6576_v0  ;;  %v3749_v44 = vpop.permute.xlu0 %3748 }
 0x40b   :  { %v3329_v56 = vmul.f32 %v3327_v29, %v7208_v35  ;;  %v3751_v50 = vmul.f32 %v3749_v44, %v7196_v42  ;;  %v3757_v29 = vmul.f32 %v3755_v37, %v7205_v22 }
 0x40d   :  { %v3330_v58 = vadd.f32 %v3329_v56, %v3324_v55  ;;  %3843 = vmatpush.bf16.msra.mxu2 %v6588_v7  ;;  %v3521_v55 = vpop.permute.xlu2 %3520 }
 0x40e   :  { %3623 = vmatpush.bf16.msrb.mxu0 %v6575_v27  ;;  %v3523_v43 = vmul.f32 %v3521_v55, %v7151_v11 }
 0x40f   :  { %v3331_v59 = vpack.c.bf16 %v3330_v58, %v3330_v58  ;;  %v6610_v58 = vld [vmem:[#allocation8 + $0x170] sm:$0xff] }
 0x411   :  { %3410 = vmatmul.bf16.vlgmr.msrb.gmra.mxu2 %v3331_v59 }
 0x412   :  { %4270 = vmatpush.bf16.msrb.mxu2 %v6627_v15  ;;  %3624 = vmatpush.bf16.msrb.mxu0 %v6574_v12 }
 0x413   :  { %v3092_v49 = vpop.permute.xlu1 %3091 }
 0x414   :  { %v3094_v21 = vmul.f32 %v3092_v49, %v7172_v53  ;;  %v6620_v49 = vld [vmem:[#allocation8 + $0x180] sm:$0xff]  ;;  %v3532_v13 = vpop.permute.xlu0 %3531 }
 0x415   :  { %v3538_v36 = vpop.permute.xlu2 %3537 }
 0x416   :  { %4271 = vmatpush.bf16.msrb.mxu2 %v6626_v5  ;;  %v3095_v23 = vadd.f32 %v3094_v21, %v3089_v10  ;;  %3625 = vmatpush.bf16.msrb.mxu0 %v6573_v41  ;;  %v3534_v21 = vmul.f32 %v3532_v13, %v7196_v42  ;;  %v3540_v10 = vmul.f32 %v3538_v36, %v7205_v22  ;;  %v6555_v36 = vld [vmem:[#allocation11 + $0x78] sm:$0xff] }
 0x417   :  { %3270 = vmatpush.bf16.msra.mxu1 %v6555_v36 }
 0x418   :  { %v3101_v39 = vadd.f32 %v3100_v30, %v3095_v23 }
 0x41a   :  { %4272 = vmatpush.bf16.msrb.mxu2 %v6625_v28  ;;  %3626 = vmatpush.bf16.msrb.mxu0 %v6572_v52 }
 0x41d   :  { %v3104_v9 = vpop.permute.xlu1 %3103  ;;  %v4177_v0 = vpop.permute.xlu2 %4176 }
 0x41e   :  { %v3106_v31 = vmul.f32 %v3104_v9, %v7205_v22  ;;  %4273 = vmatpush.bf16.msrb.mxu2 %v6624_v62  ;;  %v6606_v9 = vld [vmem:[#allocation8 + $0x150] sm:$0xff]  ;;  %v4179_v23 = vmul.f32 %v4177_v0, %v7172_v53  ;;  %v4183_v30 = vpop.permute.xlu0 %4182  ;;  %v6548_v0 = vld [vmem:[#allocation11 + $0x40] sm:$0xff] }
 0x420   :  { %v3107_v45 = vadd.f32 %v3106_v31, %v3101_v39 }
 0x422   :  { %4274 = vmatpush.bf16.msrb.mxu2 %v6623_v51  ;;  %v6568_v51 = vld [vmem:[#allocation11 + $0xa0] sm:$0xff] }
 0x425   :  { %v4189_v37 = vpop.permute.xlu2 %4188 }
 0x426   :  { %v3743_v16 = vpop.permute.xlu1 %3742  ;;  %4275 = vmatpush.bf16.msrb.mxu2 %v6622_v54  ;;  %v4191_v44 = vmul.f32 %v4189_v37, %v7205_v22 }
 0x427   :  { %v3745_v32 = vmul.f32 %v3743_v16, %v7172_v53  ;;  %v3966_v54 = vpop.permute.xlu0 %3965 }
 0x429   :  { %v3746_v33 = vadd.f32 %v3745_v32, %v3740_v6  ;;  %v4185_v6 = vmul.f32 %v4183_v30, %v7196_v42  ;;  %v6583_v30 = vld [vmem:[#allocation11 + $0xd8] sm:$0xff] }
 0x42a   :  { %4276 = vmatpush.bf16.msrb.mxu2 %v6621_v60 }
 0x42b   :  { %v3752_v25 = vadd.f32 %v3751_v50, %v3746_v33 }
 0x42d   :  { %v3758_v57 = vadd.f32 %v3757_v29, %v3752_v25  ;;  %v6567_v25 = vld [vmem:[#allocation11 + $0x98] sm:$0xff] }
 0x42e   :  { %4277 = vmatpush.bf16.msrb.mxu2 %v6620_v49 }
 0x42f   :  { %v3110_v38 = vpop.permute.xlu1 %3109 }
 0x430   :  { %v3112_v46 = vmul.f32 %v3110_v38, %v7208_v35  ;;  %v6570_v38 = vld [vmem:[#allocation11 + $0xb0] sm:$0xff] }
 0x431   :  { %3488 = vmatpush.bf16.msrb.mxu3 %v6570_v38  ;;  %v6633_v38 = vld [vmem:[#allocation11 + $0x1a8] sm:$0xff] }
 0x432   :  { %v3113_v47 = vadd.f32 %v3112_v46, %v3107_v45  ;;  %v6569_v45 = vld [vmem:[#allocation11 + $0xa8] sm:$0xff] }
 0x434   :  { %v3114_v24 = vpack.c.bf16 %v3113_v47, %v3113_v47 }
 0x435   :  { %3489 = vmatpush.bf16.msrb.mxu3 %v6569_v45  ;;  %v6619_v45 = vld [vmem:[#allocation11 + $0x178] sm:$0xff] }
 0x436   :  { %3193 = vmatmul.bf16.vlgmr.msra.gmra.mxu0 %v3114_v24  ;;  %v3955_v24 = vpop.permute.xlu2 %3954 }
 0x437   :  { %4053 = vmatpush.bf16.msra.mxu0 %v6611_v48  ;;  %v3957_v29 = vmul.f32 %v3955_v24, %v7151_v11  ;;  %v6630_v24 = vld [vmem:[#allocation11 + $0x190] sm:$0xff] }
 0x438   :  { %v3761_v56 = vpop.permute.xlu1 %3760 }
 0x439   :  { %v3763_v26 = vmul.f32 %v3761_v56, %v7208_v35  ;;  %3490 = vmatpush.bf16.msrb.mxu3 %v6568_v51  ;;  %v6566_v56 = vld [vmem:[#allocation11 + $0x90] sm:$0xff]  ;;  %v6730_v51 = vld [vmem:[#allocation10 + $0x4] ss:$0 sm:$0xff] }
 0x43b   :  { %v3764_v59 = vadd.f32 %v3763_v26, %v3758_v57  ;;  %4054 = vmatpush.bf16.msra.mxu0 %v6610_v58  ;;  %v3968_v26 = vmul.f32 %v3966_v54, %v7196_v42  ;;  %v6603_v42 = vld [vmem:[#allocation11 + $0x138] sm:$0xff] }
 0x43d   :  { %v3765_v61 = vpack.c.bf16 %v3764_v59, %v3764_v59  ;;  %3491 = vmatpush.bf16.msrb.mxu3 %v6567_v25 }
 0x43e   :  { %v3972_v58 = vpop.permute.xlu2 %3971 }
 0x43f   :  { %3844 = vmatmul.bf16.vlgmr.msra.gmra.mxu2 %v3765_v61  ;;  %4055 = vmatpush.bf16.msra.mxu0 %v6609_v63  ;;  %v3974_v60 = vmul.f32 %v3972_v58, %v7205_v22  ;;  %v6552_v22 = vld [vmem:[#allocation11 + $0x60] sm:$0xff] }
 0x441   :  { %v3526_v1 = vpop.permute.xlu1 %3525  ;;  %3492 = vmatpush.bf16.msrb.mxu3 %v6566_v56 }
 0x442   :  { %v3528_v7 = vmul.f32 %v3526_v1, %v7172_v53 }
 0x443   :  { %4056 = vmatpush.bf16.msra.mxu0 %v6608_v2 }
 0x444   :  { %v3529_v17 = vadd.f32 %v3528_v7, %v3523_v43  ;;  %v6602_v7 = vld [vmem:[#allocation11 + $0x130] sm:$0xff]  ;;  %v6549_v43 = vld [vmem:[#allocation11 + $0x48] sm:$0xff] }
 0x446   :  { %v3535_v16 = vadd.f32 %v3534_v21, %v3529_v17  ;;  %v6587_v21 = vld [vmem:[#allocation11 + $0xf8] sm:$0xff] }
 0x447   :  { %4057 = vmatpush.bf16.msra.mxu0 %v6607_v4  ;;  %v6553_v4 = vld [vmem:[#allocation11 + $0x68] sm:$0xff] }
 0x448   :  { %v3541_v31 = vadd.f32 %v3540_v10, %v3535_v16  ;;  %v6585_v10 = vld [vmem:[#allocation11 + $0xe8] sm:$0xff] }
 0x449   :  { %v2979_v8 = vpop.f32.mrf.mxu2 }
 0x44a   :  { %v2980_v18 = vadd.f32 %v6727_v3, %v2979_v8  ;;  %v4172_v14 = vpop.permute.xlu1 %4171  ;;  %v6554_v3 = vld [vmem:[#allocation11 + $0x70] sm:$0xff]  ;;  %v6601_v8 = vld [vmem:[#allocation11 + $0x128] sm:$0xff] }
 0x44b   :  { %4058 = vmatpush.bf16.msra.mxu0 %v6606_v9  ;;  %v4174_v27 = vmul.f32 %v4172_v14, %v7151_v11  ;;  %v6565_v11 = vld [vmem:[#allocation11 + $0x88] sm:$0xff]  ;;  %3271 = vmatpush.bf16.msra.mxu1 %v6554_v3  ;;  %v6728_v9 = vld [vmem:[#allocation10 + $0x2] ss:$0 sm:$0xff] }
 0x44c   :  { %v2983_v15 = vmax.f32 %v2980_v18, 0.0  ;;  %3493 = vmatpush.bf16.msrb.mxu3 %v6565_v11  ;;  %v6550_v18 = vld [vmem:[#allocation11 + $0x50] sm:$0xff]  ;;  %v6612_v11 = vld [vmem:[#allocation11 + $0x140] sm:$0xff] }
 0x44d   :  { %v4180_v32 = vadd.f32 %v4179_v23, %v4174_v27  ;;  %v6586_v27 = vld [vmem:[#allocation11 + $0xf0] sm:$0xff]  ;;  %v6596_v23 = vld [vmem:[#allocation11 + $0x100] sm:$0xff] }
 0x44e   :  { %v2984_v19 = vpack.c.bf16 %v2983_v15, %v2983_v15  ;;  %v6600_v15 = vld [vmem:[#allocation11 + $0x120] sm:$0xff] }
 0x44f   :  { %4059 = vmatpush.bf16.msra.mxu0 %v6605_v20  ;;  %v4186_v41 = vadd.f32 %v4185_v6, %v4180_v32  ;;  %3272 = vmatpush.bf16.msra.mxu1 %v6553_v4  ;;  %v6599_v20 = vld [vmem:[#allocation11 + $0x118] sm:$0xff]  ;;  %v6582_v32 = vld [vmem:[#allocation11 + $0xd0] sm:$0xff]  ;;  %v6581_v6 = vld [vmem:[#allocation11 + $0xc8] sm:$0xff] }
 0x450   :  { %3061 = vmatmul.bf16.vlgmr.msra.gmra.mxu3 %v2984_v19 }
 0x451   :  { %v2981_v5 = vpop.f32.mrf.mxu2  ;;  %v4192_v33 = vadd.f32 %v4191_v44, %v4186_v41  ;;  %v6580_v44 = vld [vmem:[#allocation11 + $0xc0] sm:$0xff] }
 0x452   :  { %v6598_v5 = vld [vmem:[#allocation11 + $0x110] sm:$0xff] }
 0x453   :  { %v3544_v28 = vpop.permute.xlu1 %3543  ;;  %4060 = vmatpush.bf16.msra.mxu0 %v6604_v40  ;;  %3273 = vmatpush.bf16.msra.mxu1 %v6552_v22  ;;  %v6597_v40 = vld [vmem:[#allocation11 + $0x108] sm:$0xff]  ;;  %v6733_v22 = vld [vmem:[#allocation10 + $0x6] ss:$0 sm:$0xff] }
 0x454   :  { %v3546_v12 = vmul.f32 %v3544_v28, %v7208_v35  ;;  %v6584_v28 = vld [vmem:[#allocation11 + $0xe0] sm:$0xff] }
 0x456   :  { %v3547_v39 = vadd.f32 %v3546_v12, %v3541_v31  ;;  %v6635_v31 = vld [vmem:[#allocation11 + $0x1b8] sm:$0xff]  ;;  %v6634_v12 = vld [vmem:[#allocation11 + $0x1b0] sm:$0xff] }
 0x458   :  { %v3548_v62 = vpack.c.bf16 %v3547_v39, %v3547_v39 }
 0x45a   :  { %3627 = vmatmul.bf16.vlgmr.msrb.gmra.mxu0 %v3548_v62 }
 0x45c   :  { %v4195_v46 = vpop.permute.xlu1 %4194 }
 0x45d   :  { %v4197_v47 = vmul.f32 %v4195_v46, %v7208_v35  ;;  %v6632_v46 = vld [vmem:[#allocation11 + $0x1a0] sm:$0xff] }
 0x45f   :  { %v4198_v50 = vadd.f32 %v4197_v47, %v4192_v33  ;;  %v6618_v47 = vld [vmem:[#allocation11 + $0x170] sm:$0xff] }
 0x461   :  { %v4199_v52 = vpack.c.bf16 %v4198_v50, %v4198_v50  ;;  %v6631_v50 = vld [vmem:[#allocation11 + $0x198] sm:$0xff] }
 0x463   :  { %4278 = vmatmul.bf16.vlgmr.msrb.gmra.mxu2 %v4199_v52  ;;  %v6617_v52 = vld [vmem:[#allocation11 + $0x168] sm:$0xff] }
 0x465   :  { %v3960_v48 = vpop.permute.xlu1 %3959 }
 0x466   :  { %v3962_v55 = vmul.f32 %v3960_v48, %v7172_v53  ;;  %v6564_v53 = vld [vmem:[#allocation11 + $0x80] sm:$0xff] }
 0x467   :  { %3494 = vmatpush.bf16.msrb.mxu3 %v6564_v53 }
 0x468   :  { %v3963_v57 = vadd.f32 %v3962_v55, %v3957_v29  ;;  %v6616_v29 = vld [vmem:[#allocation11 + $0x160] sm:$0xff]  ;;  %v6629_v55 = vld [vmem:[#allocation11 + $0x188] sm:$0xff] }
 0x46a   :  { %v3969_v59 = vadd.f32 %v3968_v26, %v3963_v57  ;;  %v6615_v57 = vld [vmem:[#allocation11 + $0x158] sm:$0xff]  ;;  %v6628_v26 = vld [vmem:[#allocation11 + $0x180] sm:$0xff] }
 0x46b   :  { %3921 = vmatpush.bf16.msra.mxu3 %v6603_v42 }
 0x46c   :  { %v3975_v63 = vadd.f32 %v3974_v60, %v3969_v59  ;;  %v6614_v59 = vld [vmem:[#allocation11 + $0x150] sm:$0xff]  ;;  %v6731_v60 = vld [vmem:[#allocation13] ss:$0 sm:$0xff] }
 0x46e   :  { %v3978_v61 = vpop.permute.xlu1 %3977 }
 0x46f   :  { %v3980_v49 = vmul.f32 %v3978_v61, %v7208_v35  ;;  %3922 = vmatpush.bf16.msra.mxu3 %v6602_v7  ;;  %v6551_v35 = vld [vmem:[#allocation11 + $0x58] sm:$0xff]  ;;  %v6613_v61 = vld [vmem:[#allocation11 + $0x148] sm:$0xff] }
 0x470   :  { %3274 = vmatpush.bf16.msra.mxu1 %v6551_v35 }
 0x471   :  { %v3981_v1 = vadd.f32 %v3980_v49, %v3975_v63 }
 0x473   :  { %v3982_v2 = vpack.c.bf16 %v3981_v1, %v3981_v1  ;;  %3923 = vmatpush.bf16.msra.mxu3 %v6601_v8  ;;  %v6732_v1 = vld [vmem:[#allocation10 + $0x3] ss:$0 sm:$0xff] }
 0x474   :  { %3275 = vmatpush.bf16.msra.mxu1 %v6550_v18 }
 0x475   :  { %4061 = vmatmul.bf16.vlgmr.msra.gmra.mxu0 %v3982_v2 }
 0x477   :  { %3924 = vmatpush.bf16.msra.mxu3 %v6600_v15 }
 0x478   :  { %3276 = vmatpush.bf16.msra.mxu1 %v6549_v43 }
 0x47b   :  { %3925 = vmatpush.bf16.msra.mxu3 %v6599_v20  ;;  %v6735_v20 = vld [vmem:[#allocation13 + $0x2] ss:$0 sm:$0xff] }
 0x47c   :  { %3277 = vmatpush.bf16.msra.mxu1 %v6548_v0 }
 0x47f   :  { %3926 = vmatpush.bf16.msra.mxu3 %v6598_v5 }
 0x480   :  { %3704 = vmatpush.bf16.msrb.mxu1 %v6587_v21 }
 0x483   :  { %3927 = vmatpush.bf16.msra.mxu3 %v6597_v40  ;;  %v6736_v40 = vld [vmem:[#allocation13 + $0x1] ss:$0 sm:$0xff] }
 0x484   :  { %3705 = vmatpush.bf16.msrb.mxu1 %v6586_v27 }
 0x487   :  { %3928 = vmatpush.bf16.msra.mxu3 %v6596_v23 }
 0x488   :  { %3706 = vmatpush.bf16.msrb.mxu1 %v6585_v10 }
 0x48c   :  { %3707 = vmatpush.bf16.msrb.mxu1 %v6584_v28 }
 0x490   :  { %3708 = vmatpush.bf16.msrb.mxu1 %v6583_v30 }
 0x494   :  { %v3411_v13 = vpop.f32.mrf.mxu2  ;;  %3709 = vmatpush.bf16.msrb.mxu1 %v6582_v32 }
 0x495   :  { %v3412_v14 = vadd.f32 %v6728_v9, %v3411_v13  ;;  %v6734_v13 = vld [vmem:[#allocation10 + $0x5] ss:$0 sm:$0xff] }
 0x497   :  { %v3415_v17 = vmax.f32 %v3412_v14, 0.0 }
 0x498   :  { %3710 = vmatpush.bf16.msrb.mxu1 %v6581_v6 }
 0x499   :  { %v3416_v19 = vpack.c.bf16 %v3415_v17, %v3415_v17 }
 0x49b   :  { %3495 = vmatmul.bf16.vlgmr.msrb.gmra.mxu3 %v3416_v19 }
 0x49c   :  { %v3413_v16 = vpop.f32.mrf.mxu2  ;;  %4355 = vmatpush.bf16.msrb.mxu3 %v6635_v31  ;;  %3711 = vmatpush.bf16.msrb.mxu1 %v6580_v44  ;;  %v6737_v31 = vld [vmem:[#allocation13 + $0x4] ss:$0 sm:$0xff]  ;;  %v6739_v44 = vld [vmem:[#allocation13 + $0x6] ss:$0 sm:$0xff] }
 0x4a0   :  { %4356 = vmatpush.bf16.msrb.mxu3 %v6634_v12 }
 0x4a4   :  { %4357 = vmatpush.bf16.msrb.mxu3 %v6633_v38 }
 0x4a8   :  { %4358 = vmatpush.bf16.msrb.mxu3 %v6632_v46 }
 0x4ac   :  { %4359 = vmatpush.bf16.msrb.mxu3 %v6631_v50 }
 0x4b0   :  { %4360 = vmatpush.bf16.msrb.mxu3 %v6630_v24 }
 0x4b3   :  { %v3194_v37 = vpop.f32.mrf.mxu0 }
 0x4b4   :  { %v3195_v39 = vadd.f32 %v6729_v34, %v3194_v37  ;;  %4361 = vmatpush.bf16.msrb.mxu3 %v6629_v55 }
 0x4b6   :  { %v3198_v62 = vmax.f32 %v3195_v39, 0.0  ;;  %v6738_v39 = vld [vmem:[#allocation13 + $0x3] ss:$0 sm:$0xff] }
 0x4b8   :  { %v3199_v41 = vpack.c.bf16 %v3198_v62, %v3198_v62  ;;  %4362 = vmatpush.bf16.msrb.mxu3 %v6628_v26 }
 0x4ba   :  { %3278 = vmatmul.bf16.vlgmr.msra.gmra.mxu1 %v3199_v41 }
 0x4bb   :  { %v3196_v33 = vpop.f32.mrf.mxu0  ;;  %4138 = vmatpush.bf16.msra.mxu1 %v6619_v45 }
 0x4bf   :  { %4139 = vmatpush.bf16.msra.mxu1 %v6618_v47  ;;  %v6740_v47 = vld [vmem:[#allocation13 + $0x5] ss:$0 sm:$0xff] }
 0x4c2   :  { %v3845_v25 = vpop.f32.mrf.mxu2 }
 0x4c3   :  { %v3846_v48 = vadd.f32 %v6730_v51, %v3845_v25  ;;  %4140 = vmatpush.bf16.msra.mxu1 %v6617_v52 }
 0x4c5   :  { %v3849_v54 = vmax.f32 %v3846_v48, 0.0 }
 0x4c7   :  { %v3850_v56 = vpack.c.bf16 %v3849_v54, %v3849_v54  ;;  %4141 = vmatpush.bf16.msra.mxu1 %v6616_v29 }
 0x4c9   :  { %3929 = vmatmul.bf16.vlgmr.msra.gmra.mxu3 %v3850_v56 }
 0x4ca   :  { %v3847_v58 = vpop.f32.mrf.mxu2 }
 0x4cb   :  { %4142 = vmatpush.bf16.msra.mxu1 %v6615_v57 }
 0x4cf   :  { %4143 = vmatpush.bf16.msra.mxu1 %v6614_v59 }
 0x4d3   :  { %v3062_v63 = vpop.f32.mrf.mxu3  ;;  %4144 = vmatpush.bf16.msra.mxu1 %v6613_v61 }
 0x4d4   :  { %v3063_v49 = vadd.f32 %v6731_v60, %v3062_v63 }
 0x4d6   :  { %v3066_v2 = vmax.f32 %v3063_v49, 0.0 }
 0x4d7   :  { %v3628_v53 = vpop.f32.mrf.mxu0  ;;  %4145 = vmatpush.bf16.msra.mxu1 %v6612_v11 }
 0x4d8   :  { %3067 = vst [vmem:[#allocation14] sm:$0x3] %v3066_v2  ;;  %v3629_v36 = vadd.f32 %v6732_v1, %v3628_v53 }
 0x4da   :  { %v3632_v3 = vmax.f32 %v3629_v36, 0.0 }
 0x4db   :  { %v3064_v42 = vpop.f32.mrf.mxu3 }
 0x4dc   :  { %v3633_v4 = vpack.c.bf16 %v3632_v3, %v3632_v3 }
 0x4de   :  { %3712 = vmatmul.bf16.vlgmr.msrb.gmra.mxu1 %v3633_v4 }
 0x4df   :  { %v3630_v7 = vpop.f32.mrf.mxu0 }
 0x4e6   :  { %v4279_v8 = vpop.f32.mrf.mxu2 }
 0x4e7   :  { %v4280_v35 = vadd.f32 %v6733_v22, %v4279_v8 }
 0x4e9   :  { %v4283_v18 = vmax.f32 %v4280_v35, 0.0 }
 0x4eb   :  { %v4284_v9 = vpack.c.bf16 %v4283_v18, %v4283_v18 }
 0x4ed   :  { %4363 = vmatmul.bf16.vlgmr.msrb.gmra.mxu3 %v4284_v9 }
 0x4ee   :  { %v4281_v43 = vpop.f32.mrf.mxu2 }
 0x4f2   :  { %v4062_v14 = vpop.f32.mrf.mxu0 }
 0x4f3   :  { %v4063_v15 = vadd.f32 %v6734_v13, %v4062_v14 }
 0x4f5   :  { %v4066_v0 = vmax.f32 %v4063_v15, 0.0 }
 0x4f7   :  { %v4067_v17 = vpack.c.bf16 %v4066_v0, %v4066_v0 }
 0x4f9   :  { %4146 = vmatmul.bf16.vlgmr.msra.gmra.mxu1 %v4067_v17 }
 0x4fa   :  { %v4064_v19 = vpop.f32.mrf.mxu0 }
 0x51e   :  { %v3496_v21 = vpop.f32.mrf.mxu3 }
 0x51f   :  { %v3497_v16 = vadd.f32 %v6735_v20, %v3496_v21 }
 0x521   :  { %v3500_v5 = vmax.f32 %v3497_v16, 0.0 }
 0x523   :  { %3501 = vst [vmem:[#allocation14 + $0x4] sm:$0x3] %v3500_v5 }
 0x526   :  { %v3498_v27 = vpop.f32.mrf.mxu3 }
 0x537   :  { %v3279_v10 = vpop.f32.mrf.mxu1 }
 0x538   :  { %v3280_v23 = vadd.f32 %v6736_v40, %v3279_v10 }
 0x53a   :  { %v3283_v28 = vmax.f32 %v3280_v23, 0.0 }
 0x53c   :  { %3284 = vst [vmem:[#allocation14 + $0x2] sm:$0x3] %v3283_v28 }
 0x53f   :  { %v3281_v30 = vpop.f32.mrf.mxu1 }
 0x54c   :  { %v3930_v12 = vpop.f32.mrf.mxu3 }
 0x54d   :  { %v3931_v32 = vadd.f32 %v6737_v31, %v3930_v12 }
 0x54f   :  { %v3934_v34 = vmax.f32 %v3931_v32, 0.0 }
 0x551   :  { %3935 = vst [vmem:[#allocation14 + $0x8] sm:$0x3] %v3934_v34 }
 0x554   :  { %v3932_v37 = vpop.f32.mrf.mxu3 }
 0x55b   :  { %v3713_v6 = vpop.f32.mrf.mxu1 }
 0x55c   :  { %v3714_v38 = vadd.f32 %v6738_v39, %v3713_v6 }
 0x55e   :  { %v3717_v62 = vmax.f32 %v3714_v38, 0.0 }
 0x560   :  { %3718 = vst [vmem:[#allocation14 + $0x6] sm:$0x3] %v3717_v62 }
 0x563   :  { %v3715_v41 = vpop.f32.mrf.mxu1 }
 0x570   :  { %v4364_v45 = vpop.f32.mrf.mxu3 }
 0x571   :  { %v4365_v46 = vadd.f32 %v6739_v44, %v4364_v45 }
 0x573   :  { %v4368_v33 = vmax.f32 %v4365_v46, 0.0 }
 0x575   :  { %4369 = vst [vmem:[#allocation14 + $0xc] sm:$0x3] %v4368_v33 }
 0x576   :  { %v4147_v50 = vpop.f32.mrf.mxu1 }
 0x577   :  { %v4148_v51 = vadd.f32 %v6740_v47, %v4147_v50 }
 0x578   :  { %v4366_v24 = vpop.f32.mrf.mxu3 }
 0x579   :  { %v4151_v52 = vmax.f32 %v4148_v51, 0.0 }
 0x57b   :  { %4152 = vst [vmem:[#allocation14 + $0xa] sm:$0x3] %v4151_v52 }
 0x57c   :  { %4380 = dma.vmem_to_hbm [thread:$0]  %s4376_s18, 224, %s4378_s20, [#allocation4]  }
 0x57e   :  { %v4149_v25 = vpop.f32.mrf.mxu1 }
 0x57f   :  { %6970 = dma.done.wait [#allocation4], 224  }
 0x580   :  { %6971 = vsyncadd [#allocation4], 4294967072 }
 0x581   :  { %4385 = vsyncpa [#allocation3], 1 }
 0x582   :  { %4386 = vsyncpa [#allocation6], 1 }
 0x583   :  { %4387 = vsyncpa [#allocation9], 1 }
 0x584   :  { %4388 = vsyncpa [#allocation12], 1 }
 0x585   :  { %4389 = vsyncpa [#allocation4], 1 }

</bundles_post_ra>
